<compile_context>
chip_gen: v7x
topology: tpu7x:2x2x1
jax: 0.10.0
libtpu: 0.0.40
codegen_flags: <defaults>
</compile_context>

<pallas_src>
import jax
import jax.numpy as jnp
from jax.experimental import pallas as pl
from jax.experimental.pallas import tpu as pltpu


# ----------------------------------------------------------------------------
# Pallas kernels
# ----------------------------------------------------------------------------
def conv_bn_relu_pool_kernel(p_ref, w_ref, b_ref, o_ref):
    """Fused conv(as GEMM) + folded-BN bias + ReLU + 2x2 maxpool.

    p_ref (4, g*R, K) holds the im2col patches of the four positions inside
    each 2x2 pool window, so maxpool(relu(conv)) == relu(max of 4 GEMMs + b).
    """
    w = w_ref[...]
    y = jnp.dot(p_ref[0], w, preferred_element_type=jnp.float32)
    y = jnp.maximum(y, jnp.dot(p_ref[1], w, preferred_element_type=jnp.float32))
    y = jnp.maximum(y, jnp.dot(p_ref[2], w, preferred_element_type=jnp.float32))
    y = jnp.maximum(y, jnp.dot(p_ref[3], w, preferred_element_type=jnp.float32))
    o_ref[...] = jnp.maximum(y + b_ref[...], 0.0).astype(o_ref.dtype)


def mlp_kernel(x_ref, w1_ref, b1_ref, w2_ref, b2_ref, o_ref):
    """fc1 -> relu -> (dropout = identity, eval) -> fc2, lane-padded widths."""
    h = jnp.dot(x_ref[...], w1_ref[...], preferred_element_type=jnp.float32)
    h = jnp.maximum(h + b1_ref[...], 0.0)
    out = jnp.dot(h.astype(w2_ref.dtype), w2_ref[...],
                  preferred_element_type=jnp.float32)
    o_ref[...] = (out + b2_ref[...]).astype(o_ref.dtype)


# ----------------------------------------------------------------------------
# Tiling helpers
# ----------------------------------------------------------------------------
def _group_size(n, rows, target_rows=1024):
    """Largest g dividing n with g*rows <= ~target_rows and n//g >= 2."""
    gmax = max(1, target_rows // rows)
    best = 1
    for g in range(2, gmax + 1):
        if n % g == 0 and n // g >= 2:
            best = g
    return best


def _row_tile(n):
    """MLP row tile: prefer 128; keep >= 2 grid steps when n >= 16 (v7x 2 TCs)."""
    if n >= 16:
        for t in (128, 64, 32, 16, 8):
            if n % t == 0 and n // t >= 2:
                return t
    for t in (128, 64, 32, 16, 8):
        if n % t == 0:
            return t
    return n  # small / odd batch: single full-batch block


# ----------------------------------------------------------------------------
# Pallas wrappers
# ----------------------------------------------------------------------------
def conv_bn_relu_pool(p, w, b, *, out_dtype):
    """p: (N, 4, R, K) fused pool-position patches; w: (K, C); b: (1, C).

    Returns (N, R, C) pooled activations.  Groups g images per grid step.
    """
    N, _, R, K = p.shape
    C = w.shape[1]
    g = _group_size(N, R)
    ng = N // g
    # Regroup to (ng, 4, g*R, K): one contiguous DMA block per grid step.
    pg = (p.reshape(ng, g, 4, R, K)
           .transpose(0, 2, 1, 3, 4)
           .reshape(ng, 4, g * R, K))
    out = pl.pallas_call(
        conv_bn_relu_pool_kernel,
        out_shape=jax.ShapeDtypeStruct((ng, g * R, C), out_dtype),
        grid=(ng,),
        in_specs=[
            pl.BlockSpec((None, 4, g * R, K), lambda n: (n, 0, 0, 0)),
            pl.BlockSpec((K, C), lambda n: (0, 0)),
            pl.BlockSpec((1, C), lambda n: (0, 0)),
        ],
        out_specs=pl.BlockSpec((None, g * R, C), lambda n: (n, 0, 0)),
        compiler_params=pltpu.CompilerParams(dimension_semantics=("parallel",)),
    )(pg, w, b)
    return out.reshape(N, R, C)


def mlp(x, w1, b1, w2, b2):
    N, D = x.shape
    H = w1.shape[1]   # 640 (lane padded)
    O = w2.shape[1]   # 128 (lane padded)
    tn = _row_tile(N)
    return pl.pallas_call(
        mlp_kernel,
        out_shape=jax.ShapeDtypeStruct((N, O), jnp.float32),
        grid=(N // tn,),
        in_specs=[
            pl.BlockSpec((tn, D), lambda i: (i, 0)),
            pl.BlockSpec((D, H), lambda i: (0, 0)),
            pl.BlockSpec((1, H), lambda i: (0, 0)),
            pl.BlockSpec((H, O), lambda i: (0, 0)),
            pl.BlockSpec((1, O), lambda i: (0, 0)),
        ],
        out_specs=pl.BlockSpec((tn, O), lambda i: (i, 0)),
        compiler_params=pltpu.CompilerParams(dimension_semantics=("parallel",)),
    )(x, w1, b1, w2, b2)


# ----------------------------------------------------------------------------
# JAX glue (pure data movement)
# ----------------------------------------------------------------------------
def pooled_im2col_nhwc(x_nhwc, kh, kw, pad, out_dtype):
    """im2col for a stride-1 'same' conv that is followed by a 2x2/2 maxpool.

    Returns one array P of shape (N, 4, (H//2)*(W//2), kh*kw*C), where
    P[n, 2*i+j, ph*(W//2)+pw, (ky*kw+kx)*C + c] = x_pad[n, 2*ph+i+ky, 2*pw+j+kx, c],
    i.e. the conv patch at output pixel (2*ph+i, 2*pw+j).  K order is (ky,kx,c).
    """
    N, H, W, C = x_nhwc.shape
    Ho, Wo = H // 2, W // 2
    xp = jnp.pad(x_nhwc, ((0, 0), (pad, pad), (pad, pad), (0, 0)))
    outs = []
    for i in range(2):
        for j in range(2):
            cols = []
            for ky in range(kh):
                for kx in range(kw):
                    sl = xp[:, i + ky::2, j + kx::2, :][:, :Ho, :Wo, :]
                    cols.append(sl)                                # (N,Ho,Wo,C)
            p = jnp.concatenate(cols, axis=-1)                     # (N,Ho,Wo,kh*kw*C)
            outs.append(p.reshape(N, Ho * Wo, kh * kw * C).astype(out_dtype))
    return jnp.stack(outs, axis=1)                                 # (N,4,R,K)


# ----------------------------------------------------------------------------
# Full forward pass
# ----------------------------------------------------------------------------
def cnn_forward(x_nchw, params):
    N = x_nchw.shape[0]
    # NCHW -> NHWC is a pure reshape here because C == 1.
    x = x_nchw.reshape(N, 28, 28, 1)

    # conv1 (1->8, 3x3, pad 1) + bn1 + relu + maxpool 2x2, fused (bf16 operands)
    p1 = pooled_im2col_nhwc(x, 3, 3, 1, jnp.bfloat16)        # (N, 4, 196, 9)
    h1 = conv_bn_relu_pool(p1, params["w1"], params["b1"],
                           out_dtype=jnp.bfloat16)           # (N, 196, 8)
    h1 = h1.reshape(N, 14, 14, 8)                            # pure reshape (no transpose)

    # conv2 (8->32, 5x5, pad 2) + bn2 + relu + maxpool 2x2, fused
    # TODO(synk): this materializes ~78 KB/img of patches in HBM; in-kernel
    #             patch construction / allow_input_fusion would remove it but
    #             is Mosaic-fragile, so the robust form is kept.
    p2 = pooled_im2col_nhwc(h1, 5, 5, 2, jnp.bfloat16)       # (N, 4, 49, 200)
    h2 = conv_bn_relu_pool(p2, params["w2"], params["b2"],
                           out_dtype=jnp.bfloat16)           # (N, 49, 32)

    # flatten in (h, w, c) order; fc1 rows are permuted to match at init time
    flat = h2.reshape(N, 49 * 32)                            # (N, 1568), no transpose

    logits_padded = mlp(flat, params["fw1"], params["fb1"],
                        params["fw2"], params["fb2"])        # (N, 128)
    return logits_padded[:, :10]


def init_params(key):
    ks = jax.random.split(key, 16)
    f32, bf16 = jnp.float32, jnp.bfloat16

    def fold_bn(w, b, gamma, beta, mean, var, eps=1e-5):
        # BN(z) = z*s + t with s = gamma/sqrt(var+eps), t = beta - mean*s
        # => relu(BN(conv+b)) uses w' = w*s (per out-channel), b' = (b-mean)*s + beta
        s = gamma / jnp.sqrt(var + eps)
        return w * s, (b - mean) * s + beta

    # conv1: torch weight (8,1,3,3) -> GEMM (K=9, Cout=8), K order (ky,kx,c); BN1 folded.
    w1 = 0.3 * jax.random.normal(ks[0], (9, 8), f32)
    b1 = 0.1 * jax.random.normal(ks[1], (1, 8), f32)
    g1 = 1.0 + 0.1 * jax.random.normal(ks[2], (1, 8), f32)
    be1 = 0.1 * jax.random.normal(ks[3], (1, 8), f32)
    rm1 = 0.1 * jax.random.normal(ks[4], (1, 8), f32)
    rv1 = jax.random.uniform(ks[5], (1, 8), f32, 0.5, 1.5)
    w1, b1 = fold_bn(w1, b1, g1, be1, rm1, rv1)

    # conv2: torch weight (32,8,5,5) -> GEMM (K=200, Cout=32), K order (ky,kx,c); BN2 folded.
    w2 = 0.1 * jax.random.normal(ks[6], (200, 32), f32)
    b2 = 0.1 * jax.random.normal(ks[7], (1, 32), f32)
    g2 = 1.0 + 0.1 * jax.random.normal(ks[8], (1, 32), f32)
    be2 = 0.1 * jax.random.normal(ks[9], (1, 32), f32)
    rm2 = 0.1 * jax.random.normal(ks[10], (1, 32), f32)
    rv2 = jax.random.uniform(ks[11], (1, 32), f32, 0.5, 1.5)
    w2, b2 = fold_bn(w2, b2, g2, be2, rm2, rv2)

    # fc1: torch (600,1568) -> (1568,600) with rows permuted to (h,w,c) feature order
    #      (fw1_gemm[(h*7+w)*32+c, j] = fc1.weight[j, c*49+h*7+w]); padded 600->640 cols.
    # fc2: torch (10,600) -> (600,10); padded to (640,128).  Padding is zeros so the
    #      extra hidden units / logit columns stay exactly zero.
    fw1 = 0.05 * jax.random.normal(ks[12], (1568, 600), f32)
    fb1 = 0.05 * jax.random.normal(ks[13], (1, 600), f32)
    fw2 = 0.05 * jax.random.normal(ks[14], (600, 10), f32)
    fb2 = 0.05 * jax.random.normal(ks[15], (1, 10), f32)
    fw1p = jnp.zeros((1568, 640), f32).at[:, :600].set(fw1)
    fb1p = jnp.zeros((1, 640), f32).at[:, :600].set(fb1)
    fw2p = jnp.zeros((640, 128), f32).at[:600, :10].set(fw2)
    fb2p = jnp.zeros((1, 128), f32).at[:, :10].set(fb2)

    return dict(
        w1=w1.astype(bf16), b1=b1.astype(f32),           # conv1 GEMM operands bf16
        w2=w2.astype(bf16), b2=b2.astype(f32),           # conv2 GEMM operands bf16
        fw1=fw1p.astype(bf16), fb1=fb1p.astype(f32),     # FC operands bf16, bias f32
        fw2=fw2p.astype(bf16), fb2=fb2p.astype(f32),
    )


if __name__ == "__main__":
    key = jax.random.PRNGKey(0)
    kx, kp = jax.random.split(key)
    # fc1 expects 1568 = 32*7*7 features -> input spatial must be 28x28 (MNIST).
    x = jax.random.normal(kx, (2, 1, 28, 28), dtype=jnp.float32)
    params = init_params(kp)

    out = jax.jit(cnn_forward)(x, params)
    out = jax.block_until_ready(out)
    assert out.shape == (2, 10) and out.dtype == jnp.float32
    print("KERNEL_OK")
</pallas_src>

<mosaic_0001>
module attributes {stable_mosaic.version = 11 : i64} {
  func.func @conv_bn_relu_pool_kernel(%arg0: i32, %arg1: memref<1x4x196x9xbf16, #tpu.memory_space<vmem>>, %arg2: memref<9x8xbf16, #tpu.memory_space<vmem>>, %arg3: memref<1x8xf32, #tpu.memory_space<vmem>>, %arg4: memref<1x196x8xbf16, #tpu.memory_space<vmem>>) attributes {dimension_semantics = [#tpu.dimension_semantics<parallel>], iteration_bounds = array<i64: 2>, scalar_prefetch = 0 : i64, scratch_operands = 0 : i64, tpu.core_type = #tpu.core_type<tc>, window_params = [{transform_indices = @transform_0, window_bounds = array<i64: 1, 4, 196, 9>}, {pipeline_mode = #tpu.pipeline_mode<synchronous>, transform_indices = @transform_1, window_bounds = array<i64: 9, 8>}, {pipeline_mode = #tpu.pipeline_mode<synchronous>, transform_indices = @transform_2, window_bounds = array<i64: 1, 8>}, {transform_indices = @transform_3, window_bounds = array<i64: 1, 196, 8>}]} {
    %c0 = arith.constant 0 : index
    %c0_0 = arith.constant 0 : index
    %0 = vector.load %arg2[%c0, %c0_0] : memref<9x8xbf16, #tpu.memory_space<vmem>>, vector<9x8xbf16>
    %c0_1 = arith.constant 0 : index
    %c0_2 = arith.constant 0 : index
    %c0_3 = arith.constant 0 : index
    %c0_4 = arith.constant 0 : index
    %1 = vector.load %arg1[%c0_1, %c0_2, %c0_3, %c0_4] : memref<1x4x196x9xbf16, #tpu.memory_space<vmem>>, vector<1x1x196x9xbf16>
    %2 = vector.shape_cast %1 : vector<1x1x196x9xbf16> to vector<196x9xbf16>
    %cst = arith.constant dense<0.000000e+00> : vector<196x8xf32>
    %3 = tpu.matmul %2, %0, %cst {dimension_numbers = #tpu.dot_dimension_numbers<[1], [0], [0], [1], [0, 0, 1, 1], [], []>} : vector<196x9xbf16>, vector<9x8xbf16>, vector<196x8xf32> -> vector<196x8xf32>
    %c0_5 = arith.constant 0 : index
    %c1 = arith.constant 1 : index
    %c0_6 = arith.constant 0 : index
    %c0_7 = arith.constant 0 : index
    %4 = vector.load %arg1[%c0_5, %c1, %c0_6, %c0_7] : memref<1x4x196x9xbf16, #tpu.memory_space<vmem>>, vector<1x1x196x9xbf16>
    %5 = vector.shape_cast %4 : vector<1x1x196x9xbf16> to vector<196x9xbf16>
    %cst_8 = arith.constant dense<0.000000e+00> : vector<196x8xf32>
    %6 = tpu.matmul %5, %0, %cst_8 {dimension_numbers = #tpu.dot_dimension_numbers<[1], [0], [0], [1], [0, 0, 1, 1], [], []>} : vector<196x9xbf16>, vector<9x8xbf16>, vector<196x8xf32> -> vector<196x8xf32>
    %7 = arith.maximumf %3, %6 : vector<196x8xf32>
    %c0_9 = arith.constant 0 : index
    %c2 = arith.constant 2 : index
    %c0_10 = arith.constant 0 : index
    %c0_11 = arith.constant 0 : index
    %8 = vector.load %arg1[%c0_9, %c2, %c0_10, %c0_11] : memref<1x4x196x9xbf16, #tpu.memory_space<vmem>>, vector<1x1x196x9xbf16>
    %9 = vector.shape_cast %8 : vector<1x1x196x9xbf16> to vector<196x9xbf16>
    %cst_12 = arith.constant dense<0.000000e+00> : vector<196x8xf32>
    %10 = tpu.matmul %9, %0, %cst_12 {dimension_numbers = #tpu.dot_dimension_numbers<[1], [0], [0], [1], [0, 0, 1, 1], [], []>} : vector<196x9xbf16>, vector<9x8xbf16>, vector<196x8xf32> -> vector<196x8xf32>
    %11 = arith.maximumf %7, %10 : vector<196x8xf32>
    %c0_13 = arith.constant 0 : index
    %c3 = arith.constant 3 : index
    %c0_14 = arith.constant 0 : index
    %c0_15 = arith.constant 0 : index
    %12 = vector.load %arg1[%c0_13, %c3, %c0_14, %c0_15] : memref<1x4x196x9xbf16, #tpu.memory_space<vmem>>, vector<1x1x196x9xbf16>
    %13 = vector.shape_cast %12 : vector<1x1x196x9xbf16> to vector<196x9xbf16>
    %cst_16 = arith.constant dense<0.000000e+00> : vector<196x8xf32>
    %14 = tpu.matmul %13, %0, %cst_16 {dimension_numbers = #tpu.dot_dimension_numbers<[1], [0], [0], [1], [0, 0, 1, 1], [], []>} : vector<196x9xbf16>, vector<9x8xbf16>, vector<196x8xf32> -> vector<196x8xf32>
    %15 = arith.maximumf %11, %14 : vector<196x8xf32>
    %c0_17 = arith.constant 0 : index
    %c0_18 = arith.constant 0 : index
    %16 = vector.load %arg3[%c0_17, %c0_18] : memref<1x8xf32, #tpu.memory_space<vmem>>, vector<1x8xf32>
    %17 = vector.broadcast %16 : vector<1x8xf32> to vector<196x8xf32>
    %18 = arith.addf %15, %17 : vector<196x8xf32>
    %cst_19 = arith.constant 0.000000e+00 : f32
    %19 = vector.broadcast %cst_19 : f32 to vector<196x8xf32>
    %20 = arith.maximumf %18, %19 : vector<196x8xf32>
    %21 = arith.truncf %20 : vector<196x8xf32> to vector<196x8xbf16>
    %c0_20 = arith.constant 0 : index
    %c0_21 = arith.constant 0 : index
    %c0_22 = arith.constant 0 : index
    %22 = vector.load %arg4[%c0_20, %c0_21, %c0_22] : memref<1x196x8xbf16, #tpu.memory_space<vmem>>, vector<1x196x8xbf16>
    %23 = vector.shape_cast %22 : vector<1x196x8xbf16> to vector<196x8xbf16>
    %24 = vector.shape_cast %21 : vector<196x8xbf16> to vector<1x196x8xbf16>
    tpu.vector_store %arg4[%c0_20, %c0_21, %c0_22], %24 {strides = array<i32>} : memref<1x196x8xbf16, #tpu.memory_space<vmem>>, vector<1x196x8xbf16>,
    return
  }
  func.func @transform_0(%arg0: i32) -> (i32, i32, i32, i32) {
    %c0_i32 = arith.constant 0 : i32
    %c0_i32_0 = arith.constant 0 : i32
    %c0_i32_1 = arith.constant 0 : i32
    %c0_i32_2 = arith.constant 0 : i32
    return %arg0, %c0_i32, %c0_i32_0, %c0_i32_1 : i32, i32, i32, i32
  }
  func.func @transform_1(%arg0: i32) -> (i32, i32) {
    %c0_i32 = arith.constant 0 : i32
    %c0_i32_0 = arith.constant 0 : i32
    %c0_i32_1 = arith.constant 0 : i32
    return %c0_i32, %c0_i32_0 : i32, i32
  }
  func.func @transform_2(%arg0: i32) -> (i32, i32) {
    %c0_i32 = arith.constant 0 : i32
    %c0_i32_0 = arith.constant 0 : i32
    %c0_i32_1 = arith.constant 0 : i32
    return %c0_i32, %c0_i32_0 : i32, i32
  }
  func.func @transform_3(%arg0: i32) -> (i32, i32, i32) {
    %c0_i32 = arith.constant 0 : i32
    %c0_i32_0 = arith.constant 0 : i32
    %c0_i32_1 = arith.constant 0 : i32
    return %arg0, %c0_i32, %c0_i32_0 : i32, i32, i32
  }
}

module attributes {stable_mosaic.version = 11 : i64} {
  func.func @conv_bn_relu_pool_kernel(%arg0: i32, %arg1: memref<1x4x49x200xbf16, #tpu.memory_space<vmem>>, %arg2: memref<200x32xbf16, #tpu.memory_space<vmem>>, %arg3: memref<1x32xf32, #tpu.memory_space<vmem>>, %arg4: memref<1x49x32xbf16, #tpu.memory_space<vmem>>) attributes {dimension_semantics = [#tpu.dimension_semantics<parallel>], iteration_bounds = array<i64: 2>, scalar_prefetch = 0 : i64, scratch_operands = 0 : i64, tpu.core_type = #tpu.core_type<tc>, window_params = [{transform_indices = @transform_0, window_bounds = array<i64: 1, 4, 49, 200>}, {pipeline_mode = #tpu.pipeline_mode<synchronous>, transform_indices = @transform_1, window_bounds = array<i64: 200, 32>}, {pipeline_mode = #tpu.pipeline_mode<synchronous>, transform_indices = @transform_2, window_bounds = array<i64: 1, 32>}, {transform_indices = @transform_3, window_bounds = array<i64: 1, 49, 32>}]} {
    %c0 = arith.constant 0 : index
    %c0_0 = arith.constant 0 : index
    %0 = vector.load %arg2[%c0, %c0_0] : memref<200x32xbf16, #tpu.memory_space<vmem>>, vector<200x32xbf16>
    %c0_1 = arith.constant 0 : index
    %c0_2 = arith.constant 0 : index
    %c0_3 = arith.constant 0 : index
    %c0_4 = arith.constant 0 : index
    %1 = vector.load %arg1[%c0_1, %c0_2, %c0_3, %c0_4] : memref<1x4x49x200xbf16, #tpu.memory_space<vmem>>, vector<1x1x49x200xbf16>
    %2 = vector.shape_cast %1 : vector<1x1x49x200xbf16> to vector<49x200xbf16>
    %cst = arith.constant dense<0.000000e+00> : vector<49x32xf32>
    %3 = tpu.matmul %2, %0, %cst {dimension_numbers = #tpu.dot_dimension_numbers<[1], [0], [0], [1], [0, 0, 1, 1], [], []>} : vector<49x200xbf16>, vector<200x32xbf16>, vector<49x32xf32> -> vector<49x32xf32>
    %c0_5 = arith.constant 0 : index
    %c1 = arith.constant 1 : index
    %c0_6 = arith.constant 0 : index
    %c0_7 = arith.constant 0 : index
    %4 = vector.load %arg1[%c0_5, %c1, %c0_6, %c0_7] : memref<1x4x49x200xbf16, #tpu.memory_space<vmem>>, vector<1x1x49x200xbf16>
    %5 = vector.shape_cast %4 : vector<1x1x49x200xbf16> to vector<49x200xbf16>
    %cst_8 = arith.constant dense<0.000000e+00> : vector<49x32xf32>
    %6 = tpu.matmul %5, %0, %cst_8 {dimension_numbers = #tpu.dot_dimension_numbers<[1], [0], [0], [1], [0, 0, 1, 1], [], []>} : vector<49x200xbf16>, vector<200x32xbf16>, vector<49x32xf32> -> vector<49x32xf32>
    %7 = arith.maximumf %3, %6 : vector<49x32xf32>
    %c0_9 = arith.constant 0 : index
    %c2 = arith.constant 2 : index
    %c0_10 = arith.constant 0 : index
    %c0_11 = arith.constant 0 : index
    %8 = vector.load %arg1[%c0_9, %c2, %c0_10, %c0_11] : memref<1x4x49x200xbf16, #tpu.memory_space<vmem>>, vector<1x1x49x200xbf16>
    %9 = vector.shape_cast %8 : vector<1x1x49x200xbf16> to vector<49x200xbf16>
    %cst_12 = arith.constant dense<0.000000e+00> : vector<49x32xf32>
    %10 = tpu.matmul %9, %0, %cst_12 {dimension_numbers = #tpu.dot_dimension_numbers<[1], [0], [0], [1], [0, 0, 1, 1], [], []>} : vector<49x200xbf16>, vector<200x32xbf16>, vector<49x32xf32> -> vector<49x32xf32>
    %11 = arith.maximumf %7, %10 : vector<49x32xf32>
    %c0_13 = arith.constant 0 : index
    %c3 = arith.constant 3 : index
    %c0_14 = arith.constant 0 : index
    %c0_15 = arith.constant 0 : index
    %12 = vector.load %arg1[%c0_13, %c3, %c0_14, %c0_15] : memref<1x4x49x200xbf16, #tpu.memory_space<vmem>>, vector<1x1x49x200xbf16>
    %13 = vector.shape_cast %12 : vector<1x1x49x200xbf16> to vector<49x200xbf16>
    %cst_16 = arith.constant dense<0.000000e+00> : vector<49x32xf32>
    %14 = tpu.matmul %13, %0, %cst_16 {dimension_numbers = #tpu.dot_dimension_numbers<[1], [0], [0], [1], [0, 0, 1, 1], [], []>} : vector<49x200xbf16>, vector<200x32xbf16>, vector<49x32xf32> -> vector<49x32xf32>
    %15 = arith.maximumf %11, %14 : vector<49x32xf32>
    %c0_17 = arith.constant 0 : index
    %c0_18 = arith.constant 0 : index
    %16 = vector.load %arg3[%c0_17, %c0_18] : memref<1x32xf32, #tpu.memory_space<vmem>>, vector<1x32xf32>
    %17 = vector.broadcast %16 : vector<1x32xf32> to vector<49x32xf32>
    %18 = arith.addf %15, %17 : vector<49x32xf32>
    %cst_19 = arith.constant 0.000000e+00 : f32
    %19 = vector.broadcast %cst_19 : f32 to vector<49x32xf32>
    %20 = arith.maximumf %18, %19 : vector<49x32xf32>
    %21 = arith.truncf %20 : vector<49x32xf32> to vector<49x32xbf16>
    %c0_20 = arith.constant 0 : index
    %c0_21 = arith.constant 0 : index
    %c0_22 = arith.constant 0 : index
    %22 = vector.load %arg4[%c0_20, %c0_21, %c0_22] : memref<1x49x32xbf16, #tpu.memory_space<vmem>>, vector<1x49x32xbf16>
    %23 = vector.shape_cast %22 : vector<1x49x32xbf16> to vector<49x32xbf16>
    %24 = vector.shape_cast %21 : vector<49x32xbf16> to vector<1x49x32xbf16>
    tpu.vector_store %arg4[%c0_20, %c0_21, %c0_22], %24 {strides = array<i32>} : memref<1x49x32xbf16, #tpu.memory_space<vmem>>, vector<1x49x32xbf16>,
    return
  }
  func.func @transform_0(%arg0: i32) -> (i32, i32, i32, i32) {
    %c0_i32 = arith.constant 0 : i32
    %c0_i32_0 = arith.constant 0 : i32
    %c0_i32_1 = arith.constant 0 : i32
    %c0_i32_2 = arith.constant 0 : i32
    return %arg0, %c0_i32, %c0_i32_0, %c0_i32_1 : i32, i32, i32, i32
  }
  func.func @transform_1(%arg0: i32) -> (i32, i32) {
    %c0_i32 = arith.constant 0 : i32
    %c0_i32_0 = arith.constant 0 : i32
    %c0_i32_1 = arith.constant 0 : i32
    return %c0_i32, %c0_i32_0 : i32, i32
  }
  func.func @transform_2(%arg0: i32) -> (i32, i32) {
    %c0_i32 = arith.constant 0 : i32
    %c0_i32_0 = arith.constant 0 : i32
    %c0_i32_1 = arith.constant 0 : i32
    return %c0_i32, %c0_i32_0 : i32, i32
  }
  func.func @transform_3(%arg0: i32) -> (i32, i32, i32) {
    %c0_i32 = arith.constant 0 : i32
    %c0_i32_0 = arith.constant 0 : i32
    %c0_i32_1 = arith.constant 0 : i32
    return %arg0, %c0_i32, %c0_i32_0 : i32, i32, i32
  }
}

module attributes {stable_mosaic.version = 11 : i64} {
  func.func @mlp_kernel(%arg0: i32, %arg1: memref<2x1568xbf16, #tpu.memory_space<vmem>>, %arg2: memref<1568x640xbf16, #tpu.memory_space<vmem>>, %arg3: memref<1x640xf32, #tpu.memory_space<vmem>>, %arg4: memref<640x128xbf16, #tpu.memory_space<vmem>>, %arg5: memref<1x128xf32, #tpu.memory_space<vmem>>, %arg6: memref<2x128xf32, #tpu.memory_space<vmem>>) attributes {dimension_semantics = [#tpu.dimension_semantics<parallel>], iteration_bounds = array<i64: 1>, scalar_prefetch = 0 : i64, scratch_operands = 0 : i64, tpu.core_type = #tpu.core_type<tc>, window_params = [{transform_indices = @transform_0, window_bounds = array<i64: 2, 1568>}, {pipeline_mode = #tpu.pipeline_mode<synchronous>, transform_indices = @transform_1, window_bounds = array<i64: 1568, 640>}, {pipeline_mode = #tpu.pipeline_mode<synchronous>, transform_indices = @transform_2, window_bounds = array<i64: 1, 640>}, {pipeline_mode = #tpu.pipeline_mode<synchronous>, transform_indices = @transform_3, window_bounds = array<i64: 640, 128>}, {pipeline_mode = #tpu.pipeline_mode<synchronous>, transform_indices = @transform_4, window_bounds = array<i64: 1, 128>}, {transform_indices = @transform_5, window_bounds = array<i64: 2, 128>}]} {
    %c0 = arith.constant 0 : index
    %c0_0 = arith.constant 0 : index
    %0 = vector.load %arg1[%c0, %c0_0] : memref<2x1568xbf16, #tpu.memory_space<vmem>>, vector<2x1568xbf16>
    %c0_1 = arith.constant 0 : index
    %c0_2 = arith.constant 0 : index
    %1 = vector.load %arg2[%c0_1, %c0_2] : memref<1568x640xbf16, #tpu.memory_space<vmem>>, vector<1568x640xbf16>
    %cst = arith.constant dense<0.000000e+00> : vector<2x640xf32>
    %2 = tpu.matmul %0, %1, %cst {dimension_numbers = #tpu.dot_dimension_numbers<[1], [0], [0], [1], [0, 0, 1, 1], [], []>} : vector<2x1568xbf16>, vector<1568x640xbf16>, vector<2x640xf32> -> vector<2x640xf32>
    %c0_3 = arith.constant 0 : index
    %c0_4 = arith.constant 0 : index
    %3 = vector.load %arg3[%c0_3, %c0_4] : memref<1x640xf32, #tpu.memory_space<vmem>>, vector<1x640xf32>
    %4 = vector.broadcast %3 : vector<1x640xf32> to vector<2x640xf32>
    %5 = arith.addf %2, %4 : vector<2x640xf32>
    %cst_5 = arith.constant 0.000000e+00 : f32
    %6 = vector.broadcast %cst_5 : f32 to vector<2x640xf32>
    %7 = arith.maximumf %5, %6 : vector<2x640xf32>
    %8 = arith.truncf %7 : vector<2x640xf32> to vector<2x640xbf16>
    %c0_6 = arith.constant 0 : index
    %c0_7 = arith.constant 0 : index
    %9 = vector.load %arg4[%c0_6, %c0_7] : memref<640x128xbf16, #tpu.memory_space<vmem>>, vector<640x128xbf16>
    %cst_8 = arith.constant dense<0.000000e+00> : vector<2x128xf32>
    %10 = tpu.matmul %8, %9, %cst_8 {dimension_numbers = #tpu.dot_dimension_numbers<[1], [0], [0], [1], [0, 0, 1, 1], [], []>} : vector<2x640xbf16>, vector<640x128xbf16>, vector<2x128xf32> -> vector<2x128xf32>
    %c0_9 = arith.constant 0 : index
    %c0_10 = arith.constant 0 : index
    %11 = vector.load %arg5[%c0_9, %c0_10] : memref<1x128xf32, #tpu.memory_space<vmem>>, vector<1x128xf32>
    %12 = vector.broadcast %11 : vector<1x128xf32> to vector<2x128xf32>
    %13 = arith.addf %10, %12 : vector<2x128xf32>
    %c0_11 = arith.constant 0 : index
    %c0_12 = arith.constant 0 : index
    %14 = vector.load %arg6[%c0_11, %c0_12] : memref<2x128xf32, #tpu.memory_space<vmem>>, vector<2x128xf32>
    tpu.vector_store %arg6[%c0_11, %c0_12], %13 {strides = array<i32>} : memref<2x128xf32, #tpu.memory_space<vmem>>, vector<2x128xf32>,
    return
  }
  func.func @transform_0(%arg0: i32) -> (i32, i32) {
    %c0_i32 = arith.constant 0 : i32
    %c0_i32_0 = arith.constant 0 : i32
    return %arg0, %c0_i32 : i32, i32
  }
  func.func @transform_1(%arg0: i32) -> (i32, i32) {
    %c0_i32 = arith.constant 0 : i32
    %c0_i32_0 = arith.constant 0 : i32
    %c0_i32_1 = arith.constant 0 : i32
    return %c0_i32, %c0_i32_0 : i32, i32
  }
  func.func @transform_2(%arg0: i32) -> (i32, i32) {
    %c0_i32 = arith.constant 0 : i32
    %c0_i32_0 = arith.constant 0 : i32
    %c0_i32_1 = arith.constant 0 : i32
    return %c0_i32, %c0_i32_0 : i32, i32
  }
  func.func @transform_3(%arg0: i32) -> (i32, i32) {
    %c0_i32 = arith.constant 0 : i32
    %c0_i32_0 = arith.constant 0 : i32
    %c0_i32_1 = arith.constant 0 : i32
    return %c0_i32, %c0_i32_0 : i32, i32
  }
  func.func @transform_4(%arg0: i32) -> (i32, i32) {
    %c0_i32 = arith.constant 0 : i32
    %c0_i32_0 = arith.constant 0 : i32
    %c0_i32_1 = arith.constant 0 : i32
    return %c0_i32, %c0_i32_0 : i32, i32
  }
  func.func @transform_5(%arg0: i32) -> (i32, i32) {
    %c0_i32 = arith.constant 0 : i32
    %c0_i32_0 = arith.constant 0 : i32
    return %arg0, %c0_i32 : i32, i32
  }
}

</mosaic_0001>

<bundles_post_ra>
// kernel: cnn_forward.3
= control target key start
LH: loop header
LB: loop body
LE: loop exit
PB: predicated region body
PF: predicated region fallthrough
CT: control target
= control target key end

     0   :  { %s2166_s12 = smov 0   ;;  %s2710_s0 = inlined_call_operand.vmem [shape: bf16[2,4,196,9], index: 0, kind: input, shape index: {}]   ;;  %s2711_s1 = inlined_call_operand.vmem [shape: bf16[9,8], index: 1, kind: input, shape index: {}]   ;;  %s2712_s2 = inlined_call_operand.vmem [shape: f32[1,8], index: 2, kind: input, shape index: {}]   ;;  %s2713_s3 = inlined_call_operand.vmem [shape: bf16[2,196,8], index: 3, kind: output, shape index: {}]  }
   0x1 LB: > { %s1557_s13 = sadd.s32 4294967295, %s2141_s12   ;;  %p1561_p0 = scmp.ge.s32.totalorder %s2141_s12, 1  ;;  %s2141_s12 = sphi %s2166_s12, %s13_s12  }
   0x2   : > { %p137_p1 = scmp.lt.s32.totalorder %s2141_s12, 3 }
   0x4   : > { %p138_p2 = pnand %p1561_p0, %p137_p1 }
   0x5   : > { %vm307_vm0 = vcmask (!%p138_p2), 1043456   ;;  %v2143_v0 = vmov (!%p138_p2), 0.0   ;;  %v2082_v1 = vld [vmem:[%s2711_s1] sm:$0x1f] (!%p138_p2)   ;;  %vm308_vm1 = vcmask (!%p138_p2), 1044480   ;;  %p161_p3 = scmp.lt.s32.totalorder (!%p138_p2), %s1557_s13, 1 }
   0x6   : > { %141 = sbr.rel (%p138_p2) target bundleno = 441 (0x1b9), region = 32  ;;  %1853 = vmatprep.subr.bf16.mxu0 (!%p138_p2), %v2143_v0  ;;  %1907 = vmatprep.subr.bf16.mxu1 (!%p138_p2), %v2143_v0  ;;  %v2144_v2 = vmov (!%p138_p2), 65535   ;;  %vm2145_vm2 = vmmov (!%p138_p2), 0   ;;  %vm267_vm3 = vcmask (!%p138_p2), 72704   ;;  %vm1475_vm4 = vcmask (!%p138_p2), 60416  }
   0x7   : > { %v309_v3 = vsel (!%p138_p2), %vm307_vm0, 4294967295, %v2144_v2  ;;  %1855 = vmatprep.mubr.msk.bf16.mxu0 (!%p138_p2), %vm2145_vm2, %v2143_v0  ;;  %1909 = vmatprep.mubr.msk.bf16.mxu1 (!%p138_p2), %vm2145_vm2, %v2143_v0  ;;  %vm1500_vm5 = vcmask (!%p138_p2), 58368  }
   0x8   : > { %v310_v4 = vsel (!%p138_p2), %vm308_vm1, %v309_v3, 0 }
   0x9   : > { %v312_v5 = vand.u32 (!%p138_p2), %v2082_v1, %v310_v4 }
   0xb   : > { %1854 = vmatpush3.bf16.msra.mxu0 (!%p138_p2), %v312_v5  ;;  %1908 = vmatpush3.bf16.msra.mxu1 (!%p138_p2), %v312_v5 }
   0xc   : > { %1961 = vmatprep.subr.bf16.mxu0 (!%p138_p2), %v2143_v0  ;;  %2015 = vmatprep.subr.bf16.mxu1 (!%p138_p2), %v2143_v0 }
   0xd   : > { %s2738_s13 = smov (!%p161_p3, %s1557_s13), 1 }
   0xe   : > { %s2069_s16 = smul.u32 400, %s2738_s13 }
   0xf   : > { %s2070_s22 = smul.u32 100, %s2738_s13 }
  0x10   : > { %s2190_s19 = scalar_lea.vmem %s2710_s0, %s2069_s16 }
  0x11   : > { %v2083_v6 = vld [vmem:[%s2190_s19] sm:$0xff]   ;;  %v2085_v8 = vld [vmem:[%s2190_s19 + $0x8] sm:$0xff]   ;;  %v2087_v10 = vld [vmem:[%s2190_s19 + $0x10] sm:$0xff]   ;;  %s2564_s25 = scalar_lea.vmem %s2713_s3, %s2070_s22 }
  0x12   : > { %v2084_v7 = vld [vmem:[%s2190_s19 + $0x64] sm:$0xff]   ;;  %1856 = vmatmul.mubr.msk.bf16.vlgmr.msra.gmra.mrb[0].mxu0 %vm267_vm3, %v2083_v6  ;;  %v2086_v9 = vld [vmem:[%s2190_s19 + $0x6c] sm:$0xff]   ;;  %v2088_v11 = vld [vmem:[%s2190_s19 + $0x74] sm:$0xff]  }
  0x13   : > { %1910 = vmatmul.mubr.msk.bf16.vlgmr.msra.gmra.mrb[0].mxu1 %vm267_vm3, %v2084_v7  ;;  %1962 = vmatpush3.bf16.msra.mxu0 %v312_v5  ;;  %v2089_v12 = vld [vmem:[%s2190_s19 + $0x18] sm:$0xff]   ;;  %v2091_v14 = vld [vmem:[%s2190_s19 + $0x20] sm:$0xff]   ;;  %v2093_v16 = vld [vmem:[%s2190_s19 + $0x28] sm:$0xff]  }
  0x14   : > { %2016 = vmatpush3.bf16.msra.mxu1 %v312_v5  ;;  %1859 = vmatprep.mubr.msk.bf16.mxu0 %vm2145_vm2, %v2143_v0  ;;  %v2090_v13 = vld [vmem:[%s2190_s19 + $0x7c] sm:$0xff]   ;;  %v2092_v15 = vld [vmem:[%s2190_s19 + $0x84] sm:$0xff]   ;;  %v2094_v17 = vld [vmem:[%s2190_s19 + $0x8c] sm:$0xff]  }
  0x15   : > { %1913 = vmatprep.mubr.msk.bf16.mxu1 %vm2145_vm2, %v2143_v0  ;;  %v2095_v18 = vld [vmem:[%s2190_s19 + $0x30] sm:$0xff]   ;;  %v2097_v20 = vld [vmem:[%s2190_s19 + $0x38] sm:$0xff]   ;;  %v2099_v22 = vld [vmem:[%s2190_s19 + $0x40] sm:$0xff]  }
  0x16   : > { %v2096_v19 = vld [vmem:[%s2190_s19 + $0x94] sm:$0xff]   ;;  %v2098_v21 = vld [vmem:[%s2190_s19 + $0x9c] sm:$0xff]   ;;  %v2100_v23 = vld [vmem:[%s2190_s19 + $0xa4] sm:$0xff]  }
  0x17   : > { %v2101_v24 = vld [vmem:[%s2190_s19 + $0x48] sm:$0xff]   ;;  %v2103_v26 = vld [vmem:[%s2190_s19 + $0x50] sm:$0xff]   ;;  %v2105_v28 = vld [vmem:[%s2190_s19 + $0x58] sm:$0xff]  }
  0x18   : > { %v2102_v25 = vld [vmem:[%s2190_s19 + $0xac] sm:$0xff]   ;;  %v2104_v27 = vld [vmem:[%s2190_s19 + $0xb4] sm:$0xff]   ;;  %v2106_v29 = vld [vmem:[%s2190_s19 + $0xbc] sm:$0xff]  }
  0x19   : > { %v2107_v30 = vld [vmem:[%s2190_s19 + $0x60] ss:$0 sps:$4 sm:$0x33]   ;;  %v2108_v31 = vld [vmem:[%s2190_s19 + $0xc4] ss:$0 sps:$4 sm:$0x33]  }
  0x1a   : > { %1860 = vmatmul.mubr.msk.bf16.gmra.mrb[4].mxu0 %vm267_vm3, %v2085_v8  ;;  %v2109_v32 = vld [vmem:[%s2190_s19 + $0xc8] sm:$0xff]   ;;  %v2111_v34 = vld [vmem:[%s2190_s19 + $0xd0] sm:$0xff]   ;;  %v2113_v36 = vld [vmem:[%s2190_s19 + $0xd8] sm:$0xff]  }
  0x1b   : > { %1914 = vmatmul.mubr.msk.bf16.gmra.mrb[4].mxu1 %vm267_vm3, %v2086_v9  ;;  %1863 = vmatprep.mubr.msk.bf16.mxu0 %vm2145_vm2, %v2143_v0  ;;  %v2110_v33 = vld [vmem:[%s2190_s19 + $0x12c] sm:$0xff]   ;;  %v2112_v35 = vld [vmem:[%s2190_s19 + $0x134] sm:$0xff]   ;;  %v2114_v37 = vld [vmem:[%s2190_s19 + $0x13c] sm:$0xff]  }
  0x1c   : > { %1917 = vmatprep.mubr.msk.bf16.mxu1 %vm2145_vm2, %v2143_v0  ;;  %v2115_v38 = vld [vmem:[%s2190_s19 + $0xe0] sm:$0xff]   ;;  %v2117_v40 = vld [vmem:[%s2190_s19 + $0xe8] sm:$0xff]   ;;  %v2119_v42 = vld [vmem:[%s2190_s19 + $0xf0] sm:$0xff]  }
  0x1d   : > { %v2116_v39 = vld [vmem:[%s2190_s19 + $0x144] sm:$0xff]   ;;  %v2118_v41 = vld [vmem:[%s2190_s19 + $0x14c] sm:$0xff]   ;;  %v2120_v43 = vld [vmem:[%s2190_s19 + $0x154] sm:$0xff]  }
  0x1e   : > { %v2121_v44 = vld [vmem:[%s2190_s19 + $0xf8] sm:$0xff]   ;;  %v2123_v46 = vld [vmem:[%s2190_s19 + $0x100] sm:$0xff]   ;;  %v2125_v48 = vld [vmem:[%s2190_s19 + $0x108] sm:$0xff]  }
  0x1f   : > { %v2122_v45 = vld [vmem:[%s2190_s19 + $0x15c] sm:$0xff]   ;;  %v2124_v47 = vld [vmem:[%s2190_s19 + $0x164] sm:$0xff]   ;;  %v2126_v49 = vld [vmem:[%s2190_s19 + $0x16c] sm:$0xff]  }
  0x20   : > { %v2127_v50 = vld [vmem:[%s2190_s19 + $0x110] sm:$0xff]   ;;  %v2129_v52 = vld [vmem:[%s2190_s19 + $0x118] sm:$0xff]   ;;  %v2131_v54 = vld [vmem:[%s2190_s19 + $0x120] sm:$0xff]  }
  0x21   : > { %v2128_v51 = vld [vmem:[%s2190_s19 + $0x174] sm:$0xff]   ;;  %v2130_v53 = vld [vmem:[%s2190_s19 + $0x17c] sm:$0xff]   ;;  %v2132_v55 = vld [vmem:[%s2190_s19 + $0x184] sm:$0xff]  }
  0x22   : > { %1864 = vmatmul.mubr.msk.bf16.gmra.mrb[8].mxu0 %vm267_vm3, %v2087_v10  ;;  %v2133_v56 = vld [vmem:[%s2190_s19 + $0x128] ss:$0 sps:$4 sm:$0x33]   ;;  %v2134_v57 = vld [vmem:[%s2190_s19 + $0x18c] ss:$0 sps:$4 sm:$0x33]  }
  0x23   : > { %1918 = vmatmul.mubr.msk.bf16.gmra.mrb[8].mxu1 %vm267_vm3, %v2088_v11  ;;  %1867 = vmatprep.mubr.msk.bf16.mxu0 %vm2145_vm2, %v2143_v0 }
  0x24   : > { %1921 = vmatprep.mubr.msk.bf16.mxu1 %vm2145_vm2, %v2143_v0 }
  0x2a   : > { %1868 = vmatmul.mubr.msk.bf16.gmra.mrb[12].mxu0 %vm267_vm3, %v2089_v12 }
  0x2b   : > { %1922 = vmatmul.mubr.msk.bf16.gmra.mrb[12].mxu1 %vm267_vm3, %v2090_v13  ;;  %1871 = vmatprep.mubr.msk.bf16.mxu0 %vm2145_vm2, %v2143_v0 }
  0x2c   : > { %1925 = vmatprep.mubr.msk.bf16.mxu1 %vm2145_vm2, %v2143_v0 }
  0x32   : > { %1872 = vmatmul.mubr.msk.bf16.gmra.mrb[16].mxu0 %vm267_vm3, %v2091_v14 }
  0x33   : > { %1926 = vmatmul.mubr.msk.bf16.gmra.mrb[16].mxu1 %vm267_vm3, %v2092_v15  ;;  %1875 = vmatprep.mubr.msk.bf16.mxu0 %vm2145_vm2, %v2143_v0 }
  0x34   : > { %1929 = vmatprep.mubr.msk.bf16.mxu1 %vm2145_vm2, %v2143_v0 }
  0x3a   : > { %1876 = vmatmul.mubr.msk.bf16.gmra.mrb[20].mxu0 %vm267_vm3, %v2093_v16 }
  0x3b   : > { %1930 = vmatmul.mubr.msk.bf16.gmra.mrb[20].mxu1 %vm267_vm3, %v2094_v17  ;;  %1879 = vmatprep.mubr.msk.bf16.mxu0 %vm2145_vm2, %v2143_v0 }
  0x3c   : > { %1933 = vmatprep.mubr.msk.bf16.mxu1 %vm2145_vm2, %v2143_v0 }
  0x42   : > { %1880 = vmatmul.mubr.msk.bf16.gmra.mrb[24].mxu0 %vm267_vm3, %v2095_v18 }
  0x43   : > { %1934 = vmatmul.mubr.msk.bf16.gmra.mrb[24].mxu1 %vm267_vm3, %v2096_v19  ;;  %1883 = vmatprep.mubr.msk.bf16.mxu0 %vm2145_vm2, %v2143_v0 }
  0x44   : > { %1937 = vmatprep.mubr.msk.bf16.mxu1 %vm2145_vm2, %v2143_v0 }
  0x4a   : > { %1884 = vmatmul.mubr.msk.bf16.gmra.mrb[28].mxu0 %vm267_vm3, %v2097_v20 }
  0x4b   : > { %1938 = vmatmul.mubr.msk.bf16.gmra.mrb[28].mxu1 %vm267_vm3, %v2098_v21  ;;  %1887 = vmatprep.mubr.msk.bf16.mxu0 %vm2145_vm2, %v2143_v0 }
  0x4c   : > { %1941 = vmatprep.mubr.msk.bf16.mxu1 %vm2145_vm2, %v2143_v0 }
  0x52   : > { %1888 = vmatmul.mubr.msk.bf16.gmra.mrb[32].mxu0 %vm267_vm3, %v2099_v22 }
  0x53   : > { %1942 = vmatmul.mubr.msk.bf16.gmra.mrb[32].mxu1 %vm267_vm3, %v2100_v23  ;;  %1891 = vmatprep.mubr.msk.bf16.mxu0 %vm2145_vm2, %v2143_v0 }
  0x54   : > { %1945 = vmatprep.mubr.msk.bf16.mxu1 %vm2145_vm2, %v2143_v0 }
  0x5a   : > { %1892 = vmatmul.mubr.msk.bf16.gmra.mrb[36].mxu0 %vm267_vm3, %v2101_v24 }
  0x5b   : > { %1946 = vmatmul.mubr.msk.bf16.gmra.mrb[36].mxu1 %vm267_vm3, %v2102_v25  ;;  %1895 = vmatprep.mubr.msk.bf16.mxu0 %vm2145_vm2, %v2143_v0 }
  0x5c   : > { %1949 = vmatprep.mubr.msk.bf16.mxu1 %vm2145_vm2, %v2143_v0 }
  0x62   : > { %1896 = vmatmul.mubr.msk.bf16.gmra.mrb[40].mxu0 %vm267_vm3, %v2103_v26 }
  0x63   : > { %1950 = vmatmul.mubr.msk.bf16.gmra.mrb[40].mxu1 %vm267_vm3, %v2104_v27  ;;  %1899 = vmatprep.mubr.msk.bf16.mxu0 %vm2145_vm2, %v2143_v0 }
  0x64   : > { %1953 = vmatprep.mubr.msk.bf16.mxu1 %vm2145_vm2, %v2143_v0 }
  0x6a   : > { %1900 = vmatmul.mubr.msk.bf16.gmra.mrb[44].mxu0 %vm267_vm3, %v2105_v28 }
  0x6b   : > { %1954 = vmatmul.mubr.msk.bf16.gmra.mrb[44].mxu1 %vm267_vm3, %v2106_v29  ;;  %1903 = vmatprep.mubr.msk.bf16.mxu0 %vm2145_vm2, %v2143_v0 }
  0x6c   : > { %1957 = vmatprep.mubr.msk.bf16.mxu1 %vm2145_vm2, %v2143_v0 }
  0x72   : > { %1904 = vmatmul.mubr.msk.bf16.gmra.mrb[48].mxu0 %vm267_vm3, %v2107_v30 }
  0x73   : > { %1958 = vmatmul.mubr.msk.bf16.gmra.mrb[48].mxu1 %vm267_vm3, %v2108_v31  ;;  %1963 = vmatprep.mubr.msk.bf16.mxu0 %vm2145_vm2, %v2143_v0 }
  0x74   : > { %2017 = vmatprep.mubr.msk.bf16.mxu1 %vm2145_vm2, %v2143_v0 }
  0x7a   : > { %1964 = vmatmul.mubr.msk.bf16.vlgmr.msra.gmra.mrb[52].mxu0 %vm267_vm3, %v2109_v32 }
  0x7b   : > { %2018 = vmatmul.mubr.msk.bf16.vlgmr.msra.gmra.mrb[52].mxu1 %vm267_vm3, %v2110_v33  ;;  %1967 = vmatprep.mubr.msk.bf16.mxu0 %vm2145_vm2, %v2143_v0 }
  0x7c   : > { %2021 = vmatprep.mubr.msk.bf16.mxu1 %vm2145_vm2, %v2143_v0 }
  0x82   : > { %1968 = vmatmul.mubr.msk.bf16.gmra.mrb[56].mxu0 %vm267_vm3, %v2111_v34 }
  0x83   : > { %2022 = vmatmul.mubr.msk.bf16.gmra.mrb[56].mxu1 %vm267_vm3, %v2112_v35  ;;  %1971 = vmatprep.mubr.msk.bf16.mxu0 %vm2145_vm2, %v2143_v0 }
  0x84   : > { %2025 = vmatprep.mubr.msk.bf16.mxu1 %vm2145_vm2, %v2143_v0 }
  0x8a   : > { %1972 = vmatmul.mubr.msk.bf16.gmra.mrb[60].mxu0 %vm267_vm3, %v2113_v36 }
  0x8b   : > { %2026 = vmatmul.mubr.msk.bf16.gmra.mrb[60].mxu1 %vm267_vm3, %v2114_v37  ;;  %1975 = vmatprep.mubr.msk.bf16.mxu0 %vm2145_vm2, %v2143_v0 }
  0x8c   : > { %2029 = vmatprep.mubr.msk.bf16.mxu1 %vm2145_vm2, %v2143_v0 }
  0x92   : > { %1976 = vmatmul.mubr.msk.bf16.gmra.mrb[64].mxu0 %vm267_vm3, %v2115_v38 }
  0x93   : > { %2030 = vmatmul.mubr.msk.bf16.gmra.mrb[64].mxu1 %vm267_vm3, %v2116_v39  ;;  %1979 = vmatprep.mubr.msk.bf16.mxu0 %vm2145_vm2, %v2143_v0 }
  0x94   : > { %2033 = vmatprep.mubr.msk.bf16.mxu1 %vm2145_vm2, %v2143_v0 }
  0x9a   : > { %1980 = vmatmul.mubr.msk.bf16.gmra.mrb[68].mxu0 %vm267_vm3, %v2117_v40 }
  0x9b   : > { %2034 = vmatmul.mubr.msk.bf16.gmra.mrb[68].mxu1 %vm267_vm3, %v2118_v41  ;;  %1983 = vmatprep.mubr.msk.bf16.mxu0 %vm2145_vm2, %v2143_v0 }
  0x9c   : > { %2037 = vmatprep.mubr.msk.bf16.mxu1 %vm2145_vm2, %v2143_v0 }
  0xa2   : > { %1984 = vmatmul.mubr.msk.bf16.gmra.mrb[72].mxu0 %vm267_vm3, %v2119_v42 }
  0xa3   : > { %2038 = vmatmul.mubr.msk.bf16.gmra.mrb[72].mxu1 %vm267_vm3, %v2120_v43  ;;  %1987 = vmatprep.mubr.msk.bf16.mxu0 %vm2145_vm2, %v2143_v0 }
  0xa4   : > { %2041 = vmatprep.mubr.msk.bf16.mxu1 %vm2145_vm2, %v2143_v0 }
  0xaa   : > { %1988 = vmatmul.mubr.msk.bf16.gmra.mrb[76].mxu0 %vm267_vm3, %v2121_v44 }
  0xab   : > { %2042 = vmatmul.mubr.msk.bf16.gmra.mrb[76].mxu1 %vm267_vm3, %v2122_v45  ;;  %1991 = vmatprep.mubr.msk.bf16.mxu0 %vm2145_vm2, %v2143_v0 }
  0xac   : > { %2045 = vmatprep.mubr.msk.bf16.mxu1 %vm2145_vm2, %v2143_v0 }
  0xb2   : > { %1992 = vmatmul.mubr.msk.bf16.gmra.mrb[80].mxu0 %vm267_vm3, %v2123_v46 }
  0xb3   : > { %2046 = vmatmul.mubr.msk.bf16.gmra.mrb[80].mxu1 %vm267_vm3, %v2124_v47  ;;  %1995 = vmatprep.mubr.msk.bf16.mxu0 %vm2145_vm2, %v2143_v0 }
  0xb4   : > { %2049 = vmatprep.mubr.msk.bf16.mxu1 %vm2145_vm2, %v2143_v0 }
  0xba   : > { %1996 = vmatmul.mubr.msk.bf16.gmra.mrb[84].mxu0 %vm267_vm3, %v2125_v48 }
  0xbb   : > { %2050 = vmatmul.mubr.msk.bf16.gmra.mrb[84].mxu1 %vm267_vm3, %v2126_v49  ;;  %1999 = vmatprep.mubr.msk.bf16.mxu0 %vm2145_vm2, %v2143_v0 }
  0xbc   : > { %2053 = vmatprep.mubr.msk.bf16.mxu1 %vm2145_vm2, %v2143_v0 }
  0xc2   : > { %2000 = vmatmul.mubr.msk.bf16.gmra.mrb[88].mxu0 %vm267_vm3, %v2127_v50 }
  0xc3   : > { %2054 = vmatmul.mubr.msk.bf16.gmra.mrb[88].mxu1 %vm267_vm3, %v2128_v51  ;;  %2003 = vmatprep.mubr.msk.bf16.mxu0 %vm2145_vm2, %v2143_v0 }
  0xc4   : > { %2057 = vmatprep.mubr.msk.bf16.mxu1 %vm2145_vm2, %v2143_v0 }
  0xca   : > { %2004 = vmatmul.mubr.msk.bf16.gmra.mrb[92].mxu0 %vm267_vm3, %v2129_v52 }
  0xcb   : > { %2058 = vmatmul.mubr.msk.bf16.gmra.mrb[92].mxu1 %vm267_vm3, %v2130_v53  ;;  %2007 = vmatprep.mubr.msk.bf16.mxu0 %vm2145_vm2, %v2143_v0 }
  0xcc   : > { %2061 = vmatprep.mubr.msk.bf16.mxu1 %vm2145_vm2, %v2143_v0 }
  0xd2   : > { %2008 = vmatmul.mubr.msk.bf16.gmra.mrb[96].mxu0 %vm267_vm3, %v2131_v54 }
  0xd3   : > { %2062 = vmatmul.mubr.msk.bf16.gmra.mrb[96].mxu1 %vm267_vm3, %v2132_v55  ;;  %2011 = vmatprep.mubr.msk.bf16.mxu0 %vm2145_vm2, %v2143_v0 }
  0xd4   : > { %2065 = vmatprep.mubr.msk.bf16.mxu1 %vm2145_vm2, %v2143_v0 }
  0xda   : > { %2012 = vmatmul.mubr.msk.bf16.gmra.mrb[100].mxu0 %vm267_vm3, %v2133_v56 }
  0xdb   : > { %2066 = vmatmul.mubr.msk.bf16.gmra.mrb[100].mxu1 %vm267_vm3, %v2134_v57 }
  0xe5   : > { %v2397_v58 = vpop.f32.mrb[0].mxu0 }
  0xe6   : > { %v2399_v59 = vpop.f32.mrb[0].mxu1  ;;  %v1857_v60 = vpop.f32.mrb[1].mxu0 }
  0xe7   : > { %v714_v61 = vmax.f32 %v2397_v58, %v2399_v59  ;;  %v1911_v62 = vpop.f32.mrb[1].mxu1  ;;  %v2403_v63 = vpop.f32.mrb[2].mxu0 }
  0xe8   : > { %v2405_v1 = vpop.f32.mrb[2].mxu1  ;;  %v1858_v0 = vpop.f32.mrb[3].mxu0 }
  0xe9   : > { %v715_v2 = vmax.f32 %v2403_v63, %v2405_v1  ;;  %v1912_v3 = vpop.f32.mrb[3].mxu1 }
  0xed   : > { %v2409_v4 = vpop.f32.mrb[4].mxu0 }
  0xee   : > { %v2411_v5 = vpop.f32.mrb[4].mxu1  ;;  %v1861_v6 = vpop.f32.mrb[5].mxu0 }
  0xef   : > { %v1915_v8 = vpop.f32.mrb[5].mxu1  ;;  %v2415_v9 = vpop.f32.mrb[6].mxu0 }
  0xf0   : > { %v2417_v10 = vpop.f32.mrb[6].mxu1  ;;  %v1862_v11 = vpop.f32.mrb[7].mxu0 }
  0xf1   : > { %v1916_v13 = vpop.f32.mrb[7].mxu1 }
  0xf5   : > { %v2421_v14 = vpop.f32.mrb[8].mxu0 }
  0xf6   : > { %v2423_v15 = vpop.f32.mrb[8].mxu1  ;;  %v1865_v16 = vpop.f32.mrb[9].mxu0 }
  0xf7   : > { %v1919_v18 = vpop.f32.mrb[9].mxu1  ;;  %v2427_v19 = vpop.f32.mrb[10].mxu0 }
  0xf8   : > { %v2429_v20 = vpop.f32.mrb[10].mxu1  ;;  %v1866_v21 = vpop.f32.mrb[11].mxu0 }
  0xf9   : > { %v1920_v23 = vpop.f32.mrb[11].mxu1 }
  0xfd   : > { %v2433_v24 = vpop.f32.mrb[12].mxu0 }
  0xfe   : > { %v2435_v25 = vpop.f32.mrb[12].mxu1  ;;  %v1869_v26 = vpop.f32.mrb[13].mxu0 }
  0xff   : > { %v1923_v28 = vpop.f32.mrb[13].mxu1  ;;  %v2439_v29 = vpop.f32.mrb[14].mxu0 }
 0x100   : > { %v2441_v30 = vpop.f32.mrb[14].mxu1  ;;  %v1870_v31 = vpop.f32.mrb[15].mxu0 }
 0x101   : > { %v1924_v33 = vpop.f32.mrb[15].mxu1 }
 0x105   : > { %v2445_v34 = vpop.f32.mrb[16].mxu0 }
 0x106   : > { %v2447_v35 = vpop.f32.mrb[16].mxu1  ;;  %v1873_v36 = vpop.f32.mrb[17].mxu0 }
 0x107   : > { %v1927_v38 = vpop.f32.mrb[17].mxu1  ;;  %v2451_v39 = vpop.f32.mrb[18].mxu0 }
 0x108   : > { %v2453_v40 = vpop.f32.mrb[18].mxu1  ;;  %v1874_v41 = vpop.f32.mrb[19].mxu0 }
 0x109   : > { %v1928_v43 = vpop.f32.mrb[19].mxu1 }
 0x10d   : > { %v2457_v44 = vpop.f32.mrb[20].mxu0 }
 0x10e   : > { %v2459_v45 = vpop.f32.mrb[20].mxu1  ;;  %v1877_v46 = vpop.f32.mrb[21].mxu0 }
 0x10f   : > { %v1931_v48 = vpop.f32.mrb[21].mxu1  ;;  %v2463_v49 = vpop.f32.mrb[22].mxu0 }
 0x110   : > { %v2465_v50 = vpop.f32.mrb[22].mxu1  ;;  %v1878_v51 = vpop.f32.mrb[23].mxu0 }
 0x111   : > { %v1932_v53 = vpop.f32.mrb[23].mxu1 }
 0x115   : > { %v2469_v54 = vpop.f32.mrb[24].mxu0 }
 0x116   : > { %v2471_v55 = vpop.f32.mrb[24].mxu1  ;;  %v1881_v56 = vpop.f32.mrb[25].mxu0 }
 0x117   : > { %v1935_v60 = vpop.f32.mrb[25].mxu1  ;;  %v2475_v62 = vpop.f32.mrb[26].mxu0 }
 0x118   : > { %v2477_v0 = vpop.f32.mrb[26].mxu1  ;;  %v1882_v3 = vpop.f32.mrb[27].mxu0 }
 0x119   : > { %v1936_v8 = vpop.f32.mrb[27].mxu1 }
 0x11d   : > { %v2481_v11 = vpop.f32.mrb[28].mxu0 }
 0x11e   : > { %v2483_v13 = vpop.f32.mrb[28].mxu1  ;;  %v1885_v16 = vpop.f32.mrb[29].mxu0 }
 0x11f   : > { %v1939_v21 = vpop.f32.mrb[29].mxu1  ;;  %v2487_v23 = vpop.f32.mrb[30].mxu0 }
 0x120   : > { %v2489_v26 = vpop.f32.mrb[30].mxu1  ;;  %v1886_v28 = vpop.f32.mrb[31].mxu0 }
 0x121   : > { %v1940_v33 = vpop.f32.mrb[31].mxu1 }
 0x125   : > { %v2493_v36 = vpop.f32.mrb[32].mxu0 }
 0x126   : > { %v2495_v38 = vpop.f32.mrb[32].mxu1  ;;  %v1889_v41 = vpop.f32.mrb[33].mxu0 }
 0x127   : > { %v1943_v46 = vpop.f32.mrb[33].mxu1  ;;  %v2499_v48 = vpop.f32.mrb[34].mxu0 }
 0x128   : > { %v2501_v51 = vpop.f32.mrb[34].mxu1  ;;  %v1890_v53 = vpop.f32.mrb[35].mxu0 }
 0x129   : > { %v1944_v60 = vpop.f32.mrb[35].mxu1 }
 0x12d   : > { %v2505_v3 = vpop.f32.mrb[36].mxu0 }
 0x12e   : > { %v2507_v8 = vpop.f32.mrb[36].mxu1  ;;  %v1893_v16 = vpop.f32.mrb[37].mxu0 }
 0x12f   : > { %v1947_v28 = vpop.f32.mrb[37].mxu1  ;;  %v2511_v33 = vpop.f32.mrb[38].mxu0 }
 0x130   : > { %v2513_v41 = vpop.f32.mrb[38].mxu1  ;;  %v1894_v46 = vpop.f32.mrb[39].mxu0 }
 0x131   : > { %v1948_v43 = vpop.f32.mrb[39].mxu1 }
 0x135   : > { %v2517_v56 = vpop.f32.mrb[40].mxu0 }
 0x136   : > { %v2519_v60 = vpop.f32.mrb[40].mxu1  ;;  %v1897_v31 = vpop.f32.mrb[41].mxu0 }
 0x137   : > { %v1951_v18 = vpop.f32.mrb[41].mxu1  ;;  %v2523_v21 = vpop.f32.mrb[42].mxu0 }
 0x138   : > { %v2525_v28 = vpop.f32.mrb[42].mxu1  ;;  %v1898_v6 = vpop.f32.mrb[43].mxu0 }
 0x139   : > { %v1952_v57 = vpop.f32.mrb[43].mxu1 }
 0x13d   : > { %v2529_v53 = vpop.f32.mrb[44].mxu0 }
 0x13e   : > { %v2531_v43 = vpop.f32.mrb[44].mxu1  ;;  %v1901_v52 = vpop.f32.mrb[45].mxu0 }
 0x13f   : > { %v1955_v47 = vpop.f32.mrb[45].mxu1  ;;  %v2535_v16 = vpop.f32.mrb[46].mxu0 }
 0x140   : > { %v2537_v18 = vpop.f32.mrb[46].mxu1  ;;  %v1902_v42 = vpop.f32.mrb[47].mxu0 }
 0x141   : > { %v1956_v37 = vpop.f32.mrb[47].mxu1 }
 0x145   : > { %v2541_v46 = vpop.f32.mrb[48].mxu0 }
 0x146   : > { %v2543_v57 = vpop.f32.mrb[48].mxu1  ;;  %v1905_v32 = vpop.f32.mrb[49].mxu0 }
 0x147   : > { %v1959_v27 = vpop.f32.mrb[49].mxu1  ;;  %v447_v47 = vpop.f32.mrb[50].mxu0  ;;  %v2553_v32 = vld [vmem:[%s2712_s2] ss:$0 sm:$0xff] }
 0x148   : > { %v711_v31 = vpop.f32.mrb[50].mxu1  ;;  %v1906_v22 = vpop.f32.mrb[51].mxu0 }
 0x149   : > { %v1960_v17 = vpop.f32.mrb[51].mxu1 }
 0x14d   : > { %v901_v12 = vpop.f32.mrb[52].mxu0 }
 0x14e   : > { %v1003_v42 = vmax.f32 %v714_v61, %v901_v12  ;;  %v1190_v37 = vpop.f32.mrb[52].mxu1  ;;  %v1965_v6 = vpop.f32.mrb[53].mxu0 }
 0x14f   : > { %v2019_v7 = vpop.f32.mrb[53].mxu1  ;;  %v904_v52 = vpop.f32.mrb[54].mxu0 }
 0x150   : > { %v1292_v27 = vmax.f32 %v1003_v42, %v1190_v37  ;;  %v1004_v22 = vmax.f32 %v715_v2, %v904_v52  ;;  %v1193_v17 = vpop.f32.mrb[54].mxu1  ;;  %v1966_v31 = vpop.f32.mrb[55].mxu0  ;;  %v2714_v7 = vmax.f32 %v2409_v4, %v2411_v5 }
 0x151   : > { %v2020_v47 = vpop.f32.mrb[55].mxu1  ;;  %v2715_v31 = vmax.f32 %v2415_v9, %v2417_v10  ;;  %v2716_v9 = vmax.f32 %v2421_v14, %v2423_v15 }
 0x152   : > { %v1324_v58 = vadd.f32 %v2553_v32, %v1292_v27  ;;  %v1293_v59 = vmax.f32 %v1004_v22, %v1193_v17 }
 0x154   : > { %v1349_v61 = vmax.f32 %v1324_v58, 0.0  ;;  %v1325_v12 = vadd.f32 %v2553_v32, %v1293_v59 }
 0x155   : > { %v909_v63 = vpop.f32.mrb[56].mxu0 }
 0x156   : > { %v1772_v1 = vpack.c.bf16 %v1349_v61, %v1349_v61  ;;  %v1350_v2 = vmax.f32 %v1325_v12, 0.0  ;;  %v1005_v6 = vmax.f32 %v2714_v7, %v909_v63  ;;  %v1198_v52 = vpop.f32.mrb[56].mxu1  ;;  %v1969_v42 = vpop.f32.mrb[57].mxu0 }
 0x157   : > { %v2023_v37 = vpop.f32.mrb[57].mxu1  ;;  %v912_v27 = vpop.f32.mrb[58].mxu0 }
 0x158   : > { %1476 = vst.msk [vmem:[%s2564_s25] sm:$0xf] %vm1475_vm4, %v1772_v1  ;;  %v1773_v22 = vpack.c.bf16 %v1350_v2, %v1350_v2  ;;  %v1294_v17 = vmax.f32 %v1005_v6, %v1198_v52  ;;  %v1006_v47 = vmax.f32 %v2715_v31, %v912_v27  ;;  %v1201_v58 = vpop.f32.mrb[58].mxu1  ;;  %v1970_v59 = vpop.f32.mrb[59].mxu0 }
 0x159   : > { %v2024_v61 = vpop.f32.mrb[59].mxu1 }
 0x15a   : > { %1477 = vst.msk [vmem:[%s2564_s25 + $0x4] sm:$0xf] %vm1475_vm4, %v1773_v22  ;;  %v1326_v4 = vadd.f32 %v2553_v32, %v1294_v17  ;;  %v1295_v5 = vmax.f32 %v1006_v47, %v1201_v58  ;;  %v2717_v17 = vmax.f32 %v2427_v19, %v2429_v20  ;;  %v2718_v19 = vmax.f32 %v2433_v24, %v2435_v25 }
 0x15c   : > { %v1351_v12 = vmax.f32 %v1326_v4, 0.0  ;;  %v1327_v63 = vadd.f32 %v2553_v32, %v1295_v5 }
 0x15d   : > { %v917_v1 = vpop.f32.mrb[60].mxu0 }
 0x15e   : > { %v1774_v2 = vpack.c.bf16 %v1351_v12, %v1351_v12  ;;  %v1352_v7 = vmax.f32 %v1327_v63, 0.0  ;;  %v1007_v10 = vmax.f32 %v2716_v9, %v917_v1  ;;  %v1206_v6 = vpop.f32.mrb[60].mxu1  ;;  %v1973_v52 = vpop.f32.mrb[61].mxu0 }
 0x15f   : > { %v2027_v42 = vpop.f32.mrb[61].mxu1  ;;  %v920_v37 = vpop.f32.mrb[62].mxu0  ;;  %v2719_v52 = vmax.f32 %v2439_v29, %v2441_v30  ;;  %v2720_v29 = vmax.f32 %v2445_v34, %v2447_v35 }
 0x160   : > { %1478 = vst.msk [vmem:[%s2564_s25 + $0x8] sm:$0xf] %vm1475_vm4, %v1774_v2  ;;  %v1775_v27 = vpack.c.bf16 %v1352_v7, %v1352_v7  ;;  %v1296_v22 = vmax.f32 %v1007_v10, %v1206_v6  ;;  %v1008_v31 = vmax.f32 %v2717_v17, %v920_v37  ;;  %v1209_v47 = vpop.f32.mrb[62].mxu1  ;;  %v1974_v58 = vpop.f32.mrb[63].mxu0 }
 0x161   : > { %v2028_v59 = vpop.f32.mrb[63].mxu1 }
 0x162   : > { %1479 = vst.msk [vmem:[%s2564_s25 + $0xc] sm:$0xf] %vm1475_vm4, %v1775_v27  ;;  %v1328_v14 = vadd.f32 %v2553_v32, %v1296_v22  ;;  %v1297_v15 = vmax.f32 %v1008_v31, %v1209_v47 }
 0x164   : > { %v1353_v61 = vmax.f32 %v1328_v14, 0.0  ;;  %v1329_v4 = vadd.f32 %v2553_v32, %v1297_v15 }
 0x165   : > { %v925_v5 = vpop.f32.mrb[64].mxu0 }
 0x166   : > { %v1776_v12 = vpack.c.bf16 %v1353_v61, %v1353_v61  ;;  %v1354_v63 = vmax.f32 %v1329_v4, 0.0  ;;  %v1009_v20 = vmax.f32 %v2718_v19, %v925_v5  ;;  %v1214_v1 = vpop.f32.mrb[64].mxu1  ;;  %v1977_v2 = vpop.f32.mrb[65].mxu0 }
 0x167   : > { %v2031_v7 = vpop.f32.mrb[65].mxu1  ;;  %v928_v9 = vpop.f32.mrb[66].mxu0 }
 0x168   : > { %1480 = vst.msk [vmem:[%s2564_s25 + $0x10] sm:$0xf] %vm1475_vm4, %v1776_v12  ;;  %v1777_v10 = vpack.c.bf16 %v1354_v63, %v1354_v63  ;;  %v1298_v6 = vmax.f32 %v1009_v20, %v1214_v1  ;;  %v1010_v42 = vmax.f32 %v2719_v52, %v928_v9  ;;  %v1217_v37 = vpop.f32.mrb[66].mxu1  ;;  %v1978_v27 = vpop.f32.mrb[67].mxu0  ;;  %v2721_v63 = vmax.f32 %v2451_v39, %v2453_v40 }
 0x169   : > { %v2032_v22 = vpop.f32.mrb[67].mxu1  ;;  %v2722_v39 = vmax.f32 %v2457_v44, %v2459_v45 }
 0x16a   : > { %1481 = vst.msk [vmem:[%s2564_s25 + $0x14] sm:$0xf] %vm1475_vm4, %v1777_v10  ;;  %v1330_v24 = vadd.f32 %v2553_v32, %v1298_v6  ;;  %v1299_v25 = vmax.f32 %v1010_v42, %v1217_v37 }
 0x16c   : > { %v1355_v17 = vmax.f32 %v1330_v24, 0.0  ;;  %v1331_v31 = vadd.f32 %v2553_v32, %v1299_v25 }
 0x16d   : > { %v933_v47 = vpop.f32.mrb[68].mxu0 }
 0x16e   : > { %v1778_v58 = vpack.c.bf16 %v1355_v17, %v1355_v17  ;;  %v1356_v59 = vmax.f32 %v1331_v31, 0.0  ;;  %v1011_v30 = vmax.f32 %v2720_v29, %v933_v47  ;;  %v1222_v14 = vpop.f32.mrb[68].mxu1  ;;  %v1981_v15 = vpop.f32.mrb[69].mxu0  ;;  %v2723_v17 = vmax.f32 %v2463_v49, %v2465_v50 }
 0x16f   : > { %v2035_v61 = vpop.f32.mrb[69].mxu1  ;;  %v936_v4 = vpop.f32.mrb[70].mxu0  ;;  %v2724_v49 = vmax.f32 %v2469_v54, %v2471_v55 }
 0x170   : > { %1482 = vst.msk [vmem:[%s2564_s25 + $0x18] sm:$0xf] %vm1475_vm4, %v1778_v58  ;;  %v1779_v5 = vpack.c.bf16 %v1356_v59, %v1356_v59  ;;  %v1300_v12 = vmax.f32 %v1011_v30, %v1222_v14  ;;  %v1012_v19 = vmax.f32 %v2721_v63, %v936_v4  ;;  %v1225_v20 = vpop.f32.mrb[70].mxu1  ;;  %v1982_v1 = vpop.f32.mrb[71].mxu0 }
 0x171   : > { %v2036_v2 = vpop.f32.mrb[71].mxu1  ;;  %v2725_v1 = vmax.f32 %v2475_v62, %v2477_v0  ;;  %v2726_v62 = vmax.f32 %v2481_v11, %v2483_v13 }
 0x172   : > { %1483 = vst.msk [vmem:[%s2564_s25 + $0x1c] sm:$0xf] %vm1475_vm4, %v1779_v5  ;;  %v1332_v34 = vadd.f32 %v2553_v32, %v1300_v12  ;;  %v1301_v35 = vmax.f32 %v1012_v19, %v1225_v20 }
 0x174   : > { %v1357_v7 = vmax.f32 %v1332_v34, 0.0  ;;  %v1333_v9 = vadd.f32 %v2553_v32, %v1301_v35 }
 0x175   : > { %v941_v10 = vpop.f32.mrb[72].mxu0 }
 0x176   : > { %v1780_v6 = vpack.c.bf16 %v1357_v7, %v1357_v7  ;;  %v1358_v52 = vmax.f32 %v1333_v9, 0.0  ;;  %v1013_v40 = vmax.f32 %v2722_v39, %v941_v10  ;;  %v1230_v42 = vpop.f32.mrb[72].mxu1  ;;  %v1985_v37 = vpop.f32.mrb[73].mxu0 }
 0x177   : > { %v2039_v27 = vpop.f32.mrb[73].mxu1  ;;  %v944_v22 = vpop.f32.mrb[74].mxu0 }
 0x178   : > { %1484 = vst.msk [vmem:[%s2564_s25 + $0x20] sm:$0xf] %vm1475_vm4, %v1780_v6  ;;  %v1781_v24 = vpack.c.bf16 %v1358_v52, %v1358_v52  ;;  %v1302_v25 = vmax.f32 %v1013_v40, %v1230_v42  ;;  %v1014_v31 = vmax.f32 %v2723_v17, %v944_v22  ;;  %v1233_v47 = vpop.f32.mrb[74].mxu1  ;;  %v1986_v58 = vpop.f32.mrb[75].mxu0 }
 0x179   : > { %v2040_v59 = vpop.f32.mrb[75].mxu1 }
 0x17a   : > { %1485 = vst.msk [vmem:[%s2564_s25 + $0x24] sm:$0xf] %vm1475_vm4, %v1781_v24  ;;  %v1334_v44 = vadd.f32 %v2553_v32, %v1302_v25  ;;  %v1303_v45 = vmax.f32 %v1014_v31, %v1233_v47  ;;  %v2727_v25 = vmax.f32 %v2487_v23, %v2489_v26  ;;  %v2728_v23 = vmax.f32 %v2493_v36, %v2495_v38 }
 0x17c   : > { %v1359_v29 = vmax.f32 %v1334_v44, 0.0  ;;  %v1335_v30 = vadd.f32 %v2553_v32, %v1303_v45 }
 0x17d   : > { %v949_v14 = vpop.f32.mrb[76].mxu0 }
 0x17e   : > { %v1782_v15 = vpack.c.bf16 %v1359_v29, %v1359_v29  ;;  %v1360_v61 = vmax.f32 %v1335_v30, 0.0  ;;  %v1015_v50 = vmax.f32 %v2724_v49, %v949_v14  ;;  %v1238_v4 = vpop.f32.mrb[76].mxu1  ;;  %v1989_v5 = vpop.f32.mrb[77].mxu0 }
 0x17f   : > { %v2043_v12 = vpop.f32.mrb[77].mxu1  ;;  %v952_v63 = vpop.f32.mrb[78].mxu0  ;;  %v2729_v5 = vmax.f32 %v2499_v48, %v2501_v51  ;;  %v2730_v48 = vmax.f32 %v2505_v3, %v2507_v8 }
 0x180   : > { %1486 = vst.msk [vmem:[%s2564_s25 + $0x28] sm:$0xf] %vm1475_vm4, %v1782_v15  ;;  %v1783_v19 = vpack.c.bf16 %v1360_v61, %v1360_v61  ;;  %v1304_v20 = vmax.f32 %v1015_v50, %v1238_v4  ;;  %v1016_v2 = vmax.f32 %v2725_v1, %v952_v63  ;;  %v1241_v34 = vpop.f32.mrb[78].mxu1  ;;  %v1990_v35 = vpop.f32.mrb[79].mxu0 }
 0x181   : > { %v2044_v7 = vpop.f32.mrb[79].mxu1 }
 0x182   : > { %1487 = vst.msk [vmem:[%s2564_s25 + $0x2c] sm:$0xf] %vm1475_vm4, %v1783_v19  ;;  %v1336_v54 = vadd.f32 %v2553_v32, %v1304_v20  ;;  %v1305_v55 = vmax.f32 %v1016_v2, %v1241_v34 }
 0x184   : > { %v1361_v9 = vmax.f32 %v1336_v54, 0.0  ;;  %v1337_v10 = vadd.f32 %v2553_v32, %v1305_v55 }
 0x185   : > { %v957_v6 = vpop.f32.mrb[80].mxu0 }
 0x186   : > { %v1784_v52 = vpack.c.bf16 %v1361_v9, %v1361_v9  ;;  %v1362_v39 = vmax.f32 %v1337_v10, 0.0  ;;  %v1017_v0 = vmax.f32 %v2726_v62, %v957_v6  ;;  %v1246_v40 = vpop.f32.mrb[80].mxu1  ;;  %v1993_v42 = vpop.f32.mrb[81].mxu0 }
 0x187   : > { %v2047_v37 = vpop.f32.mrb[81].mxu1  ;;  %v960_v27 = vpop.f32.mrb[82].mxu0 }
 0x188   : > { %1488 = vst.msk [vmem:[%s2564_s25 + $0x30] sm:$0xf] %vm1475_vm4, %v1784_v52  ;;  %v1785_v22 = vpack.c.bf16 %v1362_v39, %v1362_v39  ;;  %v1306_v24 = vmax.f32 %v1017_v0, %v1246_v40  ;;  %v1018_v17 = vmax.f32 %v2727_v25, %v960_v27  ;;  %v1249_v31 = vpop.f32.mrb[82].mxu1  ;;  %v1994_v47 = vpop.f32.mrb[83].mxu0  ;;  %v2731_v39 = vmax.f32 %v2511_v33, %v2513_v41 }
 0x189   : > { %v2048_v58 = vpop.f32.mrb[83].mxu1  ;;  %v2732_v33 = vmax.f32 %v2517_v56, %v2519_v60 }
 0x18a   : > { %1489 = vst.msk [vmem:[%s2564_s25 + $0x34] sm:$0xf] %vm1475_vm4, %v1785_v22  ;;  %v1338_v11 = vadd.f32 %v2553_v32, %v1306_v24  ;;  %v1307_v13 = vmax.f32 %v1018_v17, %v1249_v31 }
 0x18c   : > { %v1363_v59 = vmax.f32 %v1338_v11, 0.0  ;;  %v1339_v44 = vadd.f32 %v2553_v32, %v1307_v13 }
 0x18d   : > { %v965_v45 = vpop.f32.mrb[84].mxu0 }
 0x18e   : > { %v1786_v29 = vpack.c.bf16 %v1363_v59, %v1363_v59  ;;  %v1364_v30 = vmax.f32 %v1339_v44, 0.0  ;;  %v1019_v26 = vmax.f32 %v2728_v23, %v965_v45  ;;  %v1254_v14 = vpop.f32.mrb[84].mxu1  ;;  %v1997_v15 = vpop.f32.mrb[85].mxu0  ;;  %v2733_v59 = vmax.f32 %v2523_v21, %v2525_v28 }
 0x18f   : > { %v2051_v61 = vpop.f32.mrb[85].mxu1  ;;  %v968_v49 = vpop.f32.mrb[86].mxu0  ;;  %v2734_v21 = vmax.f32 %v2529_v53, %v2531_v43 }
 0x190   : > { %1490 = vst.msk [vmem:[%s2564_s25 + $0x38] sm:$0xf] %vm1475_vm4, %v1786_v29  ;;  %v1787_v50 = vpack.c.bf16 %v1364_v30, %v1364_v30  ;;  %v1308_v4 = vmax.f32 %v1019_v26, %v1254_v14  ;;  %v1020_v12 = vmax.f32 %v2729_v5, %v968_v49  ;;  %v1257_v63 = vpop.f32.mrb[86].mxu1  ;;  %v1998_v19 = vpop.f32.mrb[87].mxu0 }
 0x191   : > { %v2052_v20 = vpop.f32.mrb[87].mxu1  ;;  %v2735_v19 = vmax.f32 %v2535_v16, %v2537_v18  ;;  %v2736_v16 = vmax.f32 %v2541_v46, %v2543_v57 }
 0x192   : > { %1491 = vst.msk [vmem:[%s2564_s25 + $0x3c] sm:$0xf] %vm1475_vm4, %v1787_v50  ;;  %v1340_v36 = vadd.f32 %v2553_v32, %v1308_v4  ;;  %v1309_v38 = vmax.f32 %v1020_v12, %v1257_v63 }
 0x194   : > { %v1365_v1 = vmax.f32 %v1340_v36, 0.0  ;;  %v1341_v2 = vadd.f32 %v2553_v32, %v1309_v38 }
 0x195   : > { %v973_v34 = vpop.f32.mrb[88].mxu0 }
 0x196   : > { %v1788_v35 = vpack.c.bf16 %v1365_v1, %v1365_v1  ;;  %v1366_v7 = vmax.f32 %v1341_v2, 0.0  ;;  %v1021_v51 = vmax.f32 %v2730_v48, %v973_v34  ;;  %v1262_v54 = vpop.f32.mrb[88].mxu1  ;;  %v2001_v55 = vpop.f32.mrb[89].mxu0 }
 0x197   : > { %v2055_v9 = vpop.f32.mrb[89].mxu1  ;;  %v976_v10 = vpop.f32.mrb[90].mxu0 }
 0x198   : > { %1492 = vst.msk [vmem:[%s2564_s25 + $0x40] sm:$0xf] %vm1475_vm4, %v1788_v35  ;;  %v1789_v6 = vpack.c.bf16 %v1366_v7, %v1366_v7  ;;  %v1310_v52 = vmax.f32 %v1021_v51, %v1262_v54  ;;  %v1022_v62 = vmax.f32 %v2731_v39, %v976_v10  ;;  %v1265_v0 = vpop.f32.mrb[90].mxu1  ;;  %v2002_v40 = vpop.f32.mrb[91].mxu0 }
 0x199   : > { %v2056_v42 = vpop.f32.mrb[91].mxu1 }
 0x19a   : > { %1493 = vst.msk [vmem:[%s2564_s25 + $0x44] sm:$0xf] %vm1475_vm4, %v1789_v6  ;;  %v1342_v3 = vadd.f32 %v2553_v32, %v1310_v52  ;;  %v1311_v8 = vmax.f32 %v1022_v62, %v1265_v0 }
 0x19c   : > { %v1367_v37 = vmax.f32 %v1342_v3, 0.0  ;;  %v1343_v27 = vadd.f32 %v2553_v32, %v1311_v8 }
 0x19d   : > { %v981_v22 = vpop.f32.mrb[92].mxu0 }
 0x19e   : > { %v1790_v24 = vpack.c.bf16 %v1367_v37, %v1367_v37  ;;  %v1368_v25 = vmax.f32 %v1343_v27, 0.0  ;;  %v1023_v41 = vmax.f32 %v2732_v33, %v981_v22  ;;  %v1270_v17 = vpop.f32.mrb[92].mxu1  ;;  %v2005_v31 = vpop.f32.mrb[93].mxu0 }
 0x19f   : > { %v2059_v47 = vpop.f32.mrb[93].mxu1  ;;  %v984_v58 = vpop.f32.mrb[94].mxu0 }
 0x1a0   : > { %1494 = vst.msk [vmem:[%s2564_s25 + $0x48] sm:$0xf] %vm1475_vm4, %v1790_v24  ;;  %v1791_v11 = vpack.c.bf16 %v1368_v25, %v1368_v25  ;;  %v1312_v13 = vmax.f32 %v1023_v41, %v1270_v17  ;;  %v1024_v44 = vmax.f32 %v2733_v59, %v984_v58  ;;  %v1273_v45 = vpop.f32.mrb[94].mxu1  ;;  %v2006_v29 = vpop.f32.mrb[95].mxu0 }
 0x1a1   : > { %v2060_v30 = vpop.f32.mrb[95].mxu1 }
 0x1a2   : > { %1495 = vst.msk [vmem:[%s2564_s25 + $0x4c] sm:$0xf] %vm1475_vm4, %v1791_v11  ;;  %v1344_v56 = vadd.f32 %v2553_v32, %v1312_v13  ;;  %v1313_v60 = vmax.f32 %v1024_v44, %v1273_v45 }
 0x1a4   : > { %v1369_v23 = vmax.f32 %v1344_v56, 0.0  ;;  %v1345_v26 = vadd.f32 %v2553_v32, %v1313_v60 }
 0x1a5   : > { %v989_v14 = vpop.f32.mrb[96].mxu0 }
 0x1a6   : > { %v1792_v15 = vpack.c.bf16 %v1369_v23, %v1369_v23  ;;  %v1370_v61 = vmax.f32 %v1345_v26, 0.0  ;;  %v1025_v28 = vmax.f32 %v2734_v21, %v989_v14  ;;  %v1278_v49 = vpop.f32.mrb[96].mxu1  ;;  %v2009_v50 = vpop.f32.mrb[97].mxu0 }
 0x1a7   : > { %v2063_v4 = vpop.f32.mrb[97].mxu1  ;;  %v992_v5 = vpop.f32.mrb[98].mxu0 }
 0x1a8   : > { %1496 = vst.msk [vmem:[%s2564_s25 + $0x50] sm:$0xf] %vm1475_vm4, %v1792_v15  ;;  %v1793_v12 = vpack.c.bf16 %v1370_v61, %v1370_v61  ;;  %v1314_v63 = vmax.f32 %v1025_v28, %v1278_v49  ;;  %v1026_v20 = vmax.f32 %v2735_v19, %v992_v5  ;;  %v1281_v36 = vpop.f32.mrb[98].mxu1  ;;  %v2010_v38 = vpop.f32.mrb[99].mxu0 }
 0x1a9   : > { %v2064_v1 = vpop.f32.mrb[99].mxu1 }
 0x1aa   : > { %1497 = vst.msk [vmem:[%s2564_s25 + $0x54] sm:$0xf] %vm1475_vm4, %v1793_v12  ;;  %v1346_v53 = vadd.f32 %v2553_v32, %v1314_v63  ;;  %v1315_v43 = vmax.f32 %v1026_v20, %v1281_v36 }
 0x1ac   : > { %v1371_v2 = vmax.f32 %v1346_v53, 0.0  ;;  %v1347_v34 = vadd.f32 %v2553_v32, %v1315_v43 }
 0x1ad   : > { %v997_v35 = vpop.f32.mrb[100].mxu0 }
 0x1ae   : > { %v1794_v7 = vpack.c.bf16 %v1371_v2, %v1371_v2  ;;  %v1372_v48 = vmax.f32 %v1347_v34, 0.0  ;;  %v1027_v18 = vmax.f32 %v2736_v16, %v997_v35  ;;  %v1286_v51 = vpop.f32.mrb[100].mxu1  ;;  %v2013_v54 = vpop.f32.mrb[101].mxu0 }
 0x1af   : > { %v2067_v55 = vpop.f32.mrb[101].mxu1  ;;  %v1000_v9 = vpop.f32.mrb[102].mxu0 }
 0x1b0   : > { %1498 = vst.msk [vmem:[%s2564_s25 + $0x58] sm:$0xf] %vm1475_vm4, %v1794_v7  ;;  %v1795_v10 = vpack.c.bf16 %v1372_v48, %v1372_v48  ;;  %v1316_v6 = vmax.f32 %v1027_v18, %v1286_v51  ;;  %v1289_v52 = vpop.f32.mrb[102].mxu1  ;;  %v2014_v39 = vpop.f32.mrb[103].mxu0 }
 0x1b1   : > { %v2068_v62 = vpop.f32.mrb[103].mxu1 }
 0x1b2   : > { %1499 = vst.msk [vmem:[%s2564_s25 + $0x5c] sm:$0xf] %vm1475_vm4, %v1795_v10  ;;  %v1348_v0 = vadd.f32 %v2553_v32, %v1316_v6 }
 0x1b4   : > { %v1373_v40 = vmax.f32 %v1348_v0, 0.0 }
 0x1b6   : > { %v1796_v46 = vpack.c.bf16 %v1373_v40, %v1373_v40 }
 0x1b8   : > { %1501 = vst.msk [vmem:[%s2564_s25 + $0x60] sm:$0x3] %vm1500_vm5, %v1796_v46 }
 0x1b9 PF: > { %s13_s12 = sadd.s32 1, %s2141_s12  }
 0x1ba   : > { %p10_p4 = scmp.ge.s32.totalorder %s13_s12, 4  }
 0x1bc   :  { %12 = sbr.rel (!%p10_p4) target bundleno = 1 (0x1), region = 65 }

// kernel: cnn_forward.4
= control target key start
LH: loop header
LB: loop body
LE: loop exit
PB: predicated region body
PF: predicated region fallthrough
CT: control target
= control target key end

     0   :  { %s1086_s12 = smov 0   ;;  %s1368_s0 = inlined_call_operand.vmem [shape: bf16[2,4,49,200], index: 0, kind: input, shape index: {}]   ;;  %s1369_s1 = inlined_call_operand.vmem [shape: bf16[200,32], index: 1, kind: input, shape index: {}]   ;;  %s1370_s2 = inlined_call_operand.vmem [shape: f32[1,32], index: 2, kind: input, shape index: {}]   ;;  %s1371_s3 = inlined_call_operand.vmem [shape: bf16[2,49,32], index: 3, kind: output, shape index: {}]  }
   0x1 LB: > { %s883_s13 = sadd.s32 4294967295, %s1063_s12   ;;  %p887_p0 = scmp.ge.s32.totalorder %s1063_s12, 1  ;;  %s1063_s12 = sphi %s1086_s12, %s13_s12  }
   0x2   : > { %p137_p1 = scmp.lt.s32.totalorder %s1063_s12, 3 }
   0x4   : > { %p138_p2 = pnand %p887_p0, %p137_p1 }
   0x5   : > { %v1097_v0 = vld [vmem:[%s1369_s1] sm:$0xff] (!%p138_p2)   ;;  %v1065_v1 = vmov (!%p138_p2), 0   ;;  %v1106_v2 = vld [vmem:[%s1369_s1 + $0x8] sm:$0xff] (!%p138_p2)   ;;  %p161_p3 = scmp.lt.s32.totalorder (!%p138_p2), %s883_s13, 1  ;;  %v1117_v3 = vld [vmem:[%s1369_s1 + $0x10] sm:$0xff] (!%p138_p2)   ;;  %vm312_vm0 = vcmask (!%p138_p2), 588800  }
   0x6   : > { %141 = sbr.rel (%p138_p2) target bundleno = 358 (0x166), region = 32  ;;  %329 = vmatprep.subr.bf16.mxu0 (!%p138_p2), %v1065_v1  ;;  %446 = vmatprep.subr.bf16.mxu1 (!%p138_p2), %v1065_v1  ;;  %v1127_v4 = vld [vmem:[%s1369_s1 + $0x18] sm:$0xff] (!%p138_p2)   ;;  %v1142_v6 = vld [vmem:[%s1369_s1 + $0x20] sm:$0xff] (!%p138_p2)   ;;  %v1154_v8 = vld [vmem:[%s1369_s1 + $0x28] sm:$0xff] (!%p138_p2)   ;;  %vm325_vm1 = vcmask (!%p138_p2), 1043456   ;;  %vm815_vm2 = vcmask (!%p138_p2), 257024  }
   0x7   : > { %330 = vmatpush1.bf16.msra.mxu0 (!%p138_p2), %v1097_v0  ;;  %447 = vmatpush1.bf16.msra.mxu1 (!%p138_p2), %v1097_v0  ;;  %v1163_v9 = vld [vmem:[%s1369_s1 + $0x30] sm:$0xff] (!%p138_p2)   ;;  %v1172_v10 = vld [vmem:[%s1369_s1 + $0x38] sm:$0xff] (!%p138_p2)   ;;  %v1181_v11 = vld [vmem:[%s1369_s1 + $0x40] sm:$0xff] (!%p138_p2)   ;;  %vm822_vm3 = vcmask (!%p138_p2), 253952   ;;  %vm823_vm4 = vsmask.f32 (!%p138_p2), 256 }
   0x8   : > { %331 = vmatprep.subr.bf16.mxu0 (!%p138_p2), %v1065_v1  ;;  %448 = vmatprep.subr.bf16.mxu1 (!%p138_p2), %v1065_v1  ;;  %v1190_v12 = vld [vmem:[%s1369_s1 + $0x48] sm:$0xff] (!%p138_p2)   ;;  %v1199_v13 = vld [vmem:[%s1369_s1 + $0x50] sm:$0xff] (!%p138_p2)   ;;  %v1208_v14 = vld [vmem:[%s1369_s1 + $0x58] sm:$0xff] (!%p138_p2)  }
   0x9   : > { %v1012_v15 = vld [vmem:[%s1369_s1 + $0x60] ss:$0 sps:$4 sm:$0xff] (!%p138_p2)   ;;  %vm824_vm5 = vmand (!%p138_p2), %vm822_vm3, %vm823_vm4 }
   0xa   : > { %v1219_v16 = vsel (!%p138_p2), %vm325_vm1, %v1012_v15, 0 }
   0xb   : > { %332 = vmatpush1.bf16.msra.mxu0 (!%p138_p2), %v1106_v2  ;;  %449 = vmatpush1.bf16.msra.mxu1 (!%p138_p2), %v1106_v2 }
   0xc   : > { %333 = vmatprep.subr.bf16.mxu0 (!%p138_p2), %v1065_v1  ;;  %450 = vmatprep.subr.bf16.mxu1 (!%p138_p2), %v1065_v1 }
   0xd   : > { %s1373_s13 = smov (!%p161_p3, %s883_s13), 1 }
   0xe   : > { %s989_s20 = smul.u32 224, %s1373_s13 }
   0xf   : > { %334 = vmatpush1.bf16.msra.mxu0 %v1117_v3  ;;  %451 = vmatpush1.bf16.msra.mxu1 %v1117_v3  ;;  %s990_s21 = smul.u32 28, %s1373_s13 }
  0x10   : > { %s1132_s25 = scalar_lea.vmem %s1368_s0, %s989_s20  ;;  %335 = vmatprep.subr.bf16.mxu0 %v1065_v1  ;;  %452 = vmatprep.subr.bf16.mxu1 %v1065_v1 }
  0x11   : > { %v1015_v5 = vld [vmem:[%s1132_s25 + $0x4] ss:$8 sps:$4 sm:$0xff]   ;;  %v1013_v17 = vld [vmem:[%s1132_s25] ss:$8 sps:$4 sm:$0xff]   ;;  %v1019_v19 = vld [vmem:[%s1132_s25 + $0x14] ss:$8 sps:$4 sm:$0xff]   ;;  %s1341_s24 = scalar_lea.vmem %s1371_s3, %s990_s21 }
  0x12   : > { %v1018_v7 = vld [vmem:[%s1132_s25 + $0x3c] ss:$8 sps:$4 sm:$0xff]   ;;  %911 = vmatprep.mubr.msk.bf16.mxu0 %vm312_vm0, %v1015_v5  ;;  %v1016_v18 = vld [vmem:[%s1132_s25 + $0x38] ss:$8 sps:$4 sm:$0xff]   ;;  %v1022_v20 = vld [vmem:[%s1132_s25 + $0x4c] ss:$8 sps:$4 sm:$0xff]  }
  0x13   : > { %336 = vmatpush1.bf16.msra.mxu0 %v1127_v4  ;;  %453 = vmatpush1.bf16.msra.mxu1 %v1127_v4  ;;  %v1021_v21 = vld [vmem:[%s1132_s25 + $0x10] ss:$8 sps:$4 sm:$0xff]   ;;  %v1025_v23 = vld [vmem:[%s1132_s25 + $0x24] ss:$8 sps:$4 sm:$0xff]   ;;  %v1027_v25 = vld [vmem:[%s1132_s25 + $0x20] ss:$8 sps:$4 sm:$0xff]  }
  0x14   : > { %337 = vmatprep.subr.bf16.mxu0 %v1065_v1  ;;  %454 = vmatprep.subr.bf16.mxu1 %v1065_v1  ;;  %v1024_v22 = vld [vmem:[%s1132_s25 + $0x48] ss:$8 sps:$4 sm:$0xff]   ;;  %v1028_v24 = vld [vmem:[%s1132_s25 + $0x5c] ss:$8 sps:$4 sm:$0xff]   ;;  %v1030_v26 = vld [vmem:[%s1132_s25 + $0x58] ss:$8 sps:$4 sm:$0xff]  }
  0x15   : > { %930 = vmatprep.mubr.msk.bf16.mxu1 %vm312_vm0, %v1018_v7  ;;  %v203_v27 = vld [vmem:[%s1132_s25 + $0x30] sm:$0x11]  ;;  %v921_v28 = vld [vmem:[%s1132_s25 + $0x68] sm:$0x11]  ;;  %v1043_v38 = vld [vmem:[%s1132_s25 + $0xbc] ss:$8 sps:$4 sm:$0xff]  }
  0x16   : > { %v897_v29 = vcombine.high %v203_v27, %v203_v27  ;;  %v929_v30 = vcombine.high %v921_v28, %v921_v28  ;;  %v896_v31 = vcombine.low %v203_v27, %v203_v27  ;;  %v928_v32 = vcombine.low %v921_v28, %v921_v28  ;;  %v1037_v33 = vld [vmem:[%s1132_s25 + $0x74] ss:$8 sps:$4 sm:$0xff]   ;;  %v1035_v35 = vld [vmem:[%s1132_s25 + $0x70] ss:$8 sps:$4 sm:$0xff]   ;;  %v1041_v37 = vld [vmem:[%s1132_s25 + $0x84] ss:$8 sps:$4 sm:$0xff]  }
  0x17   : > { %338 = vmatpush1.bf16.msra.mxu0 %v1142_v6  ;;  %455 = vmatpush1.bf16.msra.mxu1 %v1142_v6  ;;  %v1040_v34 = vld [vmem:[%s1132_s25 + $0xac] ss:$8 sps:$4 sm:$0xff]   ;;  %v1038_v36 = vld [vmem:[%s1132_s25 + $0xa8] ss:$8 sps:$4 sm:$0xff]   ;;  %v1046_v40 = vld [vmem:[%s1132_s25 + $0xb8] ss:$8 sps:$4 sm:$0xff]  }
  0x18   : > { %339 = vmatprep.subr.bf16.mxu0 %v1065_v1  ;;  %456 = vmatprep.subr.bf16.mxu1 %v1065_v1  ;;  %v1045_v39 = vld [vmem:[%s1132_s25 + $0x80] ss:$8 sps:$4 sm:$0xff]   ;;  %v1047_v41 = vld [vmem:[%s1132_s25 + $0x94] ss:$8 sps:$4 sm:$0xff]   ;;  %v1051_v45 = vld [vmem:[%s1132_s25 + $0x90] ss:$8 sps:$4 sm:$0xff]  }
  0x19   : > { %v1049_v42 = vld [vmem:[%s1132_s25 + $0xcc] ss:$8 sps:$4 sm:$0xff]   ;;  %v940_v43 = vld [vmem:[%s1132_s25 + $0xa0] sm:$0x11]  ;;  %v959_v44 = vld [vmem:[%s1132_s25 + $0xd8] sm:$0x11] }
  0x1a   : > { %v1052_v46 = vld [vmem:[%s1132_s25 + $0xc8] ss:$8 sps:$4 sm:$0xff]   ;;  %v948_v47 = vcombine.high %v940_v43, %v940_v43  ;;  %v967_v48 = vcombine.high %v959_v44, %v959_v44  ;;  %v947_v49 = vcombine.low %v940_v43, %v940_v43  ;;  %v966_v50 = vcombine.low %v959_v44, %v959_v44 }
  0x1b   : > { %340 = vmatpush1.bf16.msra.mxu0 %v1154_v8  ;;  %457 = vmatpush1.bf16.msra.mxu1 %v1154_v8 }
  0x1c   : > { %341 = vmatprep.subr.bf16.mxu0 %v1065_v1  ;;  %458 = vmatprep.subr.bf16.mxu1 %v1065_v1 }
  0x1f   : > { %342 = vmatpush1.bf16.msra.mxu0 %v1163_v9  ;;  %459 = vmatpush1.bf16.msra.mxu1 %v1163_v9 }
  0x20   : > { %343 = vmatprep.subr.bf16.mxu0 %v1065_v1  ;;  %460 = vmatprep.subr.bf16.mxu1 %v1065_v1 }
  0x23   : > { %344 = vmatpush1.bf16.msra.mxu0 %v1172_v10  ;;  %461 = vmatpush1.bf16.msra.mxu1 %v1172_v10 }
  0x24   : > { %345 = vmatprep.subr.bf16.mxu0 %v1065_v1  ;;  %462 = vmatprep.subr.bf16.mxu1 %v1065_v1 }
  0x27   : > { %346 = vmatpush1.bf16.msra.mxu0 %v1181_v11  ;;  %463 = vmatpush1.bf16.msra.mxu1 %v1181_v11 }
  0x28   : > { %347 = vmatprep.subr.bf16.mxu0 %v1065_v1  ;;  %464 = vmatprep.subr.bf16.mxu1 %v1065_v1 }
  0x2b   : > { %348 = vmatpush1.bf16.msra.mxu0 %v1190_v12  ;;  %465 = vmatpush1.bf16.msra.mxu1 %v1190_v12 }
  0x2c   : > { %349 = vmatprep.subr.bf16.mxu0 %v1065_v1  ;;  %466 = vmatprep.subr.bf16.mxu1 %v1065_v1 }
  0x2f   : > { %350 = vmatpush1.bf16.msra.mxu0 %v1199_v13  ;;  %467 = vmatpush1.bf16.msra.mxu1 %v1199_v13 }
  0x30   : > { %351 = vmatprep.subr.bf16.mxu0 %v1065_v1  ;;  %468 = vmatprep.subr.bf16.mxu1 %v1065_v1 }
  0x33   : > { %352 = vmatpush1.bf16.msra.mxu0 %v1208_v14  ;;  %469 = vmatpush1.bf16.msra.mxu1 %v1208_v14 }
  0x34   : > { %353 = vmatprep.subr.bf16.mxu0 %v1065_v1  ;;  %470 = vmatprep.subr.bf16.mxu1 %v1065_v1 }
  0x37   : > { %354 = vmatpush1.bf16.msra.mxu0 %v1219_v16  ;;  %471 = vmatpush1.bf16.msra.mxu1 %v1219_v16 }
  0x38   : > { %570 = vmatprep.subr.bf16.mxu0 %v1065_v1  ;;  %694 = vmatprep.subr.bf16.mxu1 %v1065_v1 }
  0x3a   : > { %362 = vmatmul.mubr.bf16.vlgmr.msra.gmra.mrb[0].mxu0 %v1013_v17  ;;  %479 = vmatmul.mubr.bf16.vlgmr.msra.gmra.mrb[0].mxu1 %v1016_v18 }
  0x3b   : > { %571 = vmatpush1.bf16.msra.mxu0 %v1097_v0  ;;  %695 = vmatpush1.bf16.msra.mxu1 %v1097_v0 }
  0x3c   : > { %572 = vmatprep.subr.bf16.mxu0 %v1065_v1  ;;  %696 = vmatprep.subr.bf16.mxu1 %v1065_v1 }
  0x3d   : > { %912 = vmatprep.mubr.msk.bf16.mxu0 %vm312_vm0, %v1019_v19  ;;  %931 = vmatprep.mubr.msk.bf16.mxu1 %vm312_vm0, %v1022_v20 }
  0x3f   : > { %573 = vmatpush1.bf16.msra.mxu0 %v1106_v2  ;;  %697 = vmatpush1.bf16.msra.mxu1 %v1106_v2 }
  0x40   : > { %574 = vmatprep.subr.bf16.mxu0 %v1065_v1  ;;  %698 = vmatprep.subr.bf16.mxu1 %v1065_v1 }
  0x42   : > { %370 = vmatmul.mubr.bf16.gmra.mrb[4].mxu0 %v1021_v21  ;;  %487 = vmatmul.mubr.bf16.gmra.mrb[4].mxu1 %v1024_v22 }
  0x43   : > { %575 = vmatpush1.bf16.msra.mxu0 %v1117_v3  ;;  %699 = vmatpush1.bf16.msra.mxu1 %v1117_v3 }
  0x44   : > { %576 = vmatprep.subr.bf16.mxu0 %v1065_v1  ;;  %700 = vmatprep.subr.bf16.mxu1 %v1065_v1 }
  0x45   : > { %913 = vmatprep.mubr.msk.bf16.mxu0 %vm312_vm0, %v1025_v23  ;;  %932 = vmatprep.mubr.msk.bf16.mxu1 %vm312_vm0, %v1028_v24 }
  0x47   : > { %577 = vmatpush1.bf16.msra.mxu0 %v1127_v4  ;;  %701 = vmatpush1.bf16.msra.mxu1 %v1127_v4 }
  0x48   : > { %578 = vmatprep.subr.bf16.mxu0 %v1065_v1  ;;  %702 = vmatprep.subr.bf16.mxu1 %v1065_v1 }
  0x4a   : > { %378 = vmatmul.mubr.bf16.gmra.mrb[8].mxu0 %v1027_v25  ;;  %495 = vmatmul.mubr.bf16.gmra.mrb[8].mxu1 %v1030_v26 }
  0x4b   : > { %579 = vmatpush1.bf16.msra.mxu0 %v1142_v6  ;;  %703 = vmatpush1.bf16.msra.mxu1 %v1142_v6 }
  0x4c   : > { %580 = vmatprep.subr.bf16.mxu0 %v1065_v1  ;;  %704 = vmatprep.subr.bf16.mxu1 %v1065_v1 }
  0x4d   : > { %914 = vmatprep.mubr.msk.bf16.mxu0 %vm312_vm0, %v897_v29  ;;  %933 = vmatprep.mubr.msk.bf16.mxu1 %vm312_vm0, %v929_v30 }
  0x4f   : > { %581 = vmatpush1.bf16.msra.mxu0 %v1154_v8  ;;  %705 = vmatpush1.bf16.msra.mxu1 %v1154_v8 }
  0x50   : > { %582 = vmatprep.subr.bf16.mxu0 %v1065_v1  ;;  %706 = vmatprep.subr.bf16.mxu1 %v1065_v1 }
  0x52   : > { %386 = vmatmul.mubr.bf16.gmra.mrb[12].mxu0 %v896_v31  ;;  %503 = vmatmul.mubr.bf16.gmra.mrb[12].mxu1 %v928_v32  ;;  %v1333_v31 = vld [vmem:[%s1370_s2] ss:$0 sm:$0xff] }
  0x53   : > { %583 = vmatpush1.bf16.msra.mxu0 %v1163_v9  ;;  %707 = vmatpush1.bf16.msra.mxu1 %v1163_v9 }
  0x54   : > { %584 = vmatprep.subr.bf16.mxu0 %v1065_v1  ;;  %708 = vmatprep.subr.bf16.mxu1 %v1065_v1 }
  0x55   : > { %949 = vmatprep.mubr.msk.bf16.mxu0 %vm312_vm0, %v1037_v33  ;;  %968 = vmatprep.mubr.msk.bf16.mxu1 %vm312_vm0, %v1040_v34 }
  0x57   : > { %585 = vmatpush1.bf16.msra.mxu0 %v1172_v10  ;;  %709 = vmatpush1.bf16.msra.mxu1 %v1172_v10 }
  0x58   : > { %586 = vmatprep.subr.bf16.mxu0 %v1065_v1  ;;  %710 = vmatprep.subr.bf16.mxu1 %v1065_v1 }
  0x5b   : > { %587 = vmatpush1.bf16.msra.mxu0 %v1181_v11  ;;  %711 = vmatpush1.bf16.msra.mxu1 %v1181_v11 }
  0x5c   : > { %588 = vmatprep.subr.bf16.mxu0 %v1065_v1  ;;  %712 = vmatprep.subr.bf16.mxu1 %v1065_v1 }
  0x5f   : > { %589 = vmatpush1.bf16.msra.mxu0 %v1190_v12  ;;  %713 = vmatpush1.bf16.msra.mxu1 %v1190_v12 }
  0x60   : > { %590 = vmatprep.subr.bf16.mxu0 %v1065_v1  ;;  %714 = vmatprep.subr.bf16.mxu1 %v1065_v1 }
  0x63   : > { %591 = vmatpush1.bf16.msra.mxu0 %v1199_v13  ;;  %715 = vmatpush1.bf16.msra.mxu1 %v1199_v13 }
  0x64   : > { %592 = vmatprep.subr.bf16.mxu0 %v1065_v1  ;;  %716 = vmatprep.subr.bf16.mxu1 %v1065_v1 }
  0x67   : > { %593 = vmatpush1.bf16.msra.mxu0 %v1208_v14  ;;  %717 = vmatpush1.bf16.msra.mxu1 %v1208_v14 }
  0x68   : > { %594 = vmatprep.subr.bf16.mxu0 %v1065_v1  ;;  %718 = vmatprep.subr.bf16.mxu1 %v1065_v1 }
  0x6b   : > { %595 = vmatpush1.bf16.msra.mxu0 %v1219_v16  ;;  %719 = vmatpush1.bf16.msra.mxu1 %v1219_v16 }
  0x6e   : > { %603 = vmatmul.mubr.bf16.vlgmr.msra.gmra.mrb[16].mxu0 %v1035_v35  ;;  %727 = vmatmul.mubr.bf16.vlgmr.msra.gmra.mrb[16].mxu1 %v1038_v36 }
  0x6f   : > { %950 = vmatprep.mubr.msk.bf16.mxu0 %vm312_vm0, %v1041_v37  ;;  %969 = vmatprep.mubr.msk.bf16.mxu1 %vm312_vm0, %v1043_v38 }
  0x76   : > { %611 = vmatmul.mubr.bf16.gmra.mrb[20].mxu0 %v1045_v39  ;;  %735 = vmatmul.mubr.bf16.gmra.mrb[20].mxu1 %v1046_v40 }
  0x77   : > { %951 = vmatprep.mubr.msk.bf16.mxu0 %vm312_vm0, %v1047_v41  ;;  %970 = vmatprep.mubr.msk.bf16.mxu1 %vm312_vm0, %v1049_v42 }
  0x7e   : > { %619 = vmatmul.mubr.bf16.gmra.mrb[24].mxu0 %v1051_v45  ;;  %743 = vmatmul.mubr.bf16.gmra.mrb[24].mxu1 %v1052_v46 }
  0x7f   : > { %952 = vmatprep.mubr.msk.bf16.mxu0 %vm312_vm0, %v948_v47  ;;  %971 = vmatprep.mubr.msk.bf16.mxu1 %vm312_vm0, %v967_v48 }
  0x86   : > { %627 = vmatmul.mubr.bf16.gmra.mrb[28].mxu0 %v947_v49  ;;  %751 = vmatmul.mubr.bf16.gmra.mrb[28].mxu1 %v966_v50 }
 0x10d   : > { %v363_v51 = vpop.f32.mrb[0].mxu0  ;;  %v480_v52 = vpop.f32.mrb[0].mxu1 }
 0x10e   : > { %v510_v53 = vmax.f32 %v363_v51, %v480_v52  ;;  %v365_v54 = vpop.f32.mrb[1].mxu0  ;;  %v482_v55 = vpop.f32.mrb[1].mxu1 }
 0x10f   : > { %v366_v56 = vpop.f32.mrb[2].mxu0  ;;  %v483_v57 = vpop.f32.mrb[2].mxu1 }
 0x110   : > { %v511_v58 = vmax.f32 %v366_v56, %v483_v57  ;;  %v368_v59 = vpop.f32.mrb[3].mxu0  ;;  %v485_v60 = vpop.f32.mrb[3].mxu1 }
 0x115   : > { %v371_v61 = vpop.f32.mrb[4].mxu0  ;;  %v488_v62 = vpop.f32.mrb[4].mxu1 }
 0x116   : > { %v373_v63 = vpop.f32.mrb[5].mxu0  ;;  %v512_v0 = vmax.f32 %v371_v61, %v488_v62  ;;  %v490_v1 = vpop.f32.mrb[5].mxu1 }
 0x117   : > { %v374_v2 = vpop.f32.mrb[6].mxu0  ;;  %v491_v3 = vpop.f32.mrb[6].mxu1 }
 0x118   : > { %v376_v4 = vpop.f32.mrb[7].mxu0  ;;  %v513_v5 = vmax.f32 %v374_v2, %v491_v3  ;;  %v493_v6 = vpop.f32.mrb[7].mxu1 }
 0x11d   : > { %v1315_v7 = vpop.f32.mrb[8].mxu0  ;;  %v496_v8 = vpop.f32.mrb[8].mxu1 }
 0x11e   : > { %v381_v9 = vpop.f32.mrb[9].mxu0  ;;  %v514_v10 = vmax.f32 %v1315_v7, %v496_v8  ;;  %v498_v11 = vpop.f32.mrb[9].mxu1 }
 0x11f   : > { %v1318_v12 = vpop.f32.mrb[10].mxu0  ;;  %v1320_v13 = vpop.f32.mrb[10].mxu1 }
 0x120   : > { %v384_v14 = vpop.f32.mrb[11].mxu0  ;;  %v515_v15 = vmax.f32 %v1318_v12, %v1320_v13  ;;  %v501_v16 = vpop.f32.mrb[11].mxu1 }
 0x125   : > { %v1324_v17 = vpop.f32.mrb[12].mxu0  ;;  %v1326_v18 = vpop.f32.mrb[12].mxu1 }
 0x126   : > { %v389_v19 = vpop.f32.mrb[13].mxu0  ;;  %v516_v20 = vmax.f32 %v1324_v17, %v1326_v18  ;;  %v506_v21 = vpop.f32.mrb[13].mxu1  ;;  %v825_v18 = vld [vmem:[%s1341_s24 + $0x18] sm:$0x1] }
 0x127   : > { %v390_v22 = vpop.f32.mrb[14].mxu0  ;;  %v507_v23 = vpop.f32.mrb[14].mxu1 }
 0x128   : > { %v391_v24 = vpop.f32.mrb[15].mxu0  ;;  %v508_v25 = vpop.f32.mrb[15].mxu1 }
 0x141   : > { %v604_v26 = vpop.f32.mrb[16].mxu0  ;;  %v728_v27 = vpop.f32.mrb[16].mxu1 }
 0x142   : > { %v634_v28 = vmax.f32 %v510_v53, %v604_v26  ;;  %v606_v29 = vpop.f32.mrb[17].mxu0  ;;  %v730_v30 = vpop.f32.mrb[17].mxu1 }
 0x143   : > { %v607_v32 = vpop.f32.mrb[18].mxu0  ;;  %v731_v33 = vpop.f32.mrb[18].mxu1 }
 0x144   : > { %v758_v34 = vmax.f32 %v634_v28, %v728_v27  ;;  %v635_v35 = vmax.f32 %v511_v58, %v607_v32  ;;  %v609_v36 = vpop.f32.mrb[19].mxu0  ;;  %v733_v37 = vpop.f32.mrb[19].mxu1 }
 0x146   : > { %v772_v38 = vadd.f32 %v1333_v31, %v758_v34  ;;  %v759_v39 = vmax.f32 %v635_v35, %v731_v33 }
 0x148   : > { %v779_v40 = vmax.f32 %v772_v38, 0.0  ;;  %v773_v41 = vadd.f32 %v1333_v31, %v759_v39 }
 0x149   : > { %v612_v42 = vpop.f32.mrb[20].mxu0  ;;  %v736_v43 = vpop.f32.mrb[20].mxu1 }
 0x14a   : > { %v982_v44 = vpack.c.bf16 %v779_v40, %v779_v40  ;;  %v780_v45 = vmax.f32 %v773_v41, 0.0  ;;  %v636_v46 = vmax.f32 %v512_v0, %v612_v42  ;;  %v614_v47 = vpop.f32.mrb[21].mxu0  ;;  %v738_v48 = vpop.f32.mrb[21].mxu1 }
 0x14b   : > { %v615_v49 = vpop.f32.mrb[22].mxu0  ;;  %v739_v50 = vpop.f32.mrb[22].mxu1 }
 0x14c   : > { %816 = vst.msk [vmem:[%s1341_s24] sm:$0xf] %vm815_vm2, %v982_v44  ;;  %v983_v51 = vpack.c.bf16 %v780_v45, %v780_v45  ;;  %v760_v52 = vmax.f32 %v636_v46, %v736_v43  ;;  %v637_v53 = vmax.f32 %v513_v5, %v615_v49  ;;  %v617_v54 = vpop.f32.mrb[23].mxu0  ;;  %v741_v55 = vpop.f32.mrb[23].mxu1 }
 0x14e   : > { %817 = vst.msk [vmem:[%s1341_s24 + $0x4] sm:$0xf] %vm815_vm2, %v983_v51  ;;  %v774_v56 = vadd.f32 %v1333_v31, %v760_v52  ;;  %v761_v57 = vmax.f32 %v637_v53, %v739_v50 }
 0x150   : > { %v781_v58 = vmax.f32 %v774_v56, 0.0  ;;  %v775_v59 = vadd.f32 %v1333_v31, %v761_v57 }
 0x151   : > { %v620_v60 = vpop.f32.mrb[24].mxu0  ;;  %v744_v61 = vpop.f32.mrb[24].mxu1 }
 0x152   : > { %v984_v62 = vpack.c.bf16 %v781_v58, %v781_v58  ;;  %v782_v63 = vmax.f32 %v775_v59, 0.0  ;;  %v638_v0 = vmax.f32 %v514_v10, %v620_v60  ;;  %v622_v1 = vpop.f32.mrb[25].mxu0  ;;  %v746_v2 = vpop.f32.mrb[25].mxu1 }
 0x153   : > { %v623_v3 = vpop.f32.mrb[26].mxu0  ;;  %v747_v4 = vpop.f32.mrb[26].mxu1 }
 0x154   : > { %818 = vst.msk [vmem:[%s1341_s24 + $0x8] sm:$0xf] %vm815_vm2, %v984_v62  ;;  %v985_v5 = vpack.c.bf16 %v782_v63, %v782_v63  ;;  %v762_v6 = vmax.f32 %v638_v0, %v744_v61  ;;  %v639_v7 = vmax.f32 %v515_v15, %v623_v3  ;;  %v625_v8 = vpop.f32.mrb[27].mxu0  ;;  %v749_v9 = vpop.f32.mrb[27].mxu1 }
 0x156   : > { %819 = vst.msk [vmem:[%s1341_s24 + $0xc] sm:$0xf] %vm815_vm2, %v985_v5  ;;  %v776_v11 = vadd.f32 %v1333_v31, %v762_v6  ;;  %v763_v12 = vmax.f32 %v639_v7, %v747_v4 }
 0x158   : > { %v783_v13 = vmax.f32 %v776_v11, 0.0  ;;  %v777_v10 = vadd.f32 %v1333_v31, %v763_v12 }
 0x159   : > { %v628_v14 = vpop.f32.mrb[28].mxu0  ;;  %v752_v16 = vpop.f32.mrb[28].mxu1 }
 0x15a   : > { %v986_v19 = vpack.c.bf16 %v783_v13, %v783_v13  ;;  %v784_v21 = vmax.f32 %v777_v10, 0.0  ;;  %v640_v15 = vmax.f32 %v516_v20, %v628_v14  ;;  %v630_v22 = vpop.f32.mrb[29].mxu0  ;;  %v754_v23 = vpop.f32.mrb[29].mxu1 }
 0x15b   : > { %v631_v24 = vpop.f32.mrb[30].mxu0  ;;  %v755_v25 = vpop.f32.mrb[30].mxu1 }
 0x15c   : > { %820 = vst.msk [vmem:[%s1341_s24 + $0x10] sm:$0xf] %vm815_vm2, %v986_v19  ;;  %v987_v26 = vpack.c.bf16 %v784_v21, %v784_v21  ;;  %v764_v27 = vmax.f32 %v640_v15, %v752_v16  ;;  %v632_v28 = vpop.f32.mrb[31].mxu0  ;;  %v756_v29 = vpop.f32.mrb[31].mxu1 }
 0x15e   : > { %821 = vst.msk [vmem:[%s1341_s24 + $0x14] sm:$0xf] %vm815_vm2, %v987_v26  ;;  %v778_v30 = vadd.f32 %v1333_v31, %v764_v27 }
 0x160   : > { %v785_v17 = vmax.f32 %v778_v30, 0.0 }
 0x162   : > { %v988_v20 = vpack.c.bf16 %v785_v17, %v785_v17 }
 0x164   : > { %v826_v32 = vsel %vm824_vm5, %v988_v20, %v825_v18 }
 0x165   : > { %827 = vst [vmem:[%s1341_s24 + $0x18] sm:$0x1] %v826_v32 }
 0x166 PF: > { %s13_s12 = sadd.s32 1, %s1063_s12  }
 0x167   : > { %p10_p4 = scmp.ge.s32.totalorder %s13_s12, 4  }
 0x169   :  { %12 = sbr.rel (!%p10_p4) target bundleno = 1 (0x1), region = 65 }

// kernel: cnn_forward.5
= control target key start
LH: loop header
LB: loop body
LE: loop exit
PB: predicated region body
PF: predicated region fallthrough
CT: control target
= control target key end

     0   :  { %v614_v36 = vlaneseq  ;;  %v6178_v37 = vmov 1966171168   ;;  %s7966_s0 = inlined_call_operand.vmem [shape: bf16[2,1568], index: 0, kind: input, shape index: {}]   ;;  %s7967_s1 = inlined_call_operand.vmem [shape: bf16[1568,640], index: 1, kind: input, shape index: {}]   ;;  %s7968_s2 = inlined_call_operand.vmem [shape: f32[1,640], index: 2, kind: input, shape index: {}]   ;;  %s7969_s3 = inlined_call_operand.vmem [shape: bf16[640,128], index: 3, kind: input, shape index: {}]   ;;  %s7970_s4 = inlined_call_operand.vmem [shape: f32[1,128], index: 4, kind: input, shape index: {}]   ;;  %s7971_s5 = inlined_call_operand.hbm [shape: f32[2,128], index: 5, kind: output, shape index: {}]  }
   0x1   :  { %v5424_v0 = vld [vmem:[%s7967_s1 + $0x4] ss:$20 sps:$4 sm:$0xff]   ;;  %v5426_v1 = vld [vmem:[%s7967_s1 + $0xc] ss:$20 sps:$4 sm:$0xff]   ;;  %v5429_v3 = vld [vmem:[%s7967_s1 + $0x8] ss:$20 sps:$4 sm:$0xff]   ;;  %v643_v38 = vunpack.c.l.s4 %v6178_v37 }
   0x2   :  { %3293 = vmatprep.subr.bf16.mxu0 %v5424_v0  ;;  %v5428_v2 = vld [vmem:[%s7967_s1] ss:$20 sps:$4 sm:$0xff]   ;;  %3580 = vmatprep.subr.bf16.mxu1 %v5426_v1  ;;  %v5434_v6 = vld [vmem:[%s7967_s1 + $0x28] ss:$20 sps:$4 sm:$0xff]   ;;  %v5435_v7 = vld [vmem:[%s7967_s1 + $0x30] ss:$20 sps:$4 sm:$0xff]  }
   0x3   :  { %v5430_v4 = vld [vmem:[%s7967_s1 + $0x2c] ss:$20 sps:$4 sm:$0xff]   ;;  %3294 = vmatpush1.bf16.msra.mxu0 %v5428_v2  ;;  %3581 = vmatpush1.bf16.msra.mxu1 %v5429_v3  ;;  %v5432_v5 = vld [vmem:[%s7967_s1 + $0x34] ss:$20 sps:$4 sm:$0xff]   ;;  %v5438_v9 = vld [vmem:[%s7967_s1 + $0x5c] ss:$20 sps:$4 sm:$0xff]   ;;  %v644_v43 = vunpack.c.0.s8 %v643_v38 }
   0x4   :  { %3295 = vmatprep.subr.bf16.mxu0 %v5430_v4  ;;  %3582 = vmatprep.subr.bf16.mxu1 %v5432_v5  ;;  %v5436_v8 = vld [vmem:[%s7967_s1 + $0x54] ss:$20 sps:$4 sm:$0xff]   ;;  %v5440_v10 = vld [vmem:[%s7967_s1 + $0x50] ss:$20 sps:$4 sm:$0xff]   ;;  %v5441_v11 = vld [vmem:[%s7967_s1 + $0x58] ss:$20 sps:$4 sm:$0xff]  }
   0x5   :  { %v5442_v12 = vld [vmem:[%s7967_s1 + $0x7c] ss:$20 sps:$4 sm:$0xff]   ;;  %v5444_v13 = vld [vmem:[%s7967_s1 + $0x84] ss:$20 sps:$4 sm:$0xff]   ;;  %v5447_v15 = vld [vmem:[%s7967_s1 + $0x80] ss:$20 sps:$4 sm:$0xff]  }
   0x6   :  { %v5446_v14 = vld [vmem:[%s7967_s1 + $0x78] ss:$20 sps:$4 sm:$0xff]   ;;  %v5452_v18 = vld [vmem:[%s7967_s1 + $0xa0] ss:$20 sps:$4 sm:$0xff]   ;;  %v5453_v19 = vld [vmem:[%s7967_s1 + $0xa8] ss:$20 sps:$4 sm:$0xff]  }
   0x7   :  { %3296 = vmatpush1.bf16.msra.mxu0 %v5434_v6  ;;  %3583 = vmatpush1.bf16.msra.mxu1 %v5435_v7  ;;  %v5448_v16 = vld [vmem:[%s7967_s1 + $0xa4] ss:$20 sps:$4 sm:$0xff]   ;;  %v5450_v17 = vld [vmem:[%s7967_s1 + $0xac] ss:$20 sps:$4 sm:$0xff]   ;;  %v5456_v21 = vld [vmem:[%s7967_s1 + $0xd4] ss:$20 sps:$4 sm:$0xff]  }
   0x8   :  { %3297 = vmatprep.subr.bf16.mxu0 %v5436_v8  ;;  %3584 = vmatprep.subr.bf16.mxu1 %v5438_v9  ;;  %v5454_v20 = vld [vmem:[%s7967_s1 + $0xcc] ss:$20 sps:$4 sm:$0xff]   ;;  %v5458_v22 = vld [vmem:[%s7967_s1 + $0xc8] ss:$20 sps:$4 sm:$0xff]   ;;  %v5459_v23 = vld [vmem:[%s7967_s1 + $0xd0] ss:$20 sps:$4 sm:$0xff]  }
   0x9   :  { %v5460_v24 = vld [vmem:[%s7967_s1 + $0xf4] ss:$20 sps:$4 sm:$0xff]   ;;  %v5462_v25 = vld [vmem:[%s7967_s1 + $0xfc] ss:$20 sps:$4 sm:$0xff]   ;;  %v5465_v27 = vld [vmem:[%s7967_s1 + $0xf8] ss:$20 sps:$4 sm:$0xff]  }
   0xa   :  { %v5464_v26 = vld [vmem:[%s7967_s1 + $0xf0] ss:$20 sps:$4 sm:$0xff]   ;;  %v5470_v30 = vld [vmem:[%s7967_s1 + $0x118] ss:$20 sps:$4 sm:$0xff]   ;;  %v5471_v31 = vld [vmem:[%s7967_s1 + $0x120] ss:$20 sps:$4 sm:$0xff]  }
   0xb   :  { %3298 = vmatpush1.bf16.msra.mxu0 %v5440_v10  ;;  %3585 = vmatpush1.bf16.msra.mxu1 %v5441_v11  ;;  %v5466_v28 = vld [vmem:[%s7967_s1 + $0x11c] ss:$20 sps:$4 sm:$0xff]   ;;  %v5468_v29 = vld [vmem:[%s7967_s1 + $0x124] ss:$20 sps:$4 sm:$0xff]   ;;  %v5474_v33 = vld [vmem:[%s7967_s1 + $0x14c] ss:$20 sps:$4 sm:$0xff]  }
   0xc   :  { %3299 = vmatprep.subr.bf16.mxu0 %v5442_v12  ;;  %3586 = vmatprep.subr.bf16.mxu1 %v5444_v13  ;;  %v5472_v32 = vld [vmem:[%s7967_s1 + $0x144] ss:$20 sps:$4 sm:$0xff]   ;;  %v5476_v34 = vld [vmem:[%s7967_s1 + $0x140] ss:$20 sps:$4 sm:$0xff]   ;;  %v5477_v35 = vld [vmem:[%s7967_s1 + $0x148] ss:$20 sps:$4 sm:$0xff]  }
   0xd   :  { %v5478_v39 = vld [vmem:[%s7967_s1 + $0x16c] ss:$20 sps:$4 sm:$0xff]   ;;  %v5480_v40 = vld [vmem:[%s7967_s1 + $0x174] ss:$20 sps:$4 sm:$0xff]   ;;  %v6330_v42 = vshrl.u32 %v614_v36, 7 }
   0xe   :  { %v5482_v41 = vld [vmem:[%s7967_s1 + $0x168] ss:$20 sps:$4 sm:$0xff]   ;;  %v5483_v44 = vld [vmem:[%s7967_s1 + $0x170] ss:$20 sps:$4 sm:$0xff]   ;;  %v5489_v48 = vld [vmem:[%s7967_s1 + $0x198] ss:$20 sps:$4 sm:$0xff]  }
   0xf   :  { %3300 = vmatpush1.bf16.msra.mxu0 %v5446_v14  ;;  %3587 = vmatpush1.bf16.msra.mxu1 %v5447_v15  ;;  %v5484_v45 = vld [vmem:[%s7967_s1 + $0x194] ss:$20 sps:$4 sm:$0xff]   ;;  %v5486_v46 = vld [vmem:[%s7967_s1 + $0x19c] ss:$20 sps:$4 sm:$0xff]   ;;  %v6348_v49 = vsub.s32 %v644_v43, %v6330_v42  ;;  %v5492_v51 = vld [vmem:[%s7967_s1 + $0x1c4] ss:$20 sps:$4 sm:$0xff]  }
  0x10   :  { %3301 = vmatprep.subr.bf16.mxu0 %v5448_v16  ;;  %3588 = vmatprep.subr.bf16.mxu1 %v5450_v17  ;;  %v5488_v47 = vld [vmem:[%s7967_s1 + $0x190] ss:$20 sps:$4 sm:$0xff]   ;;  %v5494_v53 = vld [vmem:[%s7967_s1 + $0x1b8] ss:$20 sps:$4 sm:$0xff]   ;;  %v5495_v55 = vld [vmem:[%s7967_s1 + $0x1c0] ss:$20 sps:$4 sm:$0xff]  }
  0x11   :  { %v5490_v50 = vld [vmem:[%s7967_s1 + $0x1bc] ss:$20 sps:$4 sm:$0xff]   ;;  %v6359_v52 = vld [vmem:[%s7966_s0] sm:$0xff]  ;;  %v5504_v63 = vld [vmem:[%s7967_s1 + $0x214] ss:$20 sps:$4 sm:$0xff]  }
  0x12   :  { %v648_v54 = vrot.slane %v6359_v52, %v6348_v49  ;;  %v5496_v56 = vld [vmem:[%s7967_s1 + $0x1e4] ss:$20 sps:$4 sm:$0xff]   ;;  %v5498_v57 = vld [vmem:[%s7967_s1 + $0x1ec] ss:$20 sps:$4 sm:$0xff]   ;;  %v5501_v61 = vld [vmem:[%s7967_s1 + $0x1e8] ss:$20 sps:$4 sm:$0xff]  }
  0x13   :  { %3302 = vmatpush1.bf16.msra.mxu0 %v5452_v18  ;;  %3589 = vmatpush1.bf16.msra.mxu1 %v5453_v19  ;;  %v5500_v59 = vld [vmem:[%s7967_s1 + $0x1e0] ss:$20 sps:$4 sm:$0xff]   ;;  %v5506_v0 = vld [vmem:[%s7967_s1 + $0x208] ss:$20 sps:$4 sm:$0xff]   ;;  %v5507_v1 = vld [vmem:[%s7967_s1 + $0x210] ss:$20 sps:$4 sm:$0xff]  }
  0x14   :  { %3303 = vmatprep.subr.bf16.mxu0 %v5454_v20  ;;  %3590 = vmatprep.subr.bf16.mxu1 %v5456_v21  ;;  %v656_v58 = vcombine.high %v648_v54, %v648_v54  ;;  %v5502_v62 = vld [vmem:[%s7967_s1 + $0x20c] ss:$20 sps:$4 sm:$0xff]   ;;  %v5508_v2 = vld [vmem:[%s7967_s1 + $0x234] ss:$20 sps:$4 sm:$0xff]   ;;  %v5510_v3 = vld [vmem:[%s7967_s1 + $0x23c] ss:$20 sps:$4 sm:$0xff]   ;;  %v6432_v13 = vrot.slane %v648_v54, %v6348_v49 }
  0x15   :  { %v5512_v4 = vld [vmem:[%s7967_s1 + $0x230] ss:$20 sps:$4 sm:$0xff]   ;;  %v5513_v5 = vld [vmem:[%s7967_s1 + $0x238] ss:$20 sps:$4 sm:$0xff]   ;;  %v5519_v9 = vld [vmem:[%s7967_s1 + $0x260] ss:$20 sps:$4 sm:$0xff]  }
  0x16   :  { %v6379_v60 = vrot.slane %v656_v58, %v6348_v49  ;;  %v5514_v6 = vld [vmem:[%s7967_s1 + $0x25c] ss:$20 sps:$4 sm:$0xff]   ;;  %v5516_v7 = vld [vmem:[%s7967_s1 + $0x264] ss:$20 sps:$4 sm:$0xff]   ;;  %v5525_v11 = vld [vmem:[%s7967_s1 + $0x28c] ss:$20 sps:$4 sm:$0xff]  }
  0x17   :  { %3304 = vmatpush1.bf16.msra.mxu0 %v5458_v22  ;;  %3591 = vmatpush1.bf16.msra.mxu1 %v5459_v23  ;;  %v5518_v8 = vld [vmem:[%s7967_s1 + $0x258] ss:$20 sps:$4 sm:$0xff]   ;;  %v5520_v12 = vld [vmem:[%s7967_s1 + $0x280] ss:$20 sps:$4 sm:$0xff]   ;;  %v5523_v14 = vld [vmem:[%s7967_s1 + $0x288] ss:$20 sps:$4 sm:$0xff]  }
  0x18   :  { %3305 = vmatprep.subr.bf16.mxu0 %v5460_v24  ;;  %3592 = vmatprep.subr.bf16.mxu1 %v5462_v25  ;;  %v5522_v10 = vld [vmem:[%s7967_s1 + $0x284] ss:$20 sps:$4 sm:$0xff]   ;;  %v5528_v15 = vld [vmem:[%s7967_s1 + $0x2ac] ss:$20 sps:$4 sm:$0xff]   ;;  %v5531_v16 = vld [vmem:[%s7967_s1 + $0x2b4] ss:$20 sps:$4 sm:$0xff]   ;;  %v6445_v17 = vcombine.high %v6379_v60, %v6379_v60 }
  0x19   :  { %3325 = vmatprep.mubr.bf16.mxu0 %v6379_v60  ;;  %3612 = vmatprep.mubr.bf16.mxu1 %v6379_v60  ;;  %v5526_v18 = vld [vmem:[%s7967_s1 + $0x2a8] ss:$20 sps:$4 sm:$0xff]   ;;  %v5529_v19 = vld [vmem:[%s7967_s1 + $0x2b0] ss:$20 sps:$4 sm:$0xff]   ;;  %v5535_v23 = vld [vmem:[%s7967_s1 + $0x2d8] ss:$20 sps:$4 sm:$0xff]  }
  0x1a   :  { %v5534_v20 = vld [vmem:[%s7967_s1 + $0x2d4] ss:$20 sps:$4 sm:$0xff]   ;;  %v5537_v21 = vld [vmem:[%s7967_s1 + $0x2dc] ss:$20 sps:$4 sm:$0xff]   ;;  %v5543_v25 = vld [vmem:[%s7967_s1 + $0x304] ss:$20 sps:$4 sm:$0xff]  }
  0x1b   :  { %3306 = vmatpush1.bf16.msra.mxu0 %v5464_v26  ;;  %3593 = vmatpush1.bf16.msra.mxu1 %v5465_v27  ;;  %v5532_v22 = vld [vmem:[%s7967_s1 + $0x2d0] ss:$20 sps:$4 sm:$0xff]   ;;  %v5538_v26 = vld [vmem:[%s7967_s1 + $0x2f8] ss:$20 sps:$4 sm:$0xff]   ;;  %v5541_v27 = vld [vmem:[%s7967_s1 + $0x300] ss:$20 sps:$4 sm:$0xff]  }
  0x1c   :  { %3307 = vmatprep.subr.bf16.mxu0 %v5466_v28  ;;  %3594 = vmatprep.subr.bf16.mxu1 %v5468_v29  ;;  %v5540_v24 = vld [vmem:[%s7967_s1 + $0x2fc] ss:$20 sps:$4 sm:$0xff]   ;;  %v5546_v28 = vld [vmem:[%s7967_s1 + $0x324] ss:$20 sps:$4 sm:$0xff]   ;;  %v5549_v29 = vld [vmem:[%s7967_s1 + $0x32c] ss:$20 sps:$4 sm:$0xff]  }
  0x1d   :  { %v5558_v36 = vld [vmem:[%s7967_s1 + $0x374] ss:$20 sps:$4 sm:$0xff]   ;;  %v5561_v37 = vld [vmem:[%s7967_s1 + $0x37c] ss:$20 sps:$4 sm:$0xff]   ;;  %v5562_v43 = vld [vmem:[%s7967_s1 + $0x398] ss:$20 sps:$4 sm:$0xff]  }
  0x1e   :  { %v5556_v38 = vld [vmem:[%s7967_s1 + $0x370] ss:$20 sps:$4 sm:$0xff]   ;;  %v5583_v58 = vld [vmem:[%s7967_s1 + $0x418] ss:$20 sps:$4 sm:$0xff]  }
  0x1f   :  { %3308 = vmatpush1.bf16.msra.mxu0 %v5470_v30  ;;  %3595 = vmatpush1.bf16.msra.mxu1 %v5471_v31  ;;  %v5544_v30 = vld [vmem:[%s7967_s1 + $0x320] ss:$20 sps:$4 sm:$0xff]   ;;  %v5547_v31 = vld [vmem:[%s7967_s1 + $0x328] ss:$20 sps:$4 sm:$0xff]   ;;  %v5577_v54 = vld [vmem:[%s7967_s1 + $0x3f0] ss:$20 sps:$4 sm:$0xff]  }
  0x20   :  { %3309 = vmatprep.subr.bf16.mxu0 %v5472_v32  ;;  %3596 = vmatprep.subr.bf16.mxu1 %v5474_v33  ;;  %v5552_v32 = vld [vmem:[%s7967_s1 + $0x34c] ss:$20 sps:$4 sm:$0xff]   ;;  %v5555_v33 = vld [vmem:[%s7967_s1 + $0x354] ss:$20 sps:$4 sm:$0xff]  }
  0x23   :  { %3310 = vmatpush1.bf16.msra.mxu0 %v5476_v34  ;;  %3597 = vmatpush1.bf16.msra.mxu1 %v5477_v35  ;;  %v5550_v34 = vld [vmem:[%s7967_s1 + $0x348] ss:$20 sps:$4 sm:$0xff]   ;;  %v5553_v35 = vld [vmem:[%s7967_s1 + $0x350] ss:$20 sps:$4 sm:$0xff]  }
  0x24   :  { %3311 = vmatprep.subr.bf16.mxu0 %v5478_v39  ;;  %3598 = vmatprep.subr.bf16.mxu1 %v5480_v40  ;;  %v5559_v39 = vld [vmem:[%s7967_s1 + $0x378] ss:$20 sps:$4 sm:$0xff]   ;;  %v5564_v40 = vld [vmem:[%s7967_s1 + $0x39c] ss:$20 sps:$4 sm:$0xff]  }
  0x27   :  { %3312 = vmatpush1.bf16.msra.mxu0 %v5482_v41  ;;  %3599 = vmatpush1.bf16.msra.mxu1 %v5483_v44  ;;  %v5567_v41 = vld [vmem:[%s7967_s1 + $0x3a4] ss:$20 sps:$4 sm:$0xff]   ;;  %v5565_v44 = vld [vmem:[%s7967_s1 + $0x3a0] ss:$20 sps:$4 sm:$0xff]  }
  0x28   :  { %3313 = vmatprep.subr.bf16.mxu0 %v5484_v45  ;;  %3600 = vmatprep.subr.bf16.mxu1 %v5486_v46  ;;  %v5570_v45 = vld [vmem:[%s7967_s1 + $0x3c4] ss:$20 sps:$4 sm:$0xff]   ;;  %v5573_v46 = vld [vmem:[%s7967_s1 + $0x3cc] ss:$20 sps:$4 sm:$0xff]  }
  0x2b   :  { %3314 = vmatpush1.bf16.msra.mxu0 %v5488_v47  ;;  %3601 = vmatpush1.bf16.msra.mxu1 %v5489_v48  ;;  %v5568_v47 = vld [vmem:[%s7967_s1 + $0x3c0] ss:$20 sps:$4 sm:$0xff]   ;;  %v5571_v48 = vld [vmem:[%s7967_s1 + $0x3c8] ss:$20 sps:$4 sm:$0xff]  }
  0x2c   :  { %3315 = vmatprep.subr.bf16.mxu0 %v5490_v50  ;;  %3602 = vmatprep.subr.bf16.mxu1 %v5492_v51  ;;  %v5576_v50 = vld [vmem:[%s7967_s1 + $0x3ec] ss:$20 sps:$4 sm:$0xff]   ;;  %v5579_v51 = vld [vmem:[%s7967_s1 + $0x3f4] ss:$20 sps:$4 sm:$0xff]  }
  0x2f   :  { %3316 = vmatpush1.bf16.msra.mxu0 %v5494_v53  ;;  %3603 = vmatpush1.bf16.msra.mxu1 %v5495_v55  ;;  %v5574_v53 = vld [vmem:[%s7967_s1 + $0x3e8] ss:$20 sps:$4 sm:$0xff]  }
  0x30   :  { %3317 = vmatprep.subr.bf16.mxu0 %v5496_v56  ;;  %3604 = vmatprep.subr.bf16.mxu1 %v5498_v57  ;;  %v5582_v55 = vld [vmem:[%s7967_s1 + $0x414] ss:$20 sps:$4 sm:$0xff]   ;;  %v5585_v56 = vld [vmem:[%s7967_s1 + $0x41c] ss:$20 sps:$4 sm:$0xff]  }
  0x31   :  { %v5580_v57 = vld [vmem:[%s7967_s1 + $0x410] ss:$20 sps:$4 sm:$0xff]  }
  0x33   :  { %3318 = vmatpush1.bf16.msra.mxu0 %v5500_v59  ;;  %3605 = vmatpush1.bf16.msra.mxu1 %v5501_v61  ;;  %v5588_v59 = vld [vmem:[%s7967_s1 + $0x43c] ss:$20 sps:$4 sm:$0xff]   ;;  %v5591_v61 = vld [vmem:[%s7967_s1 + $0x444] ss:$20 sps:$4 sm:$0xff]  }
  0x34   :  { %3319 = vmatprep.subr.bf16.mxu0 %v5502_v62  ;;  %3606 = vmatprep.subr.bf16.mxu1 %v5504_v63  ;;  %v5586_v62 = vld [vmem:[%s7967_s1 + $0x438] ss:$20 sps:$4 sm:$0xff]   ;;  %v5589_v63 = vld [vmem:[%s7967_s1 + $0x440] ss:$20 sps:$4 sm:$0xff]  }
  0x37   :  { %3320 = vmatpush1.bf16.msra.mxu0 %v5506_v0  ;;  %3607 = vmatpush1.bf16.msra.mxu1 %v5507_v1  ;;  %v5594_v0 = vld [vmem:[%s7967_s1 + $0x464] ss:$20 sps:$4 sm:$0xff]   ;;  %v5597_v1 = vld [vmem:[%s7967_s1 + $0x46c] ss:$20 sps:$4 sm:$0xff]  }
  0x38   :  { %3321 = vmatprep.subr.bf16.mxu0 %v5508_v2  ;;  %3608 = vmatprep.subr.bf16.mxu1 %v5510_v3  ;;  %v5592_v2 = vld [vmem:[%s7967_s1 + $0x460] ss:$20 sps:$4 sm:$0xff]   ;;  %v5595_v3 = vld [vmem:[%s7967_s1 + $0x468] ss:$20 sps:$4 sm:$0xff]  }
  0x3b   :  { %3322 = vmatpush1.bf16.msra.mxu0 %v5512_v4  ;;  %3609 = vmatpush1.bf16.msra.mxu1 %v5513_v5  ;;  %v5600_v4 = vld [vmem:[%s7967_s1 + $0x48c] ss:$20 sps:$4 sm:$0xff]   ;;  %v5603_v5 = vld [vmem:[%s7967_s1 + $0x494] ss:$20 sps:$4 sm:$0xff]  }
  0x3c   :  { %3323 = vmatprep.subr.bf16.mxu0 %v5514_v6  ;;  %3610 = vmatprep.subr.bf16.mxu1 %v5516_v7  ;;  %v5598_v6 = vld [vmem:[%s7967_s1 + $0x488] ss:$20 sps:$4 sm:$0xff]   ;;  %v5601_v7 = vld [vmem:[%s7967_s1 + $0x490] ss:$20 sps:$4 sm:$0xff]  }
  0x3f   :  { %3324 = vmatpush1.bf16.msra.mxu0 %v5518_v8  ;;  %3611 = vmatpush1.bf16.msra.mxu1 %v5519_v9  ;;  %v5606_v8 = vld [vmem:[%s7967_s1 + $0x4b4] ss:$20 sps:$4 sm:$0xff]   ;;  %v5609_v9 = vld [vmem:[%s7967_s1 + $0x4bc] ss:$20 sps:$4 sm:$0xff]  }
  0x40   :  { %3334 = vmatprep.subr.bf16.mxu0 %v5522_v10  ;;  %3621 = vmatprep.subr.bf16.mxu1 %v5525_v11  ;;  %v641_v10 = vcombine.high %v6359_v52, %v6359_v52  ;;  %v5604_v11 = vld [vmem:[%s7967_s1 + $0x4b0] ss:$20 sps:$4 sm:$0xff]  }
  0x41   :  { %v5615_v52 = vld [vmem:[%s7967_s1 + $0x4e4] ss:$20 sps:$4 sm:$0xff]  }
  0x42   :  { %3326 = vmatmul.mubr.bf16.vlgmr.msra.gmra.mrb[0].mxu0 %v6432_v13  ;;  %3613 = vmatmul.mubr.bf16.vlgmr.msra.gmra.mrb[0].mxu1 %v6432_v13 }
  0x43   :  { %3335 = vmatpush1.bf16.msra.mxu0 %v5520_v12  ;;  %3622 = vmatpush1.bf16.msra.mxu1 %v5523_v14  ;;  %v5607_v12 = vld [vmem:[%s7967_s1 + $0x4b8] ss:$20 sps:$4 sm:$0xff]   ;;  %v5612_v14 = vld [vmem:[%s7967_s1 + $0x4dc] ss:$20 sps:$4 sm:$0xff]  }
  0x44   :  { %3336 = vmatprep.subr.bf16.mxu0 %v5528_v15  ;;  %3623 = vmatprep.subr.bf16.mxu1 %v5531_v16  ;;  %v6622_v15 = vrot.slane %v641_v10, %v6348_v49  ;;  %v5610_v16 = vld [vmem:[%s7967_s1 + $0x4d8] ss:$20 sps:$4 sm:$0xff]  }
  0x45   :  { %3366 = vmatprep.mubr.bf16.mxu0 %v6445_v17  ;;  %3653 = vmatprep.mubr.bf16.mxu1 %v6445_v17  ;;  %v5690_v10 = vld [vmem:[%s7967_s1 + $0x6e4] ss:$20 sps:$4 sm:$0xff]  }
  0x47   :  { %3337 = vmatpush1.bf16.msra.mxu0 %v5526_v18  ;;  %3624 = vmatpush1.bf16.msra.mxu1 %v5529_v19  ;;  %v5613_v18 = vld [vmem:[%s7967_s1 + $0x4e0] ss:$20 sps:$4 sm:$0xff]   ;;  %v5618_v19 = vld [vmem:[%s7967_s1 + $0x504] ss:$20 sps:$4 sm:$0xff]  }
  0x48   :  { %3338 = vmatprep.subr.bf16.mxu0 %v5534_v20  ;;  %3625 = vmatprep.subr.bf16.mxu1 %v5537_v21  ;;  %v5621_v20 = vld [vmem:[%s7967_s1 + $0x50c] ss:$20 sps:$4 sm:$0xff]   ;;  %v657_v21 = vcombine.high %v6622_v15, %v6622_v15 }
  0x4b   :  { %3339 = vmatpush1.bf16.msra.mxu0 %v5532_v22  ;;  %3626 = vmatpush1.bf16.msra.mxu1 %v5535_v23  ;;  %v5616_v22 = vld [vmem:[%s7967_s1 + $0x500] ss:$20 sps:$4 sm:$0xff]   ;;  %v6643_v23 = vcombine.high %v6432_v13, %v6432_v13 }
  0x4c   :  { %3340 = vmatprep.subr.bf16.mxu0 %v5540_v24  ;;  %3627 = vmatprep.subr.bf16.mxu1 %v5543_v25  ;;  %v5619_v24 = vld [vmem:[%s7967_s1 + $0x508] ss:$20 sps:$4 sm:$0xff]   ;;  %v5624_v25 = vld [vmem:[%s7967_s1 + $0x52c] ss:$20 sps:$4 sm:$0xff]  }
  0x4f   :  { %3341 = vmatpush1.bf16.msra.mxu0 %v5538_v26  ;;  %3628 = vmatpush1.bf16.msra.mxu1 %v5541_v27  ;;  %v5627_v26 = vld [vmem:[%s7967_s1 + $0x534] ss:$20 sps:$4 sm:$0xff]   ;;  %v6655_v27 = vrot.slane %v657_v21, %v6348_v49  ;;  %v5705_v21 = vld [vmem:[%s7967_s1 + $0x73c] ss:$20 sps:$4 sm:$0xff]  }
  0x50   :  { %3342 = vmatprep.subr.bf16.mxu0 %v5546_v28  ;;  %3629 = vmatprep.subr.bf16.mxu1 %v5549_v29  ;;  %v5622_v28 = vld [vmem:[%s7967_s1 + $0x528] ss:$20 sps:$4 sm:$0xff]   ;;  %v5625_v29 = vld [vmem:[%s7967_s1 + $0x530] ss:$20 sps:$4 sm:$0xff]  }
  0x53   :  { %3343 = vmatpush1.bf16.msra.mxu0 %v5544_v30  ;;  %3630 = vmatpush1.bf16.msra.mxu1 %v5547_v31  ;;  %v5630_v30 = vld [vmem:[%s7967_s1 + $0x554] ss:$20 sps:$4 sm:$0xff]   ;;  %v5633_v31 = vld [vmem:[%s7967_s1 + $0x55c] ss:$20 sps:$4 sm:$0xff]  }
  0x54   :  { %3344 = vmatprep.subr.bf16.mxu0 %v5552_v32  ;;  %3631 = vmatprep.subr.bf16.mxu1 %v5555_v33  ;;  %v5628_v32 = vld [vmem:[%s7967_s1 + $0x550] ss:$20 sps:$4 sm:$0xff]   ;;  %v5631_v33 = vld [vmem:[%s7967_s1 + $0x558] ss:$20 sps:$4 sm:$0xff]  }
  0x57   :  { %3345 = vmatpush1.bf16.msra.mxu0 %v5550_v34  ;;  %3632 = vmatpush1.bf16.msra.mxu1 %v5553_v35  ;;  %v5636_v34 = vld [vmem:[%s7967_s1 + $0x57c] ss:$20 sps:$4 sm:$0xff]   ;;  %v5639_v35 = vld [vmem:[%s7967_s1 + $0x584] ss:$20 sps:$4 sm:$0xff]  }
  0x58   :  { %3346 = vmatprep.subr.bf16.mxu0 %v5558_v36  ;;  %3633 = vmatprep.subr.bf16.mxu1 %v5561_v37  ;;  %v5634_v36 = vld [vmem:[%s7967_s1 + $0x578] ss:$20 sps:$4 sm:$0xff]   ;;  %v5637_v37 = vld [vmem:[%s7967_s1 + $0x580] ss:$20 sps:$4 sm:$0xff]  }
  0x5b   :  { %3347 = vmatpush1.bf16.msra.mxu0 %v5556_v38  ;;  %3634 = vmatpush1.bf16.msra.mxu1 %v5559_v39  ;;  %v5642_v38 = vld [vmem:[%s7967_s1 + $0x5a4] ss:$20 sps:$4 sm:$0xff]   ;;  %v5645_v39 = vld [vmem:[%s7967_s1 + $0x5ac] ss:$20 sps:$4 sm:$0xff]  }
  0x5c   :  { %3348 = vmatprep.subr.bf16.mxu0 %v5564_v40  ;;  %3635 = vmatprep.subr.bf16.mxu1 %v5567_v41  ;;  %v5640_v40 = vld [vmem:[%s7967_s1 + $0x5a0] ss:$20 sps:$4 sm:$0xff]   ;;  %v5643_v41 = vld [vmem:[%s7967_s1 + $0x5a8] ss:$20 sps:$4 sm:$0xff]  }
  0x5f   :  { %3349 = vmatpush1.bf16.msra.mxu0 %v5562_v43  ;;  %3636 = vmatpush1.bf16.msra.mxu1 %v5565_v44  ;;  %v5648_v43 = vld [vmem:[%s7967_s1 + $0x5cc] ss:$20 sps:$4 sm:$0xff]   ;;  %v5651_v44 = vld [vmem:[%s7967_s1 + $0x5d4] ss:$20 sps:$4 sm:$0xff]  }
  0x60   :  { %3350 = vmatprep.subr.bf16.mxu0 %v5570_v45  ;;  %3637 = vmatprep.subr.bf16.mxu1 %v5573_v46  ;;  %v5646_v45 = vld [vmem:[%s7967_s1 + $0x5c8] ss:$20 sps:$4 sm:$0xff]   ;;  %v5649_v46 = vld [vmem:[%s7967_s1 + $0x5d0] ss:$20 sps:$4 sm:$0xff]  }
  0x63   :  { %3351 = vmatpush1.bf16.msra.mxu0 %v5568_v47  ;;  %3638 = vmatpush1.bf16.msra.mxu1 %v5571_v48  ;;  %v5654_v47 = vld [vmem:[%s7967_s1 + $0x5f4] ss:$20 sps:$4 sm:$0xff]   ;;  %v5657_v48 = vld [vmem:[%s7967_s1 + $0x5fc] ss:$20 sps:$4 sm:$0xff]  }
  0x64   :  { %3352 = vmatprep.subr.bf16.mxu0 %v5576_v50  ;;  %3639 = vmatprep.subr.bf16.mxu1 %v5579_v51  ;;  %v5652_v50 = vld [vmem:[%s7967_s1 + $0x5f0] ss:$20 sps:$4 sm:$0xff]   ;;  %v5655_v51 = vld [vmem:[%s7967_s1 + $0x5f8] ss:$20 sps:$4 sm:$0xff]  }
  0x67   :  { %3353 = vmatpush1.bf16.msra.mxu0 %v5574_v53  ;;  %3640 = vmatpush1.bf16.msra.mxu1 %v5577_v54  ;;  %v5660_v53 = vld [vmem:[%s7967_s1 + $0x61c] ss:$20 sps:$4 sm:$0xff]   ;;  %v5663_v54 = vld [vmem:[%s7967_s1 + $0x624] ss:$20 sps:$4 sm:$0xff]  }
  0x68   :  { %3354 = vmatprep.subr.bf16.mxu0 %v5582_v55  ;;  %3641 = vmatprep.subr.bf16.mxu1 %v5585_v56  ;;  %v5658_v55 = vld [vmem:[%s7967_s1 + $0x618] ss:$20 sps:$4 sm:$0xff]   ;;  %v5661_v56 = vld [vmem:[%s7967_s1 + $0x620] ss:$20 sps:$4 sm:$0xff]  }
  0x6b   :  { %3355 = vmatpush1.bf16.msra.mxu0 %v5580_v57  ;;  %3642 = vmatpush1.bf16.msra.mxu1 %v5583_v58  ;;  %v5666_v57 = vld [vmem:[%s7967_s1 + $0x644] ss:$20 sps:$4 sm:$0xff]   ;;  %v5669_v58 = vld [vmem:[%s7967_s1 + $0x64c] ss:$20 sps:$4 sm:$0xff]  }
  0x6c   :  { %3356 = vmatprep.subr.bf16.mxu0 %v5588_v59  ;;  %3643 = vmatprep.subr.bf16.mxu1 %v5591_v61  ;;  %v5664_v59 = vld [vmem:[%s7967_s1 + $0x640] ss:$20 sps:$4 sm:$0xff]   ;;  %v5667_v61 = vld [vmem:[%s7967_s1 + $0x648] ss:$20 sps:$4 sm:$0xff]  }
  0x6f   :  { %3357 = vmatpush1.bf16.msra.mxu0 %v5586_v62  ;;  %3644 = vmatpush1.bf16.msra.mxu1 %v5589_v63  ;;  %v5672_v62 = vld [vmem:[%s7967_s1 + $0x66c] ss:$20 sps:$4 sm:$0xff]   ;;  %v5675_v63 = vld [vmem:[%s7967_s1 + $0x674] ss:$20 sps:$4 sm:$0xff]  }
  0x70   :  { %3358 = vmatprep.subr.bf16.mxu0 %v5594_v0  ;;  %3645 = vmatprep.subr.bf16.mxu1 %v5597_v1  ;;  %v5670_v0 = vld [vmem:[%s7967_s1 + $0x668] ss:$20 sps:$4 sm:$0xff]   ;;  %v5673_v1 = vld [vmem:[%s7967_s1 + $0x670] ss:$20 sps:$4 sm:$0xff]  }
  0x73   :  { %3359 = vmatpush1.bf16.msra.mxu0 %v5592_v2  ;;  %3646 = vmatpush1.bf16.msra.mxu1 %v5595_v3  ;;  %v5678_v2 = vld [vmem:[%s7967_s1 + $0x694] ss:$20 sps:$4 sm:$0xff]   ;;  %v5681_v3 = vld [vmem:[%s7967_s1 + $0x69c] ss:$20 sps:$4 sm:$0xff]  }
  0x74   :  { %3360 = vmatprep.subr.bf16.mxu0 %v5600_v4  ;;  %3647 = vmatprep.subr.bf16.mxu1 %v5603_v5  ;;  %v5676_v4 = vld [vmem:[%s7967_s1 + $0x690] ss:$20 sps:$4 sm:$0xff]   ;;  %v5679_v5 = vld [vmem:[%s7967_s1 + $0x698] ss:$20 sps:$4 sm:$0xff]  }
  0x77   :  { %3361 = vmatpush1.bf16.msra.mxu0 %v5598_v6  ;;  %3648 = vmatpush1.bf16.msra.mxu1 %v5601_v7  ;;  %v5684_v6 = vld [vmem:[%s7967_s1 + $0x6bc] ss:$20 sps:$4 sm:$0xff]   ;;  %v5687_v7 = vld [vmem:[%s7967_s1 + $0x6c4] ss:$20 sps:$4 sm:$0xff]  }
  0x78   :  { %3362 = vmatprep.subr.bf16.mxu0 %v5606_v8  ;;  %3649 = vmatprep.subr.bf16.mxu1 %v5609_v9  ;;  %v5682_v8 = vld [vmem:[%s7967_s1 + $0x6b8] ss:$20 sps:$4 sm:$0xff]   ;;  %v5685_v9 = vld [vmem:[%s7967_s1 + $0x6c0] ss:$20 sps:$4 sm:$0xff]  }
  0x7b   :  { %3363 = vmatpush1.bf16.msra.mxu0 %v5604_v11  ;;  %3650 = vmatpush1.bf16.msra.mxu1 %v5607_v12  ;;  %v5693_v11 = vld [vmem:[%s7967_s1 + $0x6ec] ss:$20 sps:$4 sm:$0xff]  }
  0x7c   :  { %3364 = vmatprep.subr.bf16.mxu0 %v5612_v14  ;;  %3651 = vmatprep.subr.bf16.mxu1 %v5615_v52  ;;  %v5688_v12 = vld [vmem:[%s7967_s1 + $0x6e0] ss:$20 sps:$4 sm:$0xff]   ;;  %v5691_v14 = vld [vmem:[%s7967_s1 + $0x6e8] ss:$20 sps:$4 sm:$0xff]  }
  0x7d   :  { %v5696_v52 = vld [vmem:[%s7967_s1 + $0x70c] ss:$20 sps:$4 sm:$0xff]  }
  0x7f   :  { %3365 = vmatpush1.bf16.msra.mxu0 %v5610_v16  ;;  %3652 = vmatpush1.bf16.msra.mxu1 %v5613_v18  ;;  %v5699_v16 = vld [vmem:[%s7967_s1 + $0x714] ss:$20 sps:$4 sm:$0xff]  }
  0x80   :  { %3375 = vmatprep.subr.bf16.mxu0 %v5618_v19  ;;  %3662 = vmatprep.subr.bf16.mxu1 %v5621_v20  ;;  %v5694_v18 = vld [vmem:[%s7967_s1 + $0x708] ss:$20 sps:$4 sm:$0xff]   ;;  %v5697_v19 = vld [vmem:[%s7967_s1 + $0x710] ss:$20 sps:$4 sm:$0xff]  }
  0x81   :  { %v5702_v20 = vld [vmem:[%s7967_s1 + $0x734] ss:$20 sps:$4 sm:$0xff]  }
  0x82   :  { %3367 = vmatmul.mubr.bf16.vlgmr.msra.gmra.mrb[0].mxu0 %v6643_v23  ;;  %3654 = vmatmul.mubr.bf16.vlgmr.msra.gmra.mrb[0].mxu1 %v6643_v23 }
  0x83   :  { %3376 = vmatpush1.bf16.msra.mxu0 %v5616_v22  ;;  %3663 = vmatpush1.bf16.msra.mxu1 %v5619_v24  ;;  %v5700_v22 = vld [vmem:[%s7967_s1 + $0x730] ss:$20 sps:$4 sm:$0xff]   ;;  %v5703_v24 = vld [vmem:[%s7967_s1 + $0x738] ss:$20 sps:$4 sm:$0xff]  }
  0x84   :  { %3377 = vmatprep.subr.bf16.mxu0 %v5624_v25  ;;  %3664 = vmatprep.subr.bf16.mxu1 %v5627_v26  ;;  %v5708_v25 = vld [vmem:[%s7967_s1 + $0x75c] ss:$20 sps:$4 sm:$0xff]   ;;  %v5711_v26 = vld [vmem:[%s7967_s1 + $0x764] ss:$20 sps:$4 sm:$0xff]  }
  0x85   :  { %3407 = vmatprep.mubr.bf16.mxu0 %v6655_v27  ;;  %3694 = vmatprep.mubr.bf16.mxu1 %v6655_v27 }
  0x87   :  { %3378 = vmatpush1.bf16.msra.mxu0 %v5622_v28  ;;  %3665 = vmatpush1.bf16.msra.mxu1 %v5625_v29  ;;  %v5706_v28 = vld [vmem:[%s7967_s1 + $0x758] ss:$20 sps:$4 sm:$0xff]   ;;  %v5709_v29 = vld [vmem:[%s7967_s1 + $0x760] ss:$20 sps:$4 sm:$0xff]  }
  0x88   :  { %3379 = vmatprep.subr.bf16.mxu0 %v5630_v30  ;;  %3666 = vmatprep.subr.bf16.mxu1 %v5633_v31  ;;  %v5715_v30 = vld [vmem:[%s7967_s1 + $0x784] ss:$20 sps:$4 sm:$0xff]   ;;  %v5718_v31 = vld [vmem:[%s7967_s1 + $0x78c] ss:$20 sps:$4 sm:$0xff]  }
  0x8b   :  { %3380 = vmatpush1.bf16.msra.mxu0 %v5628_v32  ;;  %3667 = vmatpush1.bf16.msra.mxu1 %v5631_v33  ;;  %v5713_v32 = vld [vmem:[%s7967_s1 + $0x780] ss:$20 sps:$4 sm:$0xff]   ;;  %v6846_v33 = vrot.slane %v6622_v15, %v6348_v49  ;;  %v6859_v15 = vcombine.high %v6655_v27, %v6655_v27 }
  0x8c   :  { %3381 = vmatprep.subr.bf16.mxu0 %v5636_v34  ;;  %3668 = vmatprep.subr.bf16.mxu1 %v5639_v35  ;;  %v5716_v34 = vld [vmem:[%s7967_s1 + $0x788] ss:$20 sps:$4 sm:$0xff]   ;;  %v5721_v35 = vld [vmem:[%s7967_s1 + $0x7ac] ss:$20 sps:$4 sm:$0xff]  }
  0x8f   :  { %3382 = vmatpush1.bf16.msra.mxu0 %v5634_v36  ;;  %3669 = vmatpush1.bf16.msra.mxu1 %v5637_v37  ;;  %v5724_v36 = vld [vmem:[%s7967_s1 + $0x7b4] ss:$20 sps:$4 sm:$0xff]  }
  0x90   :  { %3383 = vmatprep.subr.bf16.mxu0 %v5642_v38  ;;  %3670 = vmatprep.subr.bf16.mxu1 %v5645_v39  ;;  %v5719_v37 = vld [vmem:[%s7967_s1 + $0x7a8] ss:$20 sps:$4 sm:$0xff]   ;;  %v5722_v38 = vld [vmem:[%s7967_s1 + $0x7b0] ss:$20 sps:$4 sm:$0xff]  }
  0x91   :  { %v5727_v39 = vld [vmem:[%s7967_s1 + $0x7d4] ss:$20 sps:$4 sm:$0xff]  }
  0x93   :  { %3384 = vmatpush1.bf16.msra.mxu0 %v5640_v40  ;;  %3671 = vmatpush1.bf16.msra.mxu1 %v5643_v41  ;;  %v5730_v40 = vld [vmem:[%s7967_s1 + $0x7dc] ss:$20 sps:$4 sm:$0xff]  }
  0x94   :  { %3385 = vmatprep.subr.bf16.mxu0 %v5648_v43  ;;  %3672 = vmatprep.subr.bf16.mxu1 %v5651_v44  ;;  %v5725_v41 = vld [vmem:[%s7967_s1 + $0x7d0] ss:$20 sps:$4 sm:$0xff]   ;;  %v5728_v43 = vld [vmem:[%s7967_s1 + $0x7d8] ss:$20 sps:$4 sm:$0xff]  }
  0x95   :  { %v5733_v44 = vld [vmem:[%s7967_s1 + $0x7fc] ss:$20 sps:$4 sm:$0xff]  }
  0x97   :  { %3386 = vmatpush1.bf16.msra.mxu0 %v5646_v45  ;;  %3673 = vmatpush1.bf16.msra.mxu1 %v5649_v46  ;;  %v5736_v45 = vld [vmem:[%s7967_s1 + $0x804] ss:$20 sps:$4 sm:$0xff]  }
  0x98   :  { %3387 = vmatprep.subr.bf16.mxu0 %v5654_v47  ;;  %3674 = vmatprep.subr.bf16.mxu1 %v5657_v48  ;;  %v5731_v46 = vld [vmem:[%s7967_s1 + $0x7f8] ss:$20 sps:$4 sm:$0xff]   ;;  %v5734_v47 = vld [vmem:[%s7967_s1 + $0x800] ss:$20 sps:$4 sm:$0xff]  }
  0x99   :  { %v5739_v48 = vld [vmem:[%s7967_s1 + $0x824] ss:$20 sps:$4 sm:$0xff]  }
  0x9b   :  { %3388 = vmatpush1.bf16.msra.mxu0 %v5652_v50  ;;  %3675 = vmatpush1.bf16.msra.mxu1 %v5655_v51  ;;  %v5742_v50 = vld [vmem:[%s7967_s1 + $0x82c] ss:$20 sps:$4 sm:$0xff]  }
  0x9c   :  { %3389 = vmatprep.subr.bf16.mxu0 %v5660_v53  ;;  %3676 = vmatprep.subr.bf16.mxu1 %v5663_v54  ;;  %v5737_v51 = vld [vmem:[%s7967_s1 + $0x820] ss:$20 sps:$4 sm:$0xff]   ;;  %v5740_v53 = vld [vmem:[%s7967_s1 + $0x828] ss:$20 sps:$4 sm:$0xff]  }
  0x9d   :  { %v5745_v54 = vld [vmem:[%s7967_s1 + $0x84c] ss:$20 sps:$4 sm:$0xff]  }
  0x9f   :  { %3390 = vmatpush1.bf16.msra.mxu0 %v5658_v55  ;;  %3677 = vmatpush1.bf16.msra.mxu1 %v5661_v56  ;;  %v5748_v55 = vld [vmem:[%s7967_s1 + $0x854] ss:$20 sps:$4 sm:$0xff]  }
  0xa0   :  { %3391 = vmatprep.subr.bf16.mxu0 %v5666_v57  ;;  %3678 = vmatprep.subr.bf16.mxu1 %v5669_v58  ;;  %v5743_v56 = vld [vmem:[%s7967_s1 + $0x848] ss:$20 sps:$4 sm:$0xff]   ;;  %v5746_v57 = vld [vmem:[%s7967_s1 + $0x850] ss:$20 sps:$4 sm:$0xff]  }
  0xa1   :  { %v5751_v58 = vld [vmem:[%s7967_s1 + $0x874] ss:$20 sps:$4 sm:$0xff]  }
  0xa3   :  { %3392 = vmatpush1.bf16.msra.mxu0 %v5664_v59  ;;  %3679 = vmatpush1.bf16.msra.mxu1 %v5667_v61  ;;  %v5754_v59 = vld [vmem:[%s7967_s1 + $0x87c] ss:$20 sps:$4 sm:$0xff]  }
  0xa4   :  { %3393 = vmatprep.subr.bf16.mxu0 %v5672_v62  ;;  %3680 = vmatprep.subr.bf16.mxu1 %v5675_v63  ;;  %v5749_v61 = vld [vmem:[%s7967_s1 + $0x870] ss:$20 sps:$4 sm:$0xff]   ;;  %v5752_v62 = vld [vmem:[%s7967_s1 + $0x878] ss:$20 sps:$4 sm:$0xff]  }
  0xa5   :  { %v5757_v63 = vld [vmem:[%s7967_s1 + $0x89c] ss:$20 sps:$4 sm:$0xff]  }
  0xa7   :  { %3394 = vmatpush1.bf16.msra.mxu0 %v5670_v0  ;;  %3681 = vmatpush1.bf16.msra.mxu1 %v5673_v1  ;;  %v5760_v0 = vld [vmem:[%s7967_s1 + $0x8a4] ss:$20 sps:$4 sm:$0xff]  }
  0xa8   :  { %3395 = vmatprep.subr.bf16.mxu0 %v5678_v2  ;;  %3682 = vmatprep.subr.bf16.mxu1 %v5681_v3  ;;  %v5755_v1 = vld [vmem:[%s7967_s1 + $0x898] ss:$20 sps:$4 sm:$0xff]   ;;  %v5758_v2 = vld [vmem:[%s7967_s1 + $0x8a0] ss:$20 sps:$4 sm:$0xff]  }
  0xa9   :  { %v5763_v3 = vld [vmem:[%s7967_s1 + $0x8c4] ss:$20 sps:$4 sm:$0xff]  }
  0xab   :  { %3396 = vmatpush1.bf16.msra.mxu0 %v5676_v4  ;;  %3683 = vmatpush1.bf16.msra.mxu1 %v5679_v5  ;;  %v5766_v4 = vld [vmem:[%s7967_s1 + $0x8cc] ss:$20 sps:$4 sm:$0xff]  }
  0xac   :  { %3397 = vmatprep.subr.bf16.mxu0 %v5684_v6  ;;  %3684 = vmatprep.subr.bf16.mxu1 %v5687_v7  ;;  %v5761_v5 = vld [vmem:[%s7967_s1 + $0x8c0] ss:$20 sps:$4 sm:$0xff]   ;;  %v5764_v6 = vld [vmem:[%s7967_s1 + $0x8c8] ss:$20 sps:$4 sm:$0xff]  }
  0xad   :  { %v5769_v7 = vld [vmem:[%s7967_s1 + $0x8ec] ss:$20 sps:$4 sm:$0xff]  }
  0xaf   :  { %3398 = vmatpush1.bf16.msra.mxu0 %v5682_v8  ;;  %3685 = vmatpush1.bf16.msra.mxu1 %v5685_v9  ;;  %v5772_v8 = vld [vmem:[%s7967_s1 + $0x8f4] ss:$20 sps:$4 sm:$0xff]  }
  0xb0   :  { %3399 = vmatprep.subr.bf16.mxu0 %v5690_v10  ;;  %3686 = vmatprep.subr.bf16.mxu1 %v5693_v11  ;;  %v5767_v9 = vld [vmem:[%s7967_s1 + $0x8e8] ss:$20 sps:$4 sm:$0xff]   ;;  %v5770_v10 = vld [vmem:[%s7967_s1 + $0x8f0] ss:$20 sps:$4 sm:$0xff]  }
  0xb1   :  { %v5775_v11 = vld [vmem:[%s7967_s1 + $0x914] ss:$20 sps:$4 sm:$0xff]  }
  0xb3   :  { %3400 = vmatpush1.bf16.msra.mxu0 %v5688_v12  ;;  %3687 = vmatpush1.bf16.msra.mxu1 %v5691_v14  ;;  %v5778_v12 = vld [vmem:[%s7967_s1 + $0x91c] ss:$20 sps:$4 sm:$0xff]  }
  0xb4   :  { %3401 = vmatprep.subr.bf16.mxu0 %v5696_v52  ;;  %3688 = vmatprep.subr.bf16.mxu1 %v5699_v16  ;;  %v5773_v14 = vld [vmem:[%s7967_s1 + $0x910] ss:$20 sps:$4 sm:$0xff]   ;;  %v5776_v52 = vld [vmem:[%s7967_s1 + $0x918] ss:$20 sps:$4 sm:$0xff]  }
  0xb5   :  { %v5781_v16 = vld [vmem:[%s7967_s1 + $0x93c] ss:$20 sps:$4 sm:$0xff]  }
  0xb7   :  { %3402 = vmatpush1.bf16.msra.mxu0 %v5694_v18  ;;  %3689 = vmatpush1.bf16.msra.mxu1 %v5697_v19  ;;  %v5784_v18 = vld [vmem:[%s7967_s1 + $0x944] ss:$20 sps:$4 sm:$0xff]  }
  0xb8   :  { %3403 = vmatprep.subr.bf16.mxu0 %v5702_v20  ;;  %3690 = vmatprep.subr.bf16.mxu1 %v5705_v21  ;;  %v5779_v19 = vld [vmem:[%s7967_s1 + $0x938] ss:$20 sps:$4 sm:$0xff]   ;;  %v5782_v20 = vld [vmem:[%s7967_s1 + $0x940] ss:$20 sps:$4 sm:$0xff]  }
  0xb9   :  { %v5787_v21 = vld [vmem:[%s7967_s1 + $0x964] ss:$20 sps:$4 sm:$0xff]  }
  0xbb   :  { %3404 = vmatpush1.bf16.msra.mxu0 %v5700_v22  ;;  %3691 = vmatpush1.bf16.msra.mxu1 %v5703_v24  ;;  %v5790_v22 = vld [vmem:[%s7967_s1 + $0x96c] ss:$20 sps:$4 sm:$0xff]  }
  0xbc   :  { %3405 = vmatprep.subr.bf16.mxu0 %v5708_v25  ;;  %3692 = vmatprep.subr.bf16.mxu1 %v5711_v26  ;;  %v5785_v24 = vld [vmem:[%s7967_s1 + $0x960] ss:$20 sps:$4 sm:$0xff]   ;;  %v5788_v25 = vld [vmem:[%s7967_s1 + $0x968] ss:$20 sps:$4 sm:$0xff]  }
  0xbd   :  { %v5793_v26 = vld [vmem:[%s7967_s1 + $0x98c] ss:$20 sps:$4 sm:$0xff]  }
  0xbf   :  { %3406 = vmatpush1.bf16.msra.mxu0 %v5706_v28  ;;  %3693 = vmatpush1.bf16.msra.mxu1 %v5709_v29  ;;  %v5796_v28 = vld [vmem:[%s7967_s1 + $0x994] ss:$20 sps:$4 sm:$0xff]  }
  0xc0   :  { %3416 = vmatprep.subr.bf16.mxu0 %v5715_v30  ;;  %3703 = vmatprep.subr.bf16.mxu1 %v5718_v31  ;;  %v5791_v29 = vld [vmem:[%s7967_s1 + $0x988] ss:$20 sps:$4 sm:$0xff]   ;;  %v5794_v30 = vld [vmem:[%s7967_s1 + $0x990] ss:$20 sps:$4 sm:$0xff]  }
  0xc1   :  { %v5799_v31 = vld [vmem:[%s7967_s1 + $0x9b4] ss:$20 sps:$4 sm:$0xff]  }
  0xc2   :  { %3408 = vmatmul.mubr.bf16.vlgmr.msra.gmra.mrb[0].mxu0 %v6846_v33  ;;  %3695 = vmatmul.mubr.bf16.vlgmr.msra.gmra.mrb[0].mxu1 %v6846_v33 }
  0xc3   :  { %3417 = vmatpush1.bf16.msra.mxu0 %v5713_v32  ;;  %3704 = vmatpush1.bf16.msra.mxu1 %v5716_v34  ;;  %v5802_v32 = vld [vmem:[%s7967_s1 + $0x9bc] ss:$20 sps:$4 sm:$0xff]   ;;  %v7024_v34 = vld.sshfl [vmem:[%s7966_s0 + $0x8] sm:$0x37 pattern:$0x75316420] }
  0xc4   :  { %3418 = vmatprep.subr.bf16.mxu0 %v5721_v35  ;;  %3705 = vmatprep.subr.bf16.mxu1 %v5724_v36  ;;  %v5797_v35 = vld [vmem:[%s7967_s1 + $0x9b0] ss:$20 sps:$4 sm:$0xff]   ;;  %v5800_v36 = vld [vmem:[%s7967_s1 + $0x9b8] ss:$20 sps:$4 sm:$0xff]  }
  0xc5   :  { %3448 = vmatprep.mubr.bf16.mxu0 %v6859_v15  ;;  %3735 = vmatprep.mubr.bf16.mxu1 %v6859_v15 }
  0xc7   :  { %3419 = vmatpush1.bf16.msra.mxu0 %v5719_v37  ;;  %3706 = vmatpush1.bf16.msra.mxu1 %v5722_v38  ;;  %v5805_v37 = vld [vmem:[%s7967_s1 + $0x9dc] ss:$20 sps:$4 sm:$0xff]   ;;  %v5808_v38 = vld [vmem:[%s7967_s1 + $0x9e4] ss:$20 sps:$4 sm:$0xff]  }
  0xc8   :  { %3420 = vmatprep.subr.bf16.mxu0 %v5727_v39  ;;  %3707 = vmatprep.subr.bf16.mxu1 %v5730_v40  ;;  %v5803_v39 = vld [vmem:[%s7967_s1 + $0x9d8] ss:$20 sps:$4 sm:$0xff]   ;;  %v5806_v40 = vld [vmem:[%s7967_s1 + $0x9e0] ss:$20 sps:$4 sm:$0xff]  }
  0xcb   :  { %3421 = vmatpush1.bf16.msra.mxu0 %v5725_v41  ;;  %3708 = vmatpush1.bf16.msra.mxu1 %v5728_v43  ;;  %v5811_v41 = vld [vmem:[%s7967_s1 + $0xa04] ss:$20 sps:$4 sm:$0xff]   ;;  %v5814_v43 = vld [vmem:[%s7967_s1 + $0xa0c] ss:$20 sps:$4 sm:$0xff]  }
  0xcc   :  { %3422 = vmatprep.subr.bf16.mxu0 %v5733_v44  ;;  %3709 = vmatprep.subr.bf16.mxu1 %v5736_v45  ;;  %v5809_v44 = vld [vmem:[%s7967_s1 + $0xa00] ss:$20 sps:$4 sm:$0xff]   ;;  %v705_v45 = vcombine.high %v7024_v34, %v7024_v34 }
  0xcf   :  { %3423 = vmatpush1.bf16.msra.mxu0 %v5731_v46  ;;  %3710 = vmatpush1.bf16.msra.mxu1 %v5734_v47  ;;  %v5812_v46 = vld [vmem:[%s7967_s1 + $0xa08] ss:$20 sps:$4 sm:$0xff]   ;;  %v7060_v47 = vcombine.high %v6846_v33, %v6846_v33 }
  0xd0   :  { %3424 = vmatprep.subr.bf16.mxu0 %v5739_v48  ;;  %3711 = vmatprep.subr.bf16.mxu1 %v5742_v50  ;;  %v5817_v48 = vld [vmem:[%s7967_s1 + $0xa2c] ss:$20 sps:$4 sm:$0xff]   ;;  %v5820_v50 = vld [vmem:[%s7967_s1 + $0xa34] ss:$20 sps:$4 sm:$0xff]  }
  0xd3   :  { %3425 = vmatpush1.bf16.msra.mxu0 %v5737_v51  ;;  %3712 = vmatpush1.bf16.msra.mxu1 %v5740_v53  ;;  %v7069_v51 = vrot.slane %v705_v45, %v6348_v49  ;;  %v5815_v53 = vld [vmem:[%s7967_s1 + $0xa28] ss:$20 sps:$4 sm:$0xff]  }
  0xd4   :  { %3426 = vmatprep.subr.bf16.mxu0 %v5745_v54  ;;  %3713 = vmatprep.subr.bf16.mxu1 %v5748_v55  ;;  %v5818_v54 = vld [vmem:[%s7967_s1 + $0xa30] ss:$20 sps:$4 sm:$0xff]   ;;  %v5823_v55 = vld [vmem:[%s7967_s1 + $0xa54] ss:$20 sps:$4 sm:$0xff]  }
  0xd5   :  { %v5887_v45 = vld [vmem:[%s7967_s1 + $0xc08] ss:$20 sps:$4 sm:$0xff]  }
  0xd7   :  { %3427 = vmatpush1.bf16.msra.mxu0 %v5743_v56  ;;  %3714 = vmatpush1.bf16.msra.mxu1 %v5746_v57  ;;  %v5826_v56 = vld [vmem:[%s7967_s1 + $0xa5c] ss:$20 sps:$4 sm:$0xff]  }
  0xd8   :  { %3428 = vmatprep.subr.bf16.mxu0 %v5751_v58  ;;  %3715 = vmatprep.subr.bf16.mxu1 %v5754_v59  ;;  %v5821_v57 = vld [vmem:[%s7967_s1 + $0xa50] ss:$20 sps:$4 sm:$0xff]   ;;  %v5824_v58 = vld [vmem:[%s7967_s1 + $0xa58] ss:$20 sps:$4 sm:$0xff]  }
  0xd9   :  { %v5829_v59 = vld [vmem:[%s7967_s1 + $0xa7c] ss:$20 sps:$4 sm:$0xff]  }
  0xdb   :  { %3429 = vmatpush1.bf16.msra.mxu0 %v5749_v61  ;;  %3716 = vmatpush1.bf16.msra.mxu1 %v5752_v62  ;;  %v5832_v61 = vld [vmem:[%s7967_s1 + $0xa84] ss:$20 sps:$4 sm:$0xff]  }
  0xdc   :  { %3430 = vmatprep.subr.bf16.mxu0 %v5757_v63  ;;  %3717 = vmatprep.subr.bf16.mxu1 %v5760_v0  ;;  %v5827_v62 = vld [vmem:[%s7967_s1 + $0xa78] ss:$20 sps:$4 sm:$0xff]   ;;  %v5830_v63 = vld [vmem:[%s7967_s1 + $0xa80] ss:$20 sps:$4 sm:$0xff]  }
  0xdd   :  { %v5835_v0 = vld [vmem:[%s7967_s1 + $0xaa4] ss:$20 sps:$4 sm:$0xff]  }
  0xdf   :  { %3431 = vmatpush1.bf16.msra.mxu0 %v5755_v1  ;;  %3718 = vmatpush1.bf16.msra.mxu1 %v5758_v2  ;;  %v5838_v1 = vld [vmem:[%s7967_s1 + $0xaac] ss:$20 sps:$4 sm:$0xff]  }
  0xe0   :  { %3432 = vmatprep.subr.bf16.mxu0 %v5763_v3  ;;  %3719 = vmatprep.subr.bf16.mxu1 %v5766_v4  ;;  %v5833_v2 = vld [vmem:[%s7967_s1 + $0xaa0] ss:$20 sps:$4 sm:$0xff]   ;;  %v5836_v3 = vld [vmem:[%s7967_s1 + $0xaa8] ss:$20 sps:$4 sm:$0xff]  }
  0xe1   :  { %v5841_v4 = vld [vmem:[%s7967_s1 + $0xacc] ss:$20 sps:$4 sm:$0xff]  }
  0xe3   :  { %3433 = vmatpush1.bf16.msra.mxu0 %v5761_v5  ;;  %3720 = vmatpush1.bf16.msra.mxu1 %v5764_v6  ;;  %v5844_v5 = vld [vmem:[%s7967_s1 + $0xad4] ss:$20 sps:$4 sm:$0xff]  }
  0xe4   :  { %3434 = vmatprep.subr.bf16.mxu0 %v5769_v7  ;;  %3721 = vmatprep.subr.bf16.mxu1 %v5772_v8  ;;  %v5839_v6 = vld [vmem:[%s7967_s1 + $0xac8] ss:$20 sps:$4 sm:$0xff]   ;;  %v5842_v7 = vld [vmem:[%s7967_s1 + $0xad0] ss:$20 sps:$4 sm:$0xff]  }
  0xe5   :  { %v5847_v8 = vld [vmem:[%s7967_s1 + $0xaf4] ss:$20 sps:$4 sm:$0xff]  }
  0xe7   :  { %3435 = vmatpush1.bf16.msra.mxu0 %v5767_v9  ;;  %3722 = vmatpush1.bf16.msra.mxu1 %v5770_v10  ;;  %v5850_v9 = vld [vmem:[%s7967_s1 + $0xafc] ss:$20 sps:$4 sm:$0xff]  }
  0xe8   :  { %3436 = vmatprep.subr.bf16.mxu0 %v5775_v11  ;;  %3723 = vmatprep.subr.bf16.mxu1 %v5778_v12  ;;  %v5845_v10 = vld [vmem:[%s7967_s1 + $0xaf0] ss:$20 sps:$4 sm:$0xff]   ;;  %v5848_v11 = vld [vmem:[%s7967_s1 + $0xaf8] ss:$20 sps:$4 sm:$0xff]  }
  0xe9   :  { %v5853_v12 = vld [vmem:[%s7967_s1 + $0xb1c] ss:$20 sps:$4 sm:$0xff]  }
  0xeb   :  { %3437 = vmatpush1.bf16.msra.mxu0 %v5773_v14  ;;  %3724 = vmatpush1.bf16.msra.mxu1 %v5776_v52  ;;  %v5856_v14 = vld [vmem:[%s7967_s1 + $0xb24] ss:$20 sps:$4 sm:$0xff]  }
  0xec   :  { %3438 = vmatprep.subr.bf16.mxu0 %v5781_v16  ;;  %3725 = vmatprep.subr.bf16.mxu1 %v5784_v18  ;;  %v5851_v52 = vld [vmem:[%s7967_s1 + $0xb18] ss:$20 sps:$4 sm:$0xff]   ;;  %v5854_v16 = vld [vmem:[%s7967_s1 + $0xb20] ss:$20 sps:$4 sm:$0xff]  }
  0xed   :  { %v5859_v18 = vld [vmem:[%s7967_s1 + $0xb44] ss:$20 sps:$4 sm:$0xff]  }
  0xef   :  { %3439 = vmatpush1.bf16.msra.mxu0 %v5779_v19  ;;  %3726 = vmatpush1.bf16.msra.mxu1 %v5782_v20  ;;  %v5862_v19 = vld [vmem:[%s7967_s1 + $0xb4c] ss:$20 sps:$4 sm:$0xff]  }
  0xf0   :  { %3440 = vmatprep.subr.bf16.mxu0 %v5787_v21  ;;  %3727 = vmatprep.subr.bf16.mxu1 %v5790_v22  ;;  %v5857_v20 = vld [vmem:[%s7967_s1 + $0xb40] ss:$20 sps:$4 sm:$0xff]   ;;  %v5860_v21 = vld [vmem:[%s7967_s1 + $0xb48] ss:$20 sps:$4 sm:$0xff]  }
  0xf1   :  { %v5865_v22 = vld [vmem:[%s7967_s1 + $0xb6c] ss:$20 sps:$4 sm:$0xff]  }
  0xf3   :  { %3441 = vmatpush1.bf16.msra.mxu0 %v5785_v24  ;;  %3728 = vmatpush1.bf16.msra.mxu1 %v5788_v25  ;;  %v5868_v24 = vld [vmem:[%s7967_s1 + $0xb74] ss:$20 sps:$4 sm:$0xff]  }
  0xf4   :  { %3442 = vmatprep.subr.bf16.mxu0 %v5793_v26  ;;  %3729 = vmatprep.subr.bf16.mxu1 %v5796_v28  ;;  %v5863_v25 = vld [vmem:[%s7967_s1 + $0xb68] ss:$20 sps:$4 sm:$0xff]   ;;  %v5866_v26 = vld [vmem:[%s7967_s1 + $0xb70] ss:$20 sps:$4 sm:$0xff]  }
  0xf5   :  { %v5871_v28 = vld [vmem:[%s7967_s1 + $0xb94] ss:$20 sps:$4 sm:$0xff]  }
  0xf7   :  { %3443 = vmatpush1.bf16.msra.mxu0 %v5791_v29  ;;  %3730 = vmatpush1.bf16.msra.mxu1 %v5794_v30  ;;  %v5874_v29 = vld [vmem:[%s7967_s1 + $0xb9c] ss:$20 sps:$4 sm:$0xff]  }
  0xf8   :  { %3444 = vmatprep.subr.bf16.mxu0 %v5799_v31  ;;  %3731 = vmatprep.subr.bf16.mxu1 %v5802_v32  ;;  %v5869_v30 = vld [vmem:[%s7967_s1 + $0xb90] ss:$20 sps:$4 sm:$0xff]   ;;  %v5872_v31 = vld [vmem:[%s7967_s1 + $0xb98] ss:$20 sps:$4 sm:$0xff]  }
  0xf9   :  { %v5877_v32 = vld [vmem:[%s7967_s1 + $0xbbc] ss:$20 sps:$4 sm:$0xff]  }
  0xfb   :  { %3445 = vmatpush1.bf16.msra.mxu0 %v5797_v35  ;;  %3732 = vmatpush1.bf16.msra.mxu1 %v5800_v36  ;;  %v5880_v35 = vld [vmem:[%s7967_s1 + $0xbc4] ss:$20 sps:$4 sm:$0xff]  }
  0xfc   :  { %3446 = vmatprep.subr.bf16.mxu0 %v5805_v37  ;;  %3733 = vmatprep.subr.bf16.mxu1 %v5808_v38  ;;  %v5875_v36 = vld [vmem:[%s7967_s1 + $0xbb8] ss:$20 sps:$4 sm:$0xff]   ;;  %v5878_v37 = vld [vmem:[%s7967_s1 + $0xbc0] ss:$20 sps:$4 sm:$0xff]  }
  0xfd   :  { %v5883_v38 = vld [vmem:[%s7967_s1 + $0xbe4] ss:$20 sps:$4 sm:$0xff]  }
  0xff   :  { %3447 = vmatpush1.bf16.msra.mxu0 %v5803_v39  ;;  %3734 = vmatpush1.bf16.msra.mxu1 %v5806_v40  ;;  %v5886_v39 = vld [vmem:[%s7967_s1 + $0xbec] ss:$20 sps:$4 sm:$0xff]  }
 0x100   :  { %3457 = vmatprep.subr.bf16.mxu0 %v5811_v41  ;;  %3744 = vmatprep.subr.bf16.mxu1 %v5814_v43  ;;  %v5881_v40 = vld [vmem:[%s7967_s1 + $0xbe0] ss:$20 sps:$4 sm:$0xff]   ;;  %v5884_v41 = vld [vmem:[%s7967_s1 + $0xbe8] ss:$20 sps:$4 sm:$0xff]  }
 0x101   :  { %v5889_v43 = vld [vmem:[%s7967_s1 + $0xc0c] ss:$20 sps:$4 sm:$0xff]  }
 0x102   :  { %3449 = vmatmul.mubr.bf16.vlgmr.msra.gmra.mrb[0].mxu0 %v7060_v47  ;;  %3736 = vmatmul.mubr.bf16.vlgmr.msra.gmra.mrb[0].mxu1 %v7060_v47 }
 0x103   :  { %3458 = vmatpush1.bf16.msra.mxu0 %v5809_v44  ;;  %3745 = vmatpush1.bf16.msra.mxu1 %v5812_v46  ;;  %v5892_v44 = vld [vmem:[%s7967_s1 + $0xc14] ss:$20 sps:$4 sm:$0xff]   ;;  %v5890_v46 = vld [vmem:[%s7967_s1 + $0xc10] ss:$20 sps:$4 sm:$0xff]  }
 0x104   :  { %3459 = vmatprep.subr.bf16.mxu0 %v5817_v48  ;;  %3746 = vmatprep.subr.bf16.mxu1 %v5820_v50  ;;  %v5895_v48 = vld [vmem:[%s7967_s1 + $0xc34] ss:$20 sps:$4 sm:$0xff]   ;;  %v5898_v50 = vld [vmem:[%s7967_s1 + $0xc3c] ss:$20 sps:$4 sm:$0xff]  }
 0x105   :  { %3489 = vmatprep.mubr.bf16.mxu0 %v7069_v51  ;;  %3776 = vmatprep.mubr.bf16.mxu1 %v7069_v51 }
 0x107   :  { %3460 = vmatpush1.bf16.msra.mxu0 %v5815_v53  ;;  %3747 = vmatpush1.bf16.msra.mxu1 %v5818_v54  ;;  %v5893_v53 = vld [vmem:[%s7967_s1 + $0xc30] ss:$20 sps:$4 sm:$0xff]   ;;  %v5896_v54 = vld [vmem:[%s7967_s1 + $0xc38] ss:$20 sps:$4 sm:$0xff]  }
 0x108   :  { %3461 = vmatprep.subr.bf16.mxu0 %v5823_v55  ;;  %3748 = vmatprep.subr.bf16.mxu1 %v5826_v56  ;;  %v5901_v55 = vld [vmem:[%s7967_s1 + $0xc5c] ss:$20 sps:$4 sm:$0xff]   ;;  %v5904_v56 = vld [vmem:[%s7967_s1 + $0xc64] ss:$20 sps:$4 sm:$0xff]  }
 0x10b   :  { %3462 = vmatpush1.bf16.msra.mxu0 %v5821_v57  ;;  %3749 = vmatpush1.bf16.msra.mxu1 %v5824_v58  ;;  %v5899_v57 = vld [vmem:[%s7967_s1 + $0xc58] ss:$20 sps:$4 sm:$0xff]   ;;  %v5902_v58 = vld [vmem:[%s7967_s1 + $0xc60] ss:$20 sps:$4 sm:$0xff]  }
 0x10c   :  { %3463 = vmatprep.subr.bf16.mxu0 %v5829_v59  ;;  %3750 = vmatprep.subr.bf16.mxu1 %v5832_v61  ;;  %v5908_v59 = vld [vmem:[%s7967_s1 + $0xc84] ss:$20 sps:$4 sm:$0xff]   ;;  %v5911_v61 = vld [vmem:[%s7967_s1 + $0xc8c] ss:$20 sps:$4 sm:$0xff]  }
 0x10f   :  { %3464 = vmatpush1.bf16.msra.mxu0 %v5827_v62  ;;  %3751 = vmatpush1.bf16.msra.mxu1 %v5830_v63  ;;  %v5906_v62 = vld [vmem:[%s7967_s1 + $0xc80] ss:$20 sps:$4 sm:$0xff]   ;;  %v7260_v63 = vrot.slane %v7024_v34, %v6348_v49  ;;  %v5912_v34 = vld [vmem:[%s7967_s1 + $0xca8] ss:$20 sps:$4 sm:$0xff]  }
 0x110   :  { %3465 = vmatprep.subr.bf16.mxu0 %v5835_v0  ;;  %3752 = vmatprep.subr.bf16.mxu1 %v5838_v1  ;;  %v5909_v0 = vld [vmem:[%s7967_s1 + $0xc88] ss:$20 sps:$4 sm:$0xff]   ;;  %v5914_v1 = vld [vmem:[%s7967_s1 + $0xcac] ss:$20 sps:$4 sm:$0xff]  }
 0x113   :  { %3466 = vmatpush1.bf16.msra.mxu0 %v5833_v2  ;;  %3753 = vmatpush1.bf16.msra.mxu1 %v5836_v3  ;;  %v5917_v2 = vld [vmem:[%s7967_s1 + $0xcb4] ss:$20 sps:$4 sm:$0xff]   ;;  %v7276_v3 = vcombine.high %v7069_v51, %v7069_v51 }
 0x114   :  { %3467 = vmatprep.subr.bf16.mxu0 %v5841_v4  ;;  %3754 = vmatprep.subr.bf16.mxu1 %v5844_v5  ;;  %v5915_v4 = vld [vmem:[%s7967_s1 + $0xcb0] ss:$20 sps:$4 sm:$0xff]   ;;  %v5920_v5 = vld [vmem:[%s7967_s1 + $0xcd4] ss:$20 sps:$4 sm:$0xff]  }
 0x117   :  { %3468 = vmatpush1.bf16.msra.mxu0 %v5839_v6  ;;  %3755 = vmatpush1.bf16.msra.mxu1 %v5842_v7  ;;  %v5923_v6 = vld [vmem:[%s7967_s1 + $0xcdc] ss:$20 sps:$4 sm:$0xff]  }
 0x118   :  { %3469 = vmatprep.subr.bf16.mxu0 %v5847_v8  ;;  %3756 = vmatprep.subr.bf16.mxu1 %v5850_v9  ;;  %v5918_v7 = vld [vmem:[%s7967_s1 + $0xcd0] ss:$20 sps:$4 sm:$0xff]   ;;  %v5921_v8 = vld [vmem:[%s7967_s1 + $0xcd8] ss:$20 sps:$4 sm:$0xff]  }
 0x119   :  { %v5926_v9 = vld [vmem:[%s7967_s1 + $0xcfc] ss:$20 sps:$4 sm:$0xff]  }
 0x11b   :  { %3470 = vmatpush1.bf16.msra.mxu0 %v5845_v10  ;;  %3757 = vmatpush1.bf16.msra.mxu1 %v5848_v11  ;;  %v5929_v10 = vld [vmem:[%s7967_s1 + $0xd04] ss:$20 sps:$4 sm:$0xff]  }
 0x11c   :  { %3471 = vmatprep.subr.bf16.mxu0 %v5853_v12  ;;  %3758 = vmatprep.subr.bf16.mxu1 %v5856_v14  ;;  %v5924_v11 = vld [vmem:[%s7967_s1 + $0xcf8] ss:$20 sps:$4 sm:$0xff]   ;;  %v5927_v12 = vld [vmem:[%s7967_s1 + $0xd00] ss:$20 sps:$4 sm:$0xff]  }
 0x11d   :  { %v5932_v14 = vld [vmem:[%s7967_s1 + $0xd24] ss:$20 sps:$4 sm:$0xff]  }
 0x11f   :  { %3472 = vmatpush1.bf16.msra.mxu0 %v5851_v52  ;;  %3759 = vmatpush1.bf16.msra.mxu1 %v5854_v16  ;;  %v5935_v52 = vld [vmem:[%s7967_s1 + $0xd2c] ss:$20 sps:$4 sm:$0xff]  }
 0x120   :  { %3473 = vmatprep.subr.bf16.mxu0 %v5859_v18  ;;  %3760 = vmatprep.subr.bf16.mxu1 %v5862_v19  ;;  %v5930_v16 = vld [vmem:[%s7967_s1 + $0xd20] ss:$20 sps:$4 sm:$0xff]   ;;  %v5933_v18 = vld [vmem:[%s7967_s1 + $0xd28] ss:$20 sps:$4 sm:$0xff]  }
 0x121   :  { %v5938_v19 = vld [vmem:[%s7967_s1 + $0xd4c] ss:$20 sps:$4 sm:$0xff]  }
 0x123   :  { %3474 = vmatpush1.bf16.msra.mxu0 %v5857_v20  ;;  %3761 = vmatpush1.bf16.msra.mxu1 %v5860_v21  ;;  %v5941_v20 = vld [vmem:[%s7967_s1 + $0xd54] ss:$20 sps:$4 sm:$0xff]  }
 0x124   :  { %3475 = vmatprep.subr.bf16.mxu0 %v5865_v22  ;;  %3762 = vmatprep.subr.bf16.mxu1 %v5868_v24  ;;  %v5936_v21 = vld [vmem:[%s7967_s1 + $0xd48] ss:$20 sps:$4 sm:$0xff]   ;;  %v5939_v22 = vld [vmem:[%s7967_s1 + $0xd50] ss:$20 sps:$4 sm:$0xff]  }
 0x125   :  { %v5944_v24 = vld [vmem:[%s7967_s1 + $0xd74] ss:$20 sps:$4 sm:$0xff]  }
 0x127   :  { %3476 = vmatpush1.bf16.msra.mxu0 %v5863_v25  ;;  %3763 = vmatpush1.bf16.msra.mxu1 %v5866_v26  ;;  %v5947_v25 = vld [vmem:[%s7967_s1 + $0xd7c] ss:$20 sps:$4 sm:$0xff]  }
 0x128   :  { %3477 = vmatprep.subr.bf16.mxu0 %v5871_v28  ;;  %3764 = vmatprep.subr.bf16.mxu1 %v5874_v29  ;;  %v5942_v26 = vld [vmem:[%s7967_s1 + $0xd70] ss:$20 sps:$4 sm:$0xff]   ;;  %v5945_v28 = vld [vmem:[%s7967_s1 + $0xd78] ss:$20 sps:$4 sm:$0xff]  }
 0x129   :  { %v5950_v29 = vld [vmem:[%s7967_s1 + $0xd9c] ss:$20 sps:$4 sm:$0xff]  }
 0x12b   :  { %3478 = vmatpush1.bf16.msra.mxu0 %v5869_v30  ;;  %3765 = vmatpush1.bf16.msra.mxu1 %v5872_v31  ;;  %v5953_v30 = vld [vmem:[%s7967_s1 + $0xda4] ss:$20 sps:$4 sm:$0xff]  }
 0x12c   :  { %3479 = vmatprep.subr.bf16.mxu0 %v5877_v32  ;;  %3766 = vmatprep.subr.bf16.mxu1 %v5880_v35  ;;  %v5948_v31 = vld [vmem:[%s7967_s1 + $0xd98] ss:$20 sps:$4 sm:$0xff]   ;;  %v5951_v32 = vld [vmem:[%s7967_s1 + $0xda0] ss:$20 sps:$4 sm:$0xff]  }
 0x12d   :  { %v5956_v35 = vld [vmem:[%s7967_s1 + $0xdc4] ss:$20 sps:$4 sm:$0xff]  }
 0x12f   :  { %3480 = vmatpush1.bf16.msra.mxu0 %v5875_v36  ;;  %3767 = vmatpush1.bf16.msra.mxu1 %v5878_v37  ;;  %v5959_v36 = vld [vmem:[%s7967_s1 + $0xdcc] ss:$20 sps:$4 sm:$0xff]  }
 0x130   :  { %3481 = vmatprep.subr.bf16.mxu0 %v5883_v38  ;;  %3768 = vmatprep.subr.bf16.mxu1 %v5886_v39  ;;  %v5954_v37 = vld [vmem:[%s7967_s1 + $0xdc0] ss:$20 sps:$4 sm:$0xff]   ;;  %v5957_v38 = vld [vmem:[%s7967_s1 + $0xdc8] ss:$20 sps:$4 sm:$0xff]  }
 0x131   :  { %v5962_v39 = vld [vmem:[%s7967_s1 + $0xdec] ss:$20 sps:$4 sm:$0xff]  }
 0x133   :  { %3482 = vmatpush1.bf16.msra.mxu0 %v5881_v40  ;;  %3769 = vmatpush1.bf16.msra.mxu1 %v5884_v41  ;;  %v5965_v40 = vld [vmem:[%s7967_s1 + $0xdf4] ss:$20 sps:$4 sm:$0xff]  }
 0x134   :  { %3483 = vmatprep.subr.bf16.mxu0 %v5889_v43  ;;  %3770 = vmatprep.subr.bf16.mxu1 %v5892_v44  ;;  %v5960_v41 = vld [vmem:[%s7967_s1 + $0xde8] ss:$20 sps:$4 sm:$0xff]   ;;  %v5963_v43 = vld [vmem:[%s7967_s1 + $0xdf0] ss:$20 sps:$4 sm:$0xff]  }
 0x135   :  { %v5968_v44 = vld [vmem:[%s7967_s1 + $0xe14] ss:$20 sps:$4 sm:$0xff]  }
 0x137   :  { %3484 = vmatpush1.bf16.msra.mxu0 %v5887_v45  ;;  %3771 = vmatpush1.bf16.msra.mxu1 %v5890_v46  ;;  %v5971_v45 = vld [vmem:[%s7967_s1 + $0xe1c] ss:$20 sps:$4 sm:$0xff]  }
 0x138   :  { %3485 = vmatprep.subr.bf16.mxu0 %v5895_v48  ;;  %3772 = vmatprep.subr.bf16.mxu1 %v5898_v50  ;;  %v5966_v46 = vld [vmem:[%s7967_s1 + $0xe10] ss:$20 sps:$4 sm:$0xff]   ;;  %v5969_v48 = vld [vmem:[%s7967_s1 + $0xe18] ss:$20 sps:$4 sm:$0xff]  }
 0x139   :  { %v5974_v50 = vld [vmem:[%s7967_s1 + $0xe3c] ss:$20 sps:$4 sm:$0xff]  }
 0x13b   :  { %3486 = vmatpush1.bf16.msra.mxu0 %v5893_v53  ;;  %3773 = vmatpush1.bf16.msra.mxu1 %v5896_v54  ;;  %v5977_v53 = vld [vmem:[%s7967_s1 + $0xe44] ss:$20 sps:$4 sm:$0xff]  }
 0x13c   :  { %3487 = vmatprep.subr.bf16.mxu0 %v5901_v55  ;;  %3774 = vmatprep.subr.bf16.mxu1 %v5904_v56  ;;  %v5972_v54 = vld [vmem:[%s7967_s1 + $0xe38] ss:$20 sps:$4 sm:$0xff]   ;;  %v5975_v55 = vld [vmem:[%s7967_s1 + $0xe40] ss:$20 sps:$4 sm:$0xff]  }
 0x13d   :  { %v5980_v56 = vld [vmem:[%s7967_s1 + $0xe64] ss:$20 sps:$4 sm:$0xff]  }
 0x13f   :  { %3488 = vmatpush1.bf16.msra.mxu0 %v5899_v57  ;;  %3775 = vmatpush1.bf16.msra.mxu1 %v5902_v58  ;;  %v5983_v57 = vld [vmem:[%s7967_s1 + $0xe6c] ss:$20 sps:$4 sm:$0xff]  }
 0x140   :  { %3498 = vmatprep.subr.bf16.mxu0 %v5908_v59  ;;  %3785 = vmatprep.subr.bf16.mxu1 %v5911_v61  ;;  %v5978_v58 = vld [vmem:[%s7967_s1 + $0xe60] ss:$20 sps:$4 sm:$0xff]   ;;  %v5981_v59 = vld [vmem:[%s7967_s1 + $0xe68] ss:$20 sps:$4 sm:$0xff]  }
 0x141   :  { %v5986_v61 = vld [vmem:[%s7967_s1 + $0xe8c] ss:$20 sps:$4 sm:$0xff]  }
 0x142   :  { %3490 = vmatmul.mubr.bf16.vlgmr.msra.gmra.mrb[0].mxu0 %v7260_v63  ;;  %3777 = vmatmul.mubr.bf16.vlgmr.msra.gmra.mrb[0].mxu1 %v7260_v63 }
 0x143   :  { %3499 = vmatpush1.bf16.msra.mxu0 %v5906_v62  ;;  %3786 = vmatpush1.bf16.msra.mxu1 %v5909_v0  ;;  %v5989_v62 = vld [vmem:[%s7967_s1 + $0xe94] ss:$20 sps:$4 sm:$0xff]  }
 0x144   :  { %3500 = vmatprep.subr.bf16.mxu0 %v5914_v1  ;;  %3787 = vmatprep.subr.bf16.mxu1 %v5917_v2  ;;  %v5984_v0 = vld [vmem:[%s7967_s1 + $0xe88] ss:$20 sps:$4 sm:$0xff]   ;;  %v5987_v1 = vld [vmem:[%s7967_s1 + $0xe90] ss:$20 sps:$4 sm:$0xff]  }
 0x145   :  { %3530 = vmatprep.mubr.bf16.mxu0 %v7276_v3  ;;  %3817 = vmatprep.mubr.bf16.mxu1 %v7276_v3  ;;  %v5992_v2 = vld [vmem:[%s7967_s1 + $0xeb4] ss:$20 sps:$4 sm:$0xff]  }
 0x147   :  { %3501 = vmatpush1.bf16.msra.mxu0 %v5912_v34  ;;  %3788 = vmatpush1.bf16.msra.mxu1 %v5915_v4  ;;  %v5995_v34 = vld [vmem:[%s7967_s1 + $0xebc] ss:$20 sps:$4 sm:$0xff]  }
 0x148   :  { %3502 = vmatprep.subr.bf16.mxu0 %v5920_v5  ;;  %3789 = vmatprep.subr.bf16.mxu1 %v5923_v6  ;;  %v5990_v4 = vld [vmem:[%s7967_s1 + $0xeb0] ss:$20 sps:$4 sm:$0xff]   ;;  %v5993_v5 = vld [vmem:[%s7967_s1 + $0xeb8] ss:$20 sps:$4 sm:$0xff]  }
 0x149   :  { %v5998_v6 = vld [vmem:[%s7967_s1 + $0xedc] ss:$20 sps:$4 sm:$0xff]  }
 0x14b   :  { %3503 = vmatpush1.bf16.msra.mxu0 %v5918_v7  ;;  %3790 = vmatpush1.bf16.msra.mxu1 %v5921_v8  ;;  %v6001_v7 = vld [vmem:[%s7967_s1 + $0xee4] ss:$20 sps:$4 sm:$0xff]  }
 0x14c   :  { %3504 = vmatprep.subr.bf16.mxu0 %v5926_v9  ;;  %3791 = vmatprep.subr.bf16.mxu1 %v5929_v10  ;;  %v5996_v8 = vld [vmem:[%s7967_s1 + $0xed8] ss:$20 sps:$4 sm:$0xff]   ;;  %v5999_v9 = vld [vmem:[%s7967_s1 + $0xee0] ss:$20 sps:$4 sm:$0xff]  }
 0x14d   :  { %v6004_v10 = vld [vmem:[%s7967_s1 + $0xf04] ss:$20 sps:$4 sm:$0xff]  }
 0x14f   :  { %3505 = vmatpush1.bf16.msra.mxu0 %v5924_v11  ;;  %3792 = vmatpush1.bf16.msra.mxu1 %v5927_v12  ;;  %v6016_v11 = vld [vmem:[%s7967_s1 + $0x3d0] ss:$20 sps:$4 sm:$0xff]   ;;  %v7461_v12 = vcombine.high %v7260_v63, %v7260_v63 }
 0x150   :  { %3506 = vmatprep.subr.bf16.mxu0 %v5932_v14  ;;  %3793 = vmatprep.subr.bf16.mxu1 %v5935_v52  ;;  %v6002_v14 = vld [vmem:[%s7967_s1 + $0xf00] ss:$20 sps:$4 sm:$0xff]  }
 0x151   :  { %v6007_v52 = vld [vmem:[%s7967_s1 + $0xf2c] ss:$20 sps:$4 sm:$0xff]  }
 0x153   :  { %3507 = vmatpush1.bf16.msra.mxu0 %v5930_v16  ;;  %3794 = vmatpush1.bf16.msra.mxu1 %v5933_v18  ;;  %v6017_v16 = vld [vmem:[%s7967_s1 + $0x290] ss:$20 sps:$4 sm:$0xff]   ;;  %v6020_v18 = vld [vmem:[%s7967_s1 + $0x3f8] ss:$20 sps:$4 sm:$0xff]  }
 0x154   :  { %3508 = vmatprep.subr.bf16.mxu0 %v5938_v19  ;;  %3795 = vmatprep.subr.bf16.mxu1 %v5941_v20  ;;  %v6005_v19 = vld [vmem:[%s7967_s1 + $0xf28] ss:$20 sps:$4 sm:$0xff]  }
 0x155   :  { %v6152_v20 = vld [vmem:[%s7966_s0 + $0x8] sm:$0x1f] }
 0x157   :  { %3509 = vmatpush1.bf16.msra.mxu0 %v5936_v21  ;;  %3796 = vmatpush1.bf16.msra.mxu1 %v5939_v22  ;;  %v690_v21 = vcombine.high %v6152_v20, %v6152_v20  ;;  %v6010_v22 = vld [vmem:[%s7967_s1 + $0xf0c] ss:$20 sps:$4 sm:$0xff]  }
 0x158   :  { %3510 = vmatprep.subr.bf16.mxu0 %v5944_v24  ;;  %3797 = vmatprep.subr.bf16.mxu1 %v5947_v25  ;;  %v6021_v24 = vld [vmem:[%s7967_s1 + $0x2b8] ss:$20 sps:$4 sm:$0xff]   ;;  %v6179_v25 = vmov 0  }
 0x15b   :  { %3511 = vmatpush1.bf16.msra.mxu0 %v5942_v26  ;;  %3798 = vmatpush1.bf16.msra.mxu1 %v5945_v28  ;;  %v6024_v26 = vld [vmem:[%s7967_s1 + $0x420] ss:$20 sps:$4 sm:$0xff]   ;;  %v704_v28 = vrot.slane %v690_v21, %v6348_v49 }
 0x15c   :  { %3512 = vmatprep.subr.bf16.mxu0 %v5950_v29  ;;  %3799 = vmatprep.subr.bf16.mxu1 %v5953_v30 }
 0x15f   :  { %3513 = vmatpush1.bf16.msra.mxu0 %v5948_v31  ;;  %3800 = vmatpush1.bf16.msra.mxu1 %v5951_v32 }
 0x160   :  { %3514 = vmatprep.subr.bf16.mxu0 %v5956_v35  ;;  %3801 = vmatprep.subr.bf16.mxu1 %v5959_v36 }
 0x163   :  { %3515 = vmatpush1.bf16.msra.mxu0 %v5954_v37  ;;  %3802 = vmatpush1.bf16.msra.mxu1 %v5957_v38 }
 0x164   :  { %3516 = vmatprep.subr.bf16.mxu0 %v5962_v39  ;;  %3803 = vmatprep.subr.bf16.mxu1 %v5965_v40 }
 0x167   :  { %3517 = vmatpush1.bf16.msra.mxu0 %v5960_v41  ;;  %3804 = vmatpush1.bf16.msra.mxu1 %v5963_v43 }
 0x168   :  { %3518 = vmatprep.subr.bf16.mxu0 %v5968_v44  ;;  %3805 = vmatprep.subr.bf16.mxu1 %v5971_v45 }
 0x16b   :  { %3519 = vmatpush1.bf16.msra.mxu0 %v5966_v46  ;;  %3806 = vmatpush1.bf16.msra.mxu1 %v5969_v48 }
 0x16c   :  { %3520 = vmatprep.subr.bf16.mxu0 %v5974_v50  ;;  %3807 = vmatprep.subr.bf16.mxu1 %v5977_v53 }
 0x16f   :  { %3521 = vmatpush1.bf16.msra.mxu0 %v5972_v54  ;;  %3808 = vmatpush1.bf16.msra.mxu1 %v5975_v55 }
 0x170   :  { %3522 = vmatprep.subr.bf16.mxu0 %v5980_v56  ;;  %3809 = vmatprep.subr.bf16.mxu1 %v5983_v57 }
 0x173   :  { %3523 = vmatpush1.bf16.msra.mxu0 %v5978_v58  ;;  %3810 = vmatpush1.bf16.msra.mxu1 %v5981_v59 }
 0x174   :  { %3524 = vmatprep.subr.bf16.mxu0 %v5986_v61  ;;  %3811 = vmatprep.subr.bf16.mxu1 %v5989_v62 }
 0x177   :  { %3525 = vmatpush1.bf16.msra.mxu0 %v5984_v0  ;;  %3812 = vmatpush1.bf16.msra.mxu1 %v5987_v1 }
 0x178   :  { %3526 = vmatprep.subr.bf16.mxu0 %v5992_v2  ;;  %3813 = vmatprep.subr.bf16.mxu1 %v5995_v34 }
 0x17b   :  { %3527 = vmatpush1.bf16.msra.mxu0 %v5990_v4  ;;  %3814 = vmatpush1.bf16.msra.mxu1 %v5993_v5 }
 0x17c   :  { %3528 = vmatprep.subr.bf16.mxu0 %v5998_v6  ;;  %3815 = vmatprep.subr.bf16.mxu1 %v6001_v7 }
 0x17f   :  { %3529 = vmatpush1.bf16.msra.mxu0 %v5996_v8  ;;  %3816 = vmatpush1.bf16.msra.mxu1 %v5999_v9 }
 0x180   :  { %3539 = vmatprep.subr.bf16.mxu0 %v6004_v10  ;;  %5175 = vmatprep.subr.bf16.mxu1 %v6016_v11 }
 0x182   :  { %3531 = vmatmul.mubr.bf16.vlgmr.msra.gmra.mrb[0].mxu0 %v7461_v12  ;;  %3818 = vmatmul.mubr.bf16.vlgmr.msra.gmra.mrb[0].mxu1 %v7461_v12 }
 0x183   :  { %3540 = vmatpush1.bf16.msra.mxu0 %v6002_v14  ;;  %3571 = vmatprep.mubr.bf16.mxu0 %v6179_v25 }
 0x184   :  { %3541 = vmatprep.subr.bf16.mxu0 %v6007_v52  ;;  %5176 = vmatpush3.bf16.msra.mxu1 %v6017_v16 }
 0x185   :  { %5177 = vmatprep.subr.bf16.mxu1 %v6020_v18  ;;  %3939 = vmatprep.mubr.bf16.mxu1 %v6445_v17 }
 0x186   :  { %10 = vsyncpa [#allocation3], 0  ;;  %v6025_v29 = vld [vmem:[%s7967_s1 + $0x2e0] ss:$20 sps:$4 sm:$0xff]   ;;  %v6028_v30 = vld [vmem:[%s7967_s1 + $0x448] ss:$20 sps:$4 sm:$0xff]   ;;  %v7501_v31 = vrot.slane %v704_v28, %v6348_v49 }
 0x187   :  { %3542 = vmatpush1.bf16.msra.mxu0 %v6005_v19  ;;  %v6008_v17 = vld [vmem:[%s7967_s1 + $0xf08] ss:$20 sps:$4 sm:$0xff]   ;;  %vm3289_vm0 = vcmask 261120   ;;  %v6032_v49 = vld [vmem:[%s7967_s1 + $0x470] ss:$20 sps:$4 sm:$0xff]   ;;  %vm6181_vm1 = vmmov 0  }
 0x188   :  { %3826 = vmatprep.subr.bf16.mxu0 %v6010_v22  ;;  %5178 = vmatpush3.bf16.msra.mxu1 %v6021_v24  ;;  %v6013_v32 = vld [vmem:[%s7967_s1 + $0xf34] ss:$20 sps:$4 sm:$0xff]   ;;  %v6011_v36 = vld [vmem:[%s7967_s1 + $0xf30] ss:$20 sps:$4 sm:$0xff]   ;;  %v6036_v39 = vld [vmem:[%s7967_s1 + $0x498] ss:$20 sps:$4 sm:$0xff]  }
 0x189   :  { %5179 = vmatprep.subr.bf16.mxu1 %v6024_v26  ;;  %v6029_v35 = vld [vmem:[%s7967_s1 + $0x308] ss:$20 sps:$4 sm:$0xff]   ;;  %v6014_v37 = vld [vmem:[%s7967_s1 + $0x150] ss:$20 sps:$4 sm:$0xff]   ;;  %v6018_v41 = vld [vmem:[%s7967_s1 + $0x178] ss:$20 sps:$4 sm:$0xff]  }
 0x18a   :  { %v6033_v38 = vld [vmem:[%s7967_s1 + $0x330] ss:$20 sps:$4 sm:$0xff]   ;;  %v6037_v43 = vld [vmem:[%s7967_s1 + $0x358] ss:$20 sps:$4 sm:$0xff]   ;;  %v6040_v44 = vld [vmem:[%s7967_s1 + $0x4c0] ss:$20 sps:$4 sm:$0xff]  }
 0x18b   :  { %v6015_v40 = vld [vmem:[%s7967_s1 + $0x10] ss:$20 sps:$4 sm:$0xff]   ;;  %v6019_v45 = vld [vmem:[%s7967_s1 + $0x38] ss:$20 sps:$4 sm:$0xff]   ;;  %v6022_v46 = vld [vmem:[%s7967_s1 + $0x1a0] ss:$20 sps:$4 sm:$0xff]  }
 0x18c   :  { %5180 = vmatpush3.bf16.msra.mxu1 %v6025_v29  ;;  %v6041_v48 = vld [vmem:[%s7967_s1 + $0x380] ss:$20 sps:$4 sm:$0xff]   ;;  %v6044_v50 = vld [vmem:[%s7967_s1 + $0x4e8] ss:$20 sps:$4 sm:$0xff]   ;;  %v6048_v55 = vld [vmem:[%s7967_s1 + $0x8d0] ss:$20 sps:$4 sm:$0xff]  }
 0x18d   :  { %5181 = vmatprep.subr.bf16.mxu1 %v6028_v30  ;;  %v6026_v53 = vld [vmem:[%s7967_s1 + $0x1c8] ss:$20 sps:$4 sm:$0xff]   ;;  %v6030_v57 = vld [vmem:[%s7967_s1 + $0x1f0] ss:$20 sps:$4 sm:$0xff]   ;;  %v6052_v59 = vld [vmem:[%s7967_s1 + $0x8f8] ss:$20 sps:$4 sm:$0xff]  }
 0x18e   :  { %5109 = vmatmul.mubr.msk.bf16.vlgmr.msra.gmra.mrb[0].mxu0 %vm3289_vm0, %v7501_v31  ;;  %v6045_v54 = vld [vmem:[%s7967_s1 + $0x3a8] ss:$20 sps:$4 sm:$0xff]   ;;  %v6049_v58 = vld [vmem:[%s7967_s1 + $0x790] ss:$20 sps:$4 sm:$0xff]   ;;  %v6034_v62 = vld [vmem:[%s7967_s1 + $0x218] ss:$20 sps:$4 sm:$0xff]  }
 0x18f   :  { %3827 = vmatpush1.bf16.msra.mxu0 %v6008_v17  ;;  %3858 = vmatprep.mubr.bf16.mxu0 %v6179_v25  ;;  %v6027_v56 = vld [vmem:[%s7967_s1 + $0x88] ss:$20 sps:$4 sm:$0xff]   ;;  %v6031_v61 = vld [vmem:[%s7967_s1 + $0xb0] ss:$20 sps:$4 sm:$0xff]   ;;  %v6053_v0 = vld [vmem:[%s7967_s1 + $0x7b8] ss:$20 sps:$4 sm:$0xff]  }
 0x190   :  { %3828 = vmatprep.subr.bf16.mxu0 %v6013_v32  ;;  %5182 = vmatpush3.bf16.msra.mxu1 %v6029_v35  ;;  %v6056_v1 = vld [vmem:[%s7967_s1 + $0x920] ss:$20 sps:$4 sm:$0xff]   ;;  %v6042_v5 = vld [vmem:[%s7967_s1 + $0x268] ss:$20 sps:$4 sm:$0xff]   ;;  %v6064_v7 = vld [vmem:[%s7967_s1 + $0x970] ss:$20 sps:$4 sm:$0xff]  }
 0x191   :  { %5183 = vmatprep.subr.bf16.mxu1 %v6032_v49  ;;  %v6038_v2 = vld [vmem:[%s7967_s1 + $0x240] ss:$20 sps:$4 sm:$0xff]   ;;  %v6061_v6 = vld [vmem:[%s7967_s1 + $0x808] ss:$20 sps:$4 sm:$0xff]   ;;  %v6046_v9 = vld [vmem:[%s7967_s1 + $0x650] ss:$20 sps:$4 sm:$0xff]  }
 0x192   :  { %v6057_v34 = vld [vmem:[%s7967_s1 + $0x7e0] ss:$20 sps:$4 sm:$0xff]   ;;  %v6043_v8 = vld [vmem:[%s7967_s1 + $0x128] ss:$20 sps:$4 sm:$0xff]   ;;  %v6065_v10 = vld [vmem:[%s7967_s1 + $0x830] ss:$20 sps:$4 sm:$0xff]  }
 0x193   :  { %3829 = vmatpush1.bf16.msra.mxu0 %v6011_v36  ;;  %v6039_v4 = vld [vmem:[%s7967_s1 + $0x100] ss:$20 sps:$4 sm:$0xff]   ;;  %v6068_v11 = vld [vmem:[%s7967_s1 + $0x998] ss:$20 sps:$4 sm:$0xff]   ;;  %v6047_v14 = vld [vmem:[%s7967_s1 + $0x510] ss:$20 sps:$4 sm:$0xff]  }
 0x194   :  { %5153 = vmatprep.subr.bf16.mxu0 %v6014_v37  ;;  %5184 = vmatpush3.bf16.msra.mxu1 %v6033_v38  ;;  %v6050_v52 = vld [vmem:[%s7967_s1 + $0x678] ss:$20 sps:$4 sm:$0xff]   ;;  %v6072_v18 = vld [vmem:[%s7967_s1 + $0x9c0] ss:$20 sps:$4 sm:$0xff]   ;;  %v6058_v22 = vld [vmem:[%s7967_s1 + $0x6c8] ss:$20 sps:$4 sm:$0xff]  }
 0x195   :  { %5185 = vmatprep.subr.bf16.mxu1 %v6036_v39  ;;  %v6069_v16 = vld [vmem:[%s7967_s1 + $0x858] ss:$20 sps:$4 sm:$0xff]   ;;  %v6054_v20 = vld [vmem:[%s7967_s1 + $0x6a0] ss:$20 sps:$4 sm:$0xff]   ;;  %v6077_v24 = vld [vmem:[%s7967_s1 + $0x8a8] ss:$20 sps:$4 sm:$0xff]  }
 0x196   :  { %5110 = vmatmul.mubr.msk.bf16.vlgmr.msra.gmra.mrb[4].mxu0 %vm3289_vm0, %v7501_v31  ;;  %v6051_v19 = vld [vmem:[%s7967_s1 + $0x538] ss:$20 sps:$4 sm:$0xff]   ;;  %v6073_v21 = vld [vmem:[%s7967_s1 + $0x880] ss:$20 sps:$4 sm:$0xff]   ;;  %v6080_v25 = vld [vmem:[%s7967_s1 + $0xdd0] ss:$20 sps:$4 sm:$0xff]  }
 0x197   :  { %5154 = vmatpush3.bf16.msra.mxu0 %v6015_v40  ;;  %3899 = vmatprep.mubr.bf16.mxu0 %v6379_v60  ;;  %v6023_v60 = vld [vmem:[%s7967_s1 + $0x60] ss:$20 sps:$4 sm:$0xff]   ;;  %v6059_v26 = vld [vmem:[%s7967_s1 + $0x588] ss:$20 sps:$4 sm:$0xff]   ;;  %v6062_v28 = vld [vmem:[%s7967_s1 + $0x6f0] ss:$20 sps:$4 sm:$0xff]  }
 0x198   :  { %5155 = vmatprep.subr.bf16.mxu0 %v6018_v41  ;;  %5186 = vmatpush3.bf16.msra.mxu1 %v6037_v43  ;;  %v6081_v29 = vld [vmem:[%s7967_s1 + $0xc90] ss:$20 sps:$4 sm:$0xff]   ;;  %v6084_v30 = vld [vmem:[%s7967_s1 + $0xdf8] ss:$20 sps:$4 sm:$0xff]   ;;  %v6088_v49 = vld [vmem:[%s7967_s1 + $0xe20] ss:$20 sps:$4 sm:$0xff]  }
 0x199   :  { %5187 = vmatprep.subr.bf16.mxu1 %v6040_v44  ;;  %v6063_v17 = vld [vmem:[%s7967_s1 + $0x5b0] ss:$20 sps:$4 sm:$0xff]   ;;  %v6066_v32 = vld [vmem:[%s7967_s1 + $0x718] ss:$20 sps:$4 sm:$0xff]   ;;  %v6070_v36 = vld [vmem:[%s7967_s1 + $0x740] ss:$20 sps:$4 sm:$0xff]  }
 0x19a   :  { %v6085_v35 = vld [vmem:[%s7967_s1 + $0xcb8] ss:$20 sps:$4 sm:$0xff]   ;;  %v6089_v37 = vld [vmem:[%s7967_s1 + $0xce0] ss:$20 sps:$4 sm:$0xff]   ;;  %v6074_v39 = vld [vmem:[%s7967_s1 + $0x768] ss:$20 sps:$4 sm:$0xff]  }
 0x19b   :  { %5156 = vmatpush3.bf16.msra.mxu0 %v6019_v45  ;;  %v6071_v38 = vld [vmem:[%s7967_s1 + $0x600] ss:$20 sps:$4 sm:$0xff]   ;;  %v6093_v40 = vld [vmem:[%s7967_s1 + $0xd08] ss:$20 sps:$4 sm:$0xff]   ;;  %v6096_v41 = vld [vmem:[%s7967_s1 + $0xe70] ss:$20 sps:$4 sm:$0xff]  }
 0x19c   :  { %5157 = vmatprep.subr.bf16.mxu0 %v6022_v46  ;;  %5188 = vmatpush3.bf16.msra.mxu1 %v6041_v48  ;;  %v6075_v43 = vld [vmem:[%s7967_s1 + $0x628] ss:$20 sps:$4 sm:$0xff]   ;;  %v6078_v44 = vld [vmem:[%s7967_s1 + $0xb50] ss:$20 sps:$4 sm:$0xff]   ;;  %v6100_v46 = vld [vmem:[%s7967_s1 + $0xe98] ss:$20 sps:$4 sm:$0xff]  }
 0x19d   :  { %5189 = vmatprep.subr.bf16.mxu1 %v6044_v50  ;;  %v6097_v45 = vld [vmem:[%s7967_s1 + $0xd30] ss:$20 sps:$4 sm:$0xff]   ;;  %v6082_v50 = vld [vmem:[%s7967_s1 + $0xb78] ss:$20 sps:$4 sm:$0xff]   ;;  %s6182_s23 = smov [#allocation2]  }
 0x19e   :  { %v6079_v48 = vld [vmem:[%s7967_s1 + $0xa10] ss:$20 sps:$4 sm:$0xff]   ;;  %s4611_s24 = sshll.u32 %s6182_s23, 4  ;;  %s4612_s24 = int_to_ptr.vmem [resolvable:$true] %s4611_s24 }
 0x19f   :  { %5158 = vmatpush3.bf16.msra.mxu0 %v6023_v60  ;;  %v6101_v60 = vld [vmem:[%s7967_s1 + $0xd58] ss:$20 sps:$4 sm:$0xff]   ;;  %s6154_s25 = scalar_lea.vmem %s4612_s24, 32  ;;  %p6159_p1 = scmp.lt.s32.totalorder %s4612_s24, %s4612_s24 }
 0x1a0   :  { %5159 = vmatprep.subr.bf16.mxu0 %v6026_v53  ;;  %5190 = vmatpush3.bf16.msra.mxu1 %v6045_v54  ;;  %v6104_v53 = vld [vmem:[%s7967_s1 + $0xec0] ss:$20 sps:$4 sm:$0xff]   ;;  %v6083_v54 = vld [vmem:[%s7967_s1 + $0xa38] ss:$20 sps:$4 sm:$0xff]   ;;  %p6155_p0 = scmp.ne.s32.totalorder %s4612_s24, %s6154_s25  ;;  %p6160_p2 = scmp.lt.s32.totalorder %s6154_s25, %s6154_s25 }
 0x1a1   :  { %5219 = vmatprep.subr.bf16.mxu1 %v6048_v55  ;;  %v6086_v55 = vld [vmem:[%s7967_s1 + $0xba0] ss:$20 sps:$4 sm:$0xff]  }
 0x1a2   :  { %p6161_p3 = por %p6160_p2, %p6159_p1 }
 0x1a3   :  { %5160 = vmatpush3.bf16.msra.mxu0 %v6027_v56  ;;  %3940 = vmatmul.mubr.bf16.vlgmr.msra.gmra.mrb[4].mxu1 %v6643_v23  ;;  %v6035_v23 = vld [vmem:[%s7967_s1 + $0xd8] ss:$20 sps:$4 sm:$0xff]   ;;  %v6105_v56 = vld [vmem:[%s7967_s1 + $0xd80] ss:$20 sps:$4 sm:$0xff]  }
 0x1a4   :  { %5161 = vmatprep.subr.bf16.mxu0 %v6030_v57  ;;  %5220 = vmatpush3.bf16.msra.mxu1 %v6049_v58  ;;  %v6090_v57 = vld [vmem:[%s7967_s1 + $0xbc8] ss:$20 sps:$4 sm:$0xff]   ;;  %p6162_p4 = pnand %p6161_p3, %p6155_p0 }
 0x1a5   :  { %5221 = vmatprep.subr.bf16.mxu1 %v6052_v59  ;;  %4019 = vmatprep.mubr.bf16.mxu1 %v6859_v15  ;;  %v6060_v15 = vld [vmem:[%s7967_s1 + $0x948] ss:$20 sps:$4 sm:$0xff]   ;;  %v6112_v59 = vld [vmem:[%s7969_s3 + $0x40] sm:$0xff]  }
 0x1a6   :  { %v6109_v58 = vld [vmem:[%s7967_s1 + $0xda8] ss:$20 sps:$4 sm:$0xff]  }
 0x1a7   :  { %5162 = vmatpush3.bf16.msra.mxu0 %v6031_v61  ;;  %v6091_v61 = vld [vmem:[%s7967_s1 + $0xa88] ss:$20 sps:$4 sm:$0xff]  }
 0x1a8   :  { %5163 = vmatprep.subr.bf16.mxu0 %v6034_v62  ;;  %5222 = vmatpush3.bf16.msra.mxu1 %v6053_v0  ;;  %v6094_v62 = vld [vmem:[%s7967_s1 + $0xbf0] ss:$20 sps:$4 sm:$0xff]  }
 0x1a9   :  { %5223 = vmatprep.subr.bf16.mxu1 %v6056_v1  ;;  %v6113_v0 = vld [vmem:[%s7969_s3] sm:$0xff]   ;;  %v6114_v1 = vld [vmem:[%s7969_s3 + $0x48] sm:$0xff]  }
 0x1ab   :  { %5164 = vmatpush3.bf16.msra.mxu0 %v6035_v23  ;;  %v6095_v23 = vld [vmem:[%s7967_s1 + $0xab0] ss:$20 sps:$4 sm:$0xff]  }
 0x1ac   :  { %5165 = vmatprep.subr.bf16.mxu0 %v6038_v2  ;;  %5224 = vmatpush3.bf16.msra.mxu1 %v6057_v34  ;;  %v6098_v2 = vld [vmem:[%s7967_s1 + $0xc18] ss:$20 sps:$4 sm:$0xff]  }
 0x1ad   :  { %5225 = vmatprep.subr.bf16.mxu1 %v6060_v15  ;;  %v6115_v34 = vld [vmem:[%s7969_s3 + $0x8] sm:$0xff]   ;;  %v6116_v15 = vld [vmem:[%s7969_s3 + $0x50] sm:$0xff]  }
 0x1af   :  { %5166 = vmatpush3.bf16.msra.mxu0 %v6039_v4  ;;  %v6102_v4 = vld [vmem:[%s7967_s1 + $0xc40] ss:$20 sps:$4 sm:$0xff]  }
 0x1b0   :  { %5167 = vmatprep.subr.bf16.mxu0 %v6042_v5  ;;  %5226 = vmatpush3.bf16.msra.mxu1 %v6061_v6  ;;  %v6118_v5 = vld [vmem:[%s7969_s3 + $0x10] sm:$0xff]   ;;  %v6120_v6 = vld [vmem:[%s7969_s3 + $0x58] sm:$0xff]  }
 0x1b1   :  { %5227 = vmatprep.subr.bf16.mxu1 %v6064_v7  ;;  %v6103_v7 = vld [vmem:[%s7967_s1 + $0xb00] ss:$20 sps:$4 sm:$0xff]  }
 0x1b3   :  { %5168 = vmatpush3.bf16.msra.mxu0 %v6043_v8  ;;  %v6106_v8 = vld [vmem:[%s7967_s1 + $0xc68] ss:$20 sps:$4 sm:$0xff]  }
 0x1b4   :  { %5197 = vmatprep.subr.bf16.mxu0 %v6046_v9  ;;  %5228 = vmatpush3.bf16.msra.mxu1 %v6065_v10  ;;  %v6122_v9 = vld [vmem:[%s7969_s3 + $0x18] sm:$0xff]   ;;  %v6124_v10 = vld [vmem:[%s7969_s3 + $0x60] sm:$0xff]  }
 0x1b5   :  { %5229 = vmatprep.subr.bf16.mxu1 %v6068_v11  ;;  %v6107_v11 = vld [vmem:[%s7967_s1 + $0xb28] ss:$20 sps:$4 sm:$0xff]  }
 0x1b6   :  { %3900 = vmatmul.mubr.bf16.vlgmr.msra.gmra.mrb[8].mxu0 %v6432_v13  ;;  %v6076_v13 = vld [vmem:[%s7967_s1 + $0x9e8] ss:$20 sps:$4 sm:$0xff]  }
 0x1b7   :  { %5198 = vmatpush3.bf16.msra.mxu0 %v6047_v14  ;;  %3979 = vmatprep.mubr.bf16.mxu0 %v6655_v27  ;;  %v6055_v27 = vld [vmem:[%s7967_s1 + $0x560] ss:$20 sps:$4 sm:$0xff]  }
 0x1b8   :  { %5199 = vmatprep.subr.bf16.mxu0 %v6050_v52  ;;  %5230 = vmatpush3.bf16.msra.mxu1 %v6069_v16  ;;  %v6126_v14 = vld [vmem:[%s7969_s3 + $0x20] sm:$0xff]   ;;  %v6128_v52 = vld [vmem:[%s7969_s3 + $0x68] sm:$0xff]  }
 0x1b9   :  { %5231 = vmatprep.subr.bf16.mxu1 %v6072_v18  ;;  %v6110_v16 = vld [vmem:[%s7967_s1 + $0xf10] ss:$20 sps:$4 sm:$0xff]   ;;  %v6180_v18 = vmov 0.0  }
 0x1bb   :  { %5200 = vmatpush3.bf16.msra.mxu0 %v6051_v19  ;;  %v6130_v19 = vld [vmem:[%s7969_s3 + $0x28] sm:$0xff]  }
 0x1bc   :  { %5201 = vmatprep.subr.bf16.mxu0 %v6054_v20  ;;  %5232 = vmatpush3.bf16.msra.mxu1 %v6073_v21  ;;  %v6132_v20 = vld [vmem:[%s7969_s3 + $0x70] sm:$0xff]   ;;  %v6111_v21 = vld [vmem:[%s7967_s1 + $0xf38] ss:$20 sps:$4 sm:$0xff]  }
 0x1bd   :  { %5233 = vmatprep.subr.bf16.mxu1 %v6076_v13  ;;  %v6117_v13 = vld [vmem:[%s7969_s3 + $0xc0] sm:$0xff]  }
 0x1bf   :  { %5202 = vmatpush3.bf16.msra.mxu0 %v6055_v27  ;;  %v6136_v27 = vld [vmem:[%s7969_s3 + $0x78] sm:$0xff]  }
 0x1c0   :  { %5203 = vmatprep.subr.bf16.mxu0 %v6058_v22  ;;  %5234 = vmatpush3.bf16.msra.mxu1 %v6077_v24  ;;  %v6119_v22 = vld [vmem:[%s7969_s3 + $0x80] sm:$0xff]   ;;  %v6121_v24 = vld [vmem:[%s7969_s3 + $0xc8] sm:$0xff]  }
 0x1c1   :  { %5263 = vmatprep.subr.bf16.mxu1 %v6080_v25  ;;  %v6138_v25 = vld [vmem:[%s7969_s3 + $0x38] sm:$0xff]  }
 0x1c3   :  { %5204 = vmatpush3.bf16.msra.mxu0 %v6059_v26  ;;  %4020 = vmatmul.mubr.bf16.vlgmr.msra.gmra.mrb[8].mxu1 %v7060_v47  ;;  %v6067_v47 = vld [vmem:[%s7967_s1 + $0x5d8] ss:$20 sps:$4 sm:$0xff]  }
 0x1c4   :  { %5205 = vmatprep.subr.bf16.mxu0 %v6062_v28  ;;  %5264 = vmatpush3.bf16.msra.mxu1 %v6081_v29  ;;  %v6123_v26 = vld [vmem:[%s7969_s3 + $0x88] sm:$0xff]   ;;  %v6125_v28 = vld [vmem:[%s7969_s3 + $0xd0] sm:$0xff]  }
 0x1c5   :  { %5265 = vmatprep.subr.bf16.mxu1 %v6084_v30  ;;  %4099 = vmatprep.mubr.bf16.mxu1 %v7276_v3  ;;  %v6092_v3 = vld [vmem:[%s7967_s1 + $0xe48] ss:$20 sps:$4 sm:$0xff]   ;;  %v6127_v29 = vld [vmem:[%s7969_s3 + $0x90] sm:$0xff]  }
 0x1c6   :  { %v6131_v30 = vld [vmem:[%s7969_s3 + $0x98] sm:$0xff]  }
 0x1c7   :  { %5206 = vmatpush3.bf16.msra.mxu0 %v6063_v17  ;;  %v6133_v17 = vld [vmem:[%s7969_s3 + $0xe0] sm:$0xff]  }
 0x1c8   :  { %5207 = vmatprep.subr.bf16.mxu0 %v6066_v32  ;;  %5266 = vmatpush3.bf16.msra.mxu1 %v6085_v35  ;;  %v6135_v32 = vld [vmem:[%s7969_s3 + $0xa0] sm:$0xff]   ;;  %v6137_v35 = vld [vmem:[%s7969_s3 + $0xe8] sm:$0xff]  }
 0x1c9   :  { %5267 = vmatprep.subr.bf16.mxu1 %v6088_v49  ;;  %v6139_v49 = vld [vmem:[%s7969_s3 + $0xa8] sm:$0xff]  }
 0x1cb   :  { %5208 = vmatpush3.bf16.msra.mxu0 %v6067_v47  ;;  %v6140_v47 = vld [vmem:[%s7969_s3 + $0xf0] sm:$0xff]  }
 0x1cc   :  { %5209 = vmatprep.subr.bf16.mxu0 %v6070_v36  ;;  %5268 = vmatpush3.bf16.msra.mxu1 %v6089_v37  ;;  %v6141_v36 = vld [vmem:[%s7969_s3 + $0xb0] sm:$0xff]   ;;  %v6142_v37 = vld [vmem:[%s7969_s3 + $0xf8] sm:$0xff]  }
 0x1cd   :  { %5269 = vmatprep.subr.bf16.mxu1 %v6092_v3  ;;  %v6143_v3 = vld [vmem:[%s7969_s3 + $0xb8] sm:$0xff]  }
 0x1cf   :  { %5210 = vmatpush3.bf16.msra.mxu0 %v6071_v38 }
 0x1d0   :  { %5211 = vmatprep.subr.bf16.mxu0 %v6074_v39  ;;  %5270 = vmatpush3.bf16.msra.mxu1 %v6093_v40 }
 0x1d1   :  { %5271 = vmatprep.subr.bf16.mxu1 %v6096_v41 }
 0x1d3   :  { %5212 = vmatpush3.bf16.msra.mxu0 %v6075_v43  ;;  %v616_v43 = vsub.s32 0, %v6330_v42 }
 0x1d4   :  { %5241 = vmatprep.subr.bf16.mxu0 %v6078_v44  ;;  %5272 = vmatpush3.bf16.msra.mxu1 %v6097_v45  ;;  %v620_v44 = vsub.s32 1, %v6330_v42  ;;  %v7908_v45 = vld [vmem:[%s7968_s2] sm:$0x1f] }
 0x1d5   :  { %5273 = vmatprep.subr.bf16.mxu1 %v6100_v46  ;;  %v617_v46 = vrot.slane %v7908_v45, %v616_v43 }
 0x1d6   :  { %3980 = vmatmul.mubr.bf16.vlgmr.msra.gmra.mrb[12].mxu0 %v6846_v33  ;;  %v6108_v33 = vld [vmem:[%s7967_s1 + $0xee8] ss:$20 sps:$4 sm:$0xff]  }
 0x1d7   :  { %5242 = vmatpush3.bf16.msra.mxu0 %v6079_v48  ;;  %4059 = vmatprep.mubr.bf16.mxu0 %v7069_v51  ;;  %v6087_v51 = vld [vmem:[%s7967_s1 + $0xa60] ss:$20 sps:$4 sm:$0xff]   ;;  %v621_v48 = vrot.slane %v7908_v45, %v620_v44 }
 0x1d8   :  { %5243 = vmatprep.subr.bf16.mxu0 %v6082_v50  ;;  %5274 = vmatpush3.bf16.msra.mxu1 %v6101_v60  ;;  %v624_v50 = vsub.s32 2, %v6330_v42  ;;  %v628_v60 = vsub.s32 3, %v6330_v42 }
 0x1d9   :  { %5275 = vmatprep.subr.bf16.mxu1 %v6104_v53 }
 0x1db   :  { %5244 = vmatpush3.bf16.msra.mxu0 %v6083_v54 }
 0x1dc   :  { %5245 = vmatprep.subr.bf16.mxu0 %v6086_v55  ;;  %5276 = vmatpush3.bf16.msra.mxu1 %v6105_v56 }
 0x1dd   :  { %5277 = vmatprep.subr.bf16.mxu1 %v6108_v33 }
 0x1df   :  { %5246 = vmatpush3.bf16.msra.mxu0 %v6087_v51  ;;  %v625_v51 = vrot.slane %v7908_v45, %v624_v50 }
 0x1e0   :  { %5247 = vmatprep.subr.bf16.mxu0 %v6090_v57  ;;  %5278 = vmatpush3.bf16.msra.mxu1 %v6109_v58 }
 0x1e1   :  { %5288 = vmatprep.subr.bf16.mxu1 %v6112_v59  ;;  %v629_v59 = vrot.slane %v7908_v45, %v628_v60 }
 0x1e3   :  { %5248 = vmatpush3.bf16.msra.mxu0 %v6091_v61  ;;  %4100 = vmatmul.mubr.bf16.vlgmr.msra.gmra.mrb[12].mxu1 %v7461_v12  ;;  %v6099_v12 = vld [vmem:[%s7967_s1 + $0xad8] ss:$20 sps:$4 sm:$0xff]  }
 0x1e4   :  { %5249 = vmatprep.subr.bf16.mxu0 %v6094_v62  ;;  %5289 = vmatpush3.bf16.msra.mxu1 %v6113_v0  ;;  %v6144_v0 = vld [vmem:[%s7969_s3 + $0x100] sm:$0xff]  }
 0x1e5   :  { %5290 = vmatprep.subr.bf16.mxu1 %v6114_v1 }
 0x1e7   :  { %5250 = vmatpush3.bf16.msra.mxu0 %v6095_v23 }
 0x1e8   :  { %5251 = vmatprep.subr.bf16.mxu0 %v6098_v2  ;;  %5291 = vmatpush3.bf16.msra.mxu1 %v6115_v34 }
 0x1e9   :  { %5292 = vmatprep.subr.bf16.mxu1 %v6116_v15 }
 0x1eb   :  { %5252 = vmatpush3.bf16.msra.mxu0 %v6099_v12 }
 0x1ec   :  { %5253 = vmatprep.subr.bf16.mxu0 %v6102_v4  ;;  %5293 = vmatpush3.bf16.msra.mxu1 %v6118_v5 }
 0x1ed   :  { %5294 = vmatprep.subr.bf16.mxu1 %v6120_v6  ;;  %v6145_v6 = vld [vmem:[%s7969_s3 + $0x108] sm:$0xff]  }
 0x1ef   :  { %5254 = vmatpush3.bf16.msra.mxu0 %v6103_v7 }
 0x1f0   :  { %5255 = vmatprep.subr.bf16.mxu0 %v6106_v8  ;;  %5295 = vmatpush3.bf16.msra.mxu1 %v6122_v9 }
 0x1f1   :  { %5296 = vmatprep.subr.bf16.mxu1 %v6124_v10 }
 0x1f3   :  { %5256 = vmatpush3.bf16.msra.mxu0 %v6107_v11  ;;  %v6146_v11 = vld [vmem:[%s7969_s3 + $0x110] sm:$0xff]  }
 0x1f4   :  { %5341 = vmatprep.subr.bf16.mxu0 %v6180_v18  ;;  %5297 = vmatpush3.bf16.msra.mxu1 %v6126_v14 }
 0x1f5   :  { %5298 = vmatprep.subr.bf16.mxu1 %v6128_v52  ;;  %v6147_v52 = vld [vmem:[%s7969_s3 + $0x118] sm:$0xff]  }
 0x1f6   :  { %4060 = vmatmul.mubr.bf16.vlgmr.msra.gmra.mrb[16].mxu0 %v7260_v63  ;;  %v6134_v63 = vld [vmem:[%s7969_s3 + $0x30] sm:$0xff]  }
 0x1f7   :  { %5342 = vmatpush3.bf16.msra.mxu0 %v6110_v16  ;;  %5345 = vmatprep.mubr.msk.bf16.mxu0 %vm6181_vm1, %v6180_v18 }
 0x1f8   :  { %5343 = vmatprep.subr.bf16.mxu0 %v6180_v18  ;;  %5299 = vmatpush3.bf16.msra.mxu1 %v6130_v19 }
 0x1f9   :  { %5300 = vmatprep.subr.bf16.mxu1 %v6132_v20  ;;  %v6148_v20 = vld [vmem:[%s7969_s3 + $0x120] sm:$0xff]  }
 0x1fb   :  { %5344 = vmatpush3.bf16.msra.mxu0 %v6111_v21 }
 0x1fc   :  { %5310 = vmatprep.subr.bf16.mxu0 %v6117_v13  ;;  %5301 = vmatpush3.bf16.msra.mxu1 %v6134_v63 }
 0x1fd   :  { %5302 = vmatprep.subr.bf16.mxu1 %v6136_v27  ;;  %v6149_v27 = vld [vmem:[%s7969_s3 + $0x128] sm:$0xff]  }
 0x1fe   :  { %5346 = vmatmul.mubr.msk.bf16.vlgmr.msra.gmra.mrb[20].mxu0 %vm3289_vm0, %v7501_v31  ;;  %v6129_v31 = vld [vmem:[%s7969_s3 + $0xd8] sm:$0xff]  }
 0x1ff   :  { %5311 = vmatpush3.bf16.msra.mxu0 %v6119_v22  ;;  %v6150_v22 = vld [vmem:[%s7969_s3 + $0x130] sm:$0xff]  }
 0x200   :  { %5312 = vmatprep.subr.bf16.mxu0 %v6121_v24  ;;  %5303 = vmatpush3.bf16.msra.mxu1 %v6138_v25  ;;  %v6151_v24 = vld [vmem:[%s7969_s3 + $0x138] sm:$0xff]   ;;  %v632_v25 = vsub.s32 4, %v6330_v42 }
 0x201   :  { %5349 = vmatprep.subr.bf16.mxu1 %v6180_v18 }
 0x203   :  { %5313 = vmatpush3.bf16.msra.mxu0 %v6123_v26 }
 0x204   :  { %5314 = vmatprep.subr.bf16.mxu0 %v6125_v28  ;;  %v633_v28 = vrot.slane %v7908_v45, %v632_v25 }
 0x207   :  { %5315 = vmatpush3.bf16.msra.mxu0 %v6127_v29 }
 0x208   :  { %5316 = vmatprep.subr.bf16.mxu0 %v6129_v31 }
 0x20b   :  { %5317 = vmatpush3.bf16.msra.mxu0 %v6131_v30 }
 0x20c   :  { %5318 = vmatprep.subr.bf16.mxu0 %v6133_v17 }
 0x20f   :  { %5319 = vmatpush3.bf16.msra.mxu0 %v6135_v32 }
 0x210   :  { %5320 = vmatprep.subr.bf16.mxu0 %v6137_v35 }
 0x213   :  { %5321 = vmatpush3.bf16.msra.mxu0 %v6139_v49 }
 0x214   :  { %5322 = vmatprep.subr.bf16.mxu0 %v6140_v47 }
 0x217   :  { %5323 = vmatpush3.bf16.msra.mxu0 %v6141_v36 }
 0x218   :  { %5324 = vmatprep.subr.bf16.mxu0 %v6142_v37 }
 0x21b   :  { %5325 = vmatpush3.bf16.msra.mxu0 %v6143_v3 }
 0x255   :  { %v3819_v38 = vpop.f32.mrb[0].mxu1 }
 0x256   :  { %v3821_v39 = vpop.f32.mrb[1].mxu1  ;;  %v5371_v1 = vadd.f32 %v3819_v38, %v625_v51 }
 0x257   :  { %v3823_v40 = vpop.f32.mrb[2].mxu1  ;;  %v5373_v2 = vadd.f32 %v3821_v39, %v629_v59 }
 0x258   :  { %v3824_v41 = vpop.f32.mrb[3].mxu1 }
 0x261   :  { %v3573_v53 = vpop.f32.mrb[0].mxu0 }
 0x262   :  { %v5369_v54 = vadd.f32 %v3573_v53, %v617_v46  ;;  %v3575_v55 = vpop.f32.mrb[1].mxu0 }
 0x263   :  { %v5370_v56 = vadd.f32 %v3575_v55, %v621_v48  ;;  %v3577_v33 = vpop.f32.mrb[2].mxu0 }
 0x264   :  { %v4147_v57 = vmax.f32 %v5369_v54, 0.0  ;;  %v3578_v58 = vpop.f32.mrb[3].mxu0 }
 0x265   :  { %v4148_v61 = vmax.f32 %v5370_v56, 0.0 }
 0x266   :  { %v4152_v23 = vpack.c.bf16 %v4147_v57, %v4147_v57 }
 0x267   :  { %v4153_v62 = vpack.c.bf16 %v4148_v61, %v4148_v61 }
 0x269   :  { %v3860_v34 = vpop.f32.mrb[4].mxu0  ;;  %4516 = vmatprep.mubr.bf16.mxu1 %v4153_v62 }
 0x26a   :  { %v5372_v15 = vadd.f32 %v5371_v1, %v3860_v34  ;;  %v3862_v12 = vpop.f32.mrb[5].mxu0  ;;  %4517 = vmatmul.mubr.bf16.vlgmr.msra.gmra.mrb[16].mxu1 %v4152_v23 }
 0x26b   :  { %v5374_v4 = vadd.f32 %v5373_v2, %v3862_v12  ;;  %v3864_v5 = vpop.f32.mrb[6].mxu0  ;;  %5350 = vmatpush3.bf16.msra.mxu1 %v6144_v0  ;;  %5365 = vmatprep.mubr.msk.bf16.mxu1 %vm6181_vm1, %v6180_v18 }
 0x26c   :  { %v4149_v7 = vmax.f32 %v5372_v15, 0.0  ;;  %v3865_v8 = vpop.f32.mrb[7].mxu0  ;;  %5351 = vmatprep.subr.bf16.mxu1 %v6180_v18 }
 0x26d   :  { %v4150_v9 = vmax.f32 %v5374_v4, 0.0  ;;  %v5112_v4 = vld [vmem:[%s7970_s4] ss:$0 sm:$0xff] }
 0x26e   :  { %v4154_v14 = vpack.c.bf16 %v4149_v7, %v4149_v7 }
 0x26f   :  { %v4155_v10 = vpack.c.bf16 %v4150_v9, %v4150_v9  ;;  %5352 = vmatpush3.bf16.msra.mxu1 %v6145_v6 }
 0x270   :  { %5353 = vmatprep.subr.bf16.mxu1 %v6180_v18 }
 0x271   :  { %4556 = vmatprep.mubr.bf16.mxu0 %v4155_v10 }
 0x272   :  { %4557 = vmatmul.mubr.bf16.vlgmr.msra.gmra.mrb[24].mxu0 %v4154_v14 }
 0x273   :  { %5354 = vmatpush3.bf16.msra.mxu1 %v6146_v11 }
 0x274   :  { %5355 = vmatprep.subr.bf16.mxu1 %v6180_v18 }
 0x276   :  { %v5191_v16 = vpop.f32.mrb[4].mxu1 }
 0x277   :  { %v5192_v19 = vpop.f32.mrb[5].mxu1  ;;  %5356 = vmatpush3.bf16.msra.mxu1 %v6147_v52 }
 0x278   :  { %v5193_v21 = vadd.f32 %v5192_v19, %v5191_v16  ;;  %v5194_v13 = vpop.f32.mrb[6].mxu1  ;;  %5357 = vmatprep.subr.bf16.mxu1 %v6180_v18 }
 0x279   :  { %v5195_v63 = vpop.f32.mrb[7].mxu1 }
 0x27b   :  { %5358 = vmatpush3.bf16.msra.mxu1 %v6148_v20 }
 0x27c   :  { %5359 = vmatprep.subr.bf16.mxu1 %v6180_v18 }
 0x27f   :  { %5360 = vmatpush3.bf16.msra.mxu1 %v6149_v27 }
 0x280   :  { %5361 = vmatprep.subr.bf16.mxu1 %v6180_v18 }
 0x283   :  { %5362 = vmatpush3.bf16.msra.mxu1 %v6150_v22 }
 0x284   :  { %5363 = vmatprep.subr.bf16.mxu1 %v6180_v18 }
 0x287   :  { %5364 = vmatpush3.bf16.msra.mxu1 %v6151_v24 }
 0x289   :  { %v5169_v26 = vpop.f32.mrb[8].mxu0 }
 0x28a   :  { %v5170_v29 = vpop.f32.mrb[9].mxu0 }
 0x28b   :  { %v5171_v31 = vadd.f32 %v5170_v29, %v5169_v26  ;;  %v5172_v30 = vpop.f32.mrb[10].mxu0 }
 0x28c   :  { %v5173_v17 = vpop.f32.mrb[11].mxu0 }
 0x28d   :  { %v3902_v32 = vadd.f32 %v5171_v31, %v633_v28 }
 0x28f   :  { %v3942_v35 = vadd.f32 %v5193_v21, %v3902_v32 }
 0x296   :  { %v5235_v49 = vpop.f32.mrb[8].mxu1 }
 0x297   :  { %v5236_v47 = vpop.f32.mrb[9].mxu1 }
 0x298   :  { %v5237_v36 = vadd.f32 %v5236_v47, %v5235_v49  ;;  %v5238_v37 = vpop.f32.mrb[10].mxu1 }
 0x299   :  { %v5239_v3 = vpop.f32.mrb[11].mxu1 }
 0x2a9   :  { %v5213_v38 = vpop.f32.mrb[12].mxu0 }
 0x2aa   :  { %v5214_v39 = vpop.f32.mrb[13].mxu0 }
 0x2ab   :  { %v5215_v18 = vadd.f32 %v5214_v39, %v5213_v38  ;;  %v5216_v40 = vpop.f32.mrb[14].mxu0 }
 0x2ac   :  { %v5217_v42 = vpop.f32.mrb[15].mxu0 }
 0x2ad   :  { %v3982_v41 = vadd.f32 %v5215_v18, %v3942_v35 }
 0x2af   :  { %v4022_v43 = vadd.f32 %v5237_v36, %v3982_v41 }
 0x2b6   :  { %v5279_v44 = vpop.f32.mrb[12].mxu1 }
 0x2b7   :  { %v5280_v45 = vpop.f32.mrb[13].mxu1 }
 0x2b8   :  { %v5281_v46 = vadd.f32 %v5280_v45, %v5279_v44  ;;  %v5282_v48 = vpop.f32.mrb[14].mxu1 }
 0x2b9   :  { %v5283_v50 = vpop.f32.mrb[15].mxu1 }
 0x2c9   :  { %v5257_v60 = vpop.f32.mrb[16].mxu0 }
 0x2ca   :  { %v5258_v53 = vpop.f32.mrb[17].mxu0 }
 0x2cb   :  { %v5259_v54 = vadd.f32 %v5258_v53, %v5257_v60  ;;  %v5260_v55 = vpop.f32.mrb[18].mxu0 }
 0x2cc   :  { %v5261_v56 = vpop.f32.mrb[19].mxu0 }
 0x2cd   :  { %v4062_v33 = vadd.f32 %v5259_v54, %v4022_v43 }
 0x2cf   :  { %v4102_v51 = vadd.f32 %v5281_v46, %v4062_v33 }
 0x2d1   :  { %v4141_v57 = vpop.f32.mrb[20].mxu0 }
 0x2d2   :  { %v4142_v58 = vadd.f32 %v4141_v57, %v4102_v51  ;;  %v5347_v59 = vpop.f32.mrb[21].mxu0 }
 0x2d3   :  { %v4144_v61 = vpop.f32.mrb[22].mxu0 }
 0x2d4   :  { %v4151_v62 = vmax.f32 %v4142_v58, 0.0  ;;  %v5348_v0 = vpop.f32.mrb[23].mxu0 }
 0x2d6   :  { %v4156_v1 = vpack.c.bf16 %v4151_v62, %v4151_v62 }
 0x2d8   :  { %5366 = vmatmul.mubr.bf16.vlgmr.msra.gmra.mrb[20].mxu1 %v4156_v1 }
 0x33d   :  { %v5304_v23 = vpop.f32.mrb[16].mxu1 }
 0x33e   :  { %v5305_v2 = vpop.f32.mrb[17].mxu1 }
 0x33f   :  { %v5306_v34 = vadd.f32 %v5305_v2, %v5304_v23  ;;  %v5307_v15 = vpop.f32.mrb[18].mxu1 }
 0x340   :  { %v5308_v12 = vpop.f32.mrb[19].mxu1 }
 0x341   :  { %v4519_v7 = vadd.f32 %v5306_v34, %v5112_v4 }
 0x345   :  { %v5326_v5 = vpop.f32.mrb[24].mxu0 }
 0x346   :  { %v5327_v6 = vpop.f32.mrb[25].mxu0 }
 0x347   :  { %v5328_v8 = vadd.f32 %v5327_v6, %v5326_v5  ;;  %v5329_v9 = vpop.f32.mrb[26].mxu0 }
 0x348   :  { %v5330_v10 = vpop.f32.mrb[27].mxu0 }
 0x349   :  { %v4559_v11 = vadd.f32 %v5328_v8, %v4519_v7 }
 0x3ab   :  { %v4598_v14 = vpop.f32.mrb[20].mxu1 }
 0x3ac   :  { %v4599_v52 = vadd.f32 %v4598_v14, %v4559_v11  ;;  %v5367_v16 = vpop.f32.mrb[21].mxu1 }
 0x3ad   :  { %v4601_v19 = vpop.f32.mrb[22].mxu1 }
 0x3ae   :  { %4604 = vst [vmem:[#allocation2] sm:$0x3] %v4599_v52  ;;  %v5368_v20 = vpop.f32.mrb[23].mxu1 }
 0x3af   :  { %6165 = shalt.err (!%p6162_p4)
}
 0x3b0   :  { %s6166_s1 = scalar_lea.hbm %s7971_s5, 32 }
 0x3b1   :  { %p6167_p5 = scmp.ne.s32.totalorder %s7971_s5, %s6166_s1  ;;  %p6170_p6 = scmp.lt.u32.totalorder %s6166_s1, %s7971_s5 }
 0x3b3   :  { %p6172_p7 = pnand %p6170_p6, %p6167_p5 }
 0x3b5   :  { %6175 = shalt.err (!%p6172_p7)
}
 0x3b6   :  { %4614 = dma.vmem_to_hbm [thread:$0]  %s4612_s24, 32, %s7971_s5, [#allocation3]  }
 0x3b7   :  { %6176 = dma.done.wait [#allocation3], 32  }
 0x3b8   :  { %6177 = vsyncadd [#allocation3], 4294967264 }
 0x3b9   :  { %4618 = vsyncpa [#allocation3], 1 }

</bundles_post_ra>
